<compile_context>
chip_gen: v6e
topology: v6e:2x2x1
jax: 0.10.0
libtpu: 0.0.40
codegen_flags: <defaults>
</compile_context>

<pallas_src>
import math
import jax
import jax.numpy as jnp
from jax.experimental import pallas as pl
from jax.experimental.pallas import tpu as pltpu


# ----------------------------- hardware-aware knobs -------------------------

def _vmem_capacity_bytes():
    try:
        info = pltpu.get_tpu_info()
        cap = getattr(info, "vmem_capacity_bytes", None)
        if cap:
            return int(cap)
    except Exception:
        pass
    try:
        kind = jax.devices()[0].device_kind.lower()
        if "v7" in kind or "7x" in kind:
            return 64 << 20
    except Exception:
        pass
    return 128 << 20


_VMEM_BYTES = _vmem_capacity_bytes()
_VMEM_LIMIT = int(min(_VMEM_BYTES, 128 << 20) * 3 // 4)       # leave headroom
_BIG_VMEM = _VMEM_BYTES >= (100 << 20)
_TM, _TN, _TK = (512, 512, 1024) if _BIG_VMEM else (256, 256, 512)


def _cparams(dims):
    return pltpu.CompilerParams(dimension_semantics=dims,
                                vmem_limit_bytes=_VMEM_LIMIT)


# ----------------------------- small helpers -------------------------------

def _round_up(x, m):
    return ((x + m - 1) // m) * m


def _pad2(a, M, N):
    m, n = a.shape
    if m == M and n == N:
        return a
    return jnp.pad(a, ((0, M - m), (0, N - n)))


# ----------------------------- Pallas kernels ------------------------------

def linear_pallas(x, w, b=None, *, out_dtype=jnp.float32, tm=None, tn=None, tk=None):
    """Tiled (x @ w + b); bf16 MXU operands (cast in-kernel), f32 accumulation."""
    tm = _TM if tm is None else tm
    tn = _TN if tn is None else tn
    tk = _TK if tk is None else tk
    M, K = x.shape
    N = w.shape[1]
    bm = M if M <= tm else tm
    bk = K if K <= tk else tk
    bn = N if N <= tn else tn
    Mp, Kp, Np = _round_up(M, bm), _round_up(K, bk), _round_up(N, bn)
    xp = _pad2(x, Mp, Kp)
    wp = _pad2(w, Kp, Np)
    gm, gn, gk = Mp // bm, Np // bn, Kp // bk
    has_bias = b is not None
    if has_bias:
        bpad = _pad2(b.reshape(1, N).astype(jnp.float32), 1, Np)

    if gk == 1:
        # fast path: no accumulator scratch, no pl.when phases, optional bias
        if has_bias:
            def kernel(x_ref, w_ref, b_ref, o_ref):
                acc = jnp.dot(x_ref[...].astype(jnp.bfloat16),
                              w_ref[...].astype(jnp.bfloat16),
                              preferred_element_type=jnp.float32)
                o_ref[...] = (acc + b_ref[...]).astype(o_ref.dtype)
        else:
            def kernel(x_ref, w_ref, o_ref):
                o_ref[...] = jnp.dot(x_ref[...].astype(jnp.bfloat16),
                                     w_ref[...].astype(jnp.bfloat16),
                                     preferred_element_type=jnp.float32
                                     ).astype(o_ref.dtype)

        in_specs = [pl.BlockSpec((bm, bk), lambda i, j: (i, 0)),
                    pl.BlockSpec((bk, bn), lambda i, j: (0, j))]
        args = [xp, wp]
        if has_bias:
            in_specs.append(pl.BlockSpec((1, bn), lambda i, j: (0, j)))
            args.append(bpad)
        out = pl.pallas_call(
            kernel, grid=(gm, gn),
            in_specs=in_specs,
            out_specs=pl.BlockSpec((bm, bn), lambda i, j: (i, j)),
            out_shape=jax.ShapeDtypeStruct((Mp, Np), out_dtype),
            compiler_params=_cparams(("parallel", "parallel")),
        )(*args)
    else:
        if has_bias:
            def kernel(x_ref, w_ref, b_ref, o_ref, acc_ref):
                @pl.when(pl.program_id(2) == 0)
                def _():
                    acc_ref[...] = jnp.zeros_like(acc_ref)

                acc_ref[...] += jnp.dot(x_ref[...].astype(jnp.bfloat16),
                                        w_ref[...].astype(jnp.bfloat16),
                                        preferred_element_type=jnp.float32)

                @pl.when(pl.program_id(2) == gk - 1)
                def _():
                    o_ref[...] = (acc_ref[...] + b_ref[...]).astype(o_ref.dtype)
        else:
            def kernel(x_ref, w_ref, o_ref, acc_ref):
                @pl.when(pl.program_id(2) == 0)
                def _():
                    acc_ref[...] = jnp.zeros_like(acc_ref)

                acc_ref[...] += jnp.dot(x_ref[...].astype(jnp.bfloat16),
                                        w_ref[...].astype(jnp.bfloat16),
                                        preferred_element_type=jnp.float32)

                @pl.when(pl.program_id(2) == gk - 1)
                def _():
                    o_ref[...] = acc_ref[...].astype(o_ref.dtype)

        in_specs = [pl.BlockSpec((bm, bk), lambda i, j, k: (i, k)),
                    pl.BlockSpec((bk, bn), lambda i, j, k: (k, j))]
        args = [xp, wp]
        if has_bias:
            in_specs.append(pl.BlockSpec((1, bn), lambda i, j, k: (0, j)))
            args.append(bpad)
        out = pl.pallas_call(
            kernel, grid=(gm, gn, gk),
            in_specs=in_specs,
            out_specs=pl.BlockSpec((bm, bn), lambda i, j, k: (i, j)),
            out_shape=jax.ShapeDtypeStruct((Mp, Np), out_dtype),
            scratch_shapes=[pltpu.VMEM((bm, bn), jnp.float32)],
            compiler_params=_cparams(("parallel", "parallel", "arbitrary")),
        )(*args)

    if (Mp, Np) != (M, N):
        out = out[:M, :N]
    return out


def proj_add_ln_pallas(y, resid, w, b, gamma, beta, *, eps=1e-5, row_tile=256):
    """Fused: LayerNorm((y @ w + b) + resid).  y: (M, K) bf16, resid: (M, D) f32."""
    M, K = y.shape
    D = w.shape[1]
    bm = M if M <= row_tile else row_tile
    Mp = _round_up(M, bm)
    yp = _pad2(y, Mp, K)
    rp = _pad2(resid, Mp, D)
    gm = Mp // bm

    def kernel(y_ref, r_ref, w_ref, b_ref, g_ref, be_ref, o_ref):
        h = jnp.dot(y_ref[...].astype(jnp.bfloat16),
                    w_ref[...].astype(jnp.bfloat16),
                    preferred_element_type=jnp.float32)
        h = h + b_ref[...] + r_ref[...].astype(jnp.float32)
        mu = jnp.mean(h, axis=-1, keepdims=True)
        var = jnp.mean((h - mu) * (h - mu), axis=-1, keepdims=True)
        o_ref[...] = ((h - mu) * jax.lax.rsqrt(var + eps) * g_ref[...] + be_ref[...]
                      ).astype(o_ref.dtype)

    out = pl.pallas_call(
        kernel, grid=(gm,),
        in_specs=[pl.BlockSpec((bm, K), lambda i: (i, 0)),
                  pl.BlockSpec((bm, D), lambda i: (i, 0)),
                  pl.BlockSpec((K, D), lambda i: (0, 0)),
                  pl.BlockSpec((1, D), lambda i: (0, 0)),
                  pl.BlockSpec((1, D), lambda i: (0, 0)),
                  pl.BlockSpec((1, D), lambda i: (0, 0))],
        out_specs=pl.BlockSpec((bm, D), lambda i: (i, 0)),
        out_shape=jax.ShapeDtypeStruct((Mp, D), jnp.float32),
        compiler_params=_cparams(("parallel",)),
    )(yp, rp, w, b.reshape(1, D), gamma.reshape(1, D), beta.reshape(1, D))
    return out[:M] if Mp != M else out


def ffn_add_ln_pallas(x, w1, b1, w2, b2, gamma, beta, *, eps=1e-5,
                      row_tile=256, p_tile=512):
    """Fused: LayerNorm(relu(x @ w1 + b1) @ w2 + b2 + x), tiled over hidden dim P."""
    M, D = x.shape
    P = w1.shape[1]
    bm = M if M <= row_tile else row_tile
    Mp = _round_up(M, bm)
    xp = _pad2(x, Mp, D)
    bp = P if (P <= p_tile or P % p_tile != 0) else p_tile
    gp = P // bp
    gm = Mp // bm

    def kernel(x_ref, w1_ref, b1_ref, w2_ref, b2_ref, g_ref, be_ref, o_ref, acc_ref):
        j = pl.program_id(1)

        @pl.when(j == 0)
        def _():
            acc_ref[...] = jnp.zeros_like(acc_ref)

        xb = x_ref[...].astype(jnp.bfloat16)
        h = jnp.dot(xb, w1_ref[...].astype(jnp.bfloat16),
                    preferred_element_type=jnp.float32) + b1_ref[...]
        h = jnp.maximum(h, 0.0)
        acc_ref[...] += jnp.dot(h.astype(jnp.bfloat16),
                                w2_ref[...].astype(jnp.bfloat16),
                                preferred_element_type=jnp.float32)

        @pl.when(j == gp - 1)
        def _():
            y = acc_ref[...] + b2_ref[...] + x_ref[...].astype(jnp.float32)
            mu = jnp.mean(y, axis=-1, keepdims=True)
            var = jnp.mean((y - mu) * (y - mu), axis=-1, keepdims=True)
            o_ref[...] = ((y - mu) * jax.lax.rsqrt(var + eps) * g_ref[...] + be_ref[...]
                          ).astype(o_ref.dtype)

    out = pl.pallas_call(
        kernel, grid=(gm, gp),
        in_specs=[pl.BlockSpec((bm, D), lambda i, j: (i, 0)),
                  pl.BlockSpec((D, bp), lambda i, j: (0, j)),
                  pl.BlockSpec((1, bp), lambda i, j: (0, j)),
                  pl.BlockSpec((bp, D), lambda i, j: (j, 0)),
                  pl.BlockSpec((1, D), lambda i, j: (0, 0)),
                  pl.BlockSpec((1, D), lambda i, j: (0, 0)),
                  pl.BlockSpec((1, D), lambda i, j: (0, 0))],
        out_specs=pl.BlockSpec((bm, D), lambda i, j: (i, 0)),
        out_shape=jax.ShapeDtypeStruct((Mp, D), jnp.float32),
        scratch_shapes=[pltpu.VMEM((bm, D), jnp.float32)],
        compiler_params=_cparams(("parallel", "arbitrary")),
    )(xp, w1, b1.reshape(1, P), w2, b2.reshape(1, D),
      gamma.reshape(1, D), beta.reshape(1, D))
    return out[:M] if Mp != M else out


def attention_pallas(q_src, kv_src, key_bias, *, q_index, k_index, v_index,
                     causal, attn_dtype=jnp.bfloat16, out_dtype=jnp.bfloat16):
    """Multi-head attention directly on fused-projection layouts.

    q_src : (B, Tq, Sq, H, dh)  bf16 (q at slot `q_index` of axis 2)
    kv_src: (B, Tk, Sk, H, dh)  bf16 (k/v at slots `k_index`/`v_index`)
    key_bias: (1 or B, 1, Tk) f32 additive per-key bias (0 / -1e9).
    Causal mask (if `causal`) is generated in-kernel from iota.
    Returns: out (B, Tq, H*dh) bf16 (lane-dense, heads folded), probs (B,H,Tq,Tk) bf16.
    """
    B, Tq, _, H, dh = q_src.shape
    Tk = kv_src.shape[1]
    D = H * dh
    scale = 1.0 / math.sqrt(dh)

    tq = 128 if (Tq > 128 and Tq % 128 == 0) else Tq
    nq = Tq // tq

    Bb = key_bias.shape[0]
    bias_map = (lambda b, i: (0, 0, 0)) if Bb == 1 else (lambda b, i: (b, 0, 0))

    def kernel(q_ref, k_ref, v_ref, m_ref, o_ref, a_ref):
        bias = m_ref[0]                                        # (1, Tk) f32
        if causal:
            q_off = pl.program_id(1) * tq
            row = jax.lax.broadcasted_iota(jnp.int32, (tq, Tk), 0) + q_off
            col = jax.lax.broadcasted_iota(jnp.int32, (tq, Tk), 1)
            causal_bias = jnp.where(col > row, -1e9, 0.0)
        for h in range(H):                                     # unrolled over heads
            q_h = q_ref[0, :, 0, h, :]                         # (tq, dh) bf16
            k_h = k_ref[0, :, 0, h, :]                         # (Tk, dh) bf16
            v_h = v_ref[0, :, 0, h, :]                         # (Tk, dh) bf16
            logits = jax.lax.dot_general(
                q_h, k_h, (((1,), (1,)), ((), ())),
                preferred_element_type=jnp.float32) * scale    # (tq, Tk), Tk in lane
            logits = logits + bias
            if causal:
                logits = logits + causal_bias
            logits = logits - jnp.max(logits, axis=-1, keepdims=True)
            p = jnp.exp(logits)
            p = p / jnp.sum(p, axis=-1, keepdims=True)         # exact normalization
            a_ref[0, h] = p.astype(a_ref.dtype)
            out_h = jnp.dot(p.astype(v_h.dtype), v_h,
                            preferred_element_type=jnp.float32)
            o_ref[0, :, h * dh:(h + 1) * dh] = out_h.astype(o_ref.dtype)

    out, attn = pl.pallas_call(
        kernel,
        grid=(B, nq),
        in_specs=[
            pl.BlockSpec((1, tq, 1, H, dh), lambda b, i: (b, i, q_index, 0, 0)),
            pl.BlockSpec((1, Tk, 1, H, dh), lambda b, i: (b, 0, k_index, 0, 0)),
            pl.BlockSpec((1, Tk, 1, H, dh), lambda b, i: (b, 0, v_index, 0, 0)),
            pl.BlockSpec((1, 1, Tk), bias_map),
        ],
        out_specs=[
            pl.BlockSpec((1, tq, D), lambda b, i: (b, i, 0)),
            pl.BlockSpec((1, H, tq, Tk), lambda b, i: (b, 0, i, 0)),
        ],
        out_shape=(jax.ShapeDtypeStruct((B, Tq, D), out_dtype),
                   jax.ShapeDtypeStruct((B, H, Tq, Tk), attn_dtype)),
        compiler_params=_cparams(("parallel", "parallel")),
    )(q_src, kv_src, kv_src, key_bias)
    return out, attn


# ----------------------------- model pieces --------------------------------

def mha_self(x, p, key_bias, num_heads, causal):
    """Self-attention with fused QKV projection; no wrapper-side transposes."""
    B, T, D = x.shape
    dh = D // num_heads
    qkv = linear_pallas(x.reshape(B * T, D), p["wqkv"], p["bqkv"],
                        out_dtype=jnp.bfloat16)
    qkv = qkv.reshape(B, T, 3, num_heads, dh)                  # reshape only (free)
    o, attn = attention_pallas(qkv, qkv, key_bias,
                               q_index=0, k_index=1, v_index=2, causal=causal)
    return o.reshape(B * T, D), attn


def mha_cross(x_q, x_kv, p, key_bias, num_heads):
    """Cross-attention with fused KV projection; no wrapper-side transposes."""
    B, Tq, D = x_q.shape
    Tk = x_kv.shape[1]
    dh = D // num_heads
    q = linear_pallas(x_q.reshape(B * Tq, D), p["wq"], p["bq"],
                      out_dtype=jnp.bfloat16).reshape(B, Tq, 1, num_heads, dh)
    kv = linear_pallas(x_kv.reshape(B * Tk, D), p["wkv"], p["bkv"],
                       out_dtype=jnp.bfloat16).reshape(B, Tk, 2, num_heads, dh)
    o, attn = attention_pallas(q, kv, key_bias,
                               q_index=0, k_index=0, v_index=1, causal=False)
    return o.reshape(B * Tq, D), attn


def encoder_layer(x, p, enc_key_bias, num_heads):
    B, T, D = x.shape
    xf = x.reshape(B * T, D)
    y, attn = mha_self(x, p["mha"], enc_key_bias, num_heads, causal=False)
    out1 = proj_add_ln_pallas(y, xf, p["mha"]["wo"], p["mha"]["bo"],
                              p["ln1_g"], p["ln1_b"])
    out2 = ffn_add_ln_pallas(out1, p["w1"], p["b1"], p["w2"], p["b2"],
                             p["ln2_g"], p["ln2_b"])
    return out2.reshape(B, T, D), attn


def decoder_layer(x, enc_out, p, dec_key_bias, cross_key_bias, num_heads):
    B, T, D = x.shape
    xf = x.reshape(B * T, D)
    y1, a1 = mha_self(x, p["mha1"], dec_key_bias, num_heads, causal=True)
    out1 = proj_add_ln_pallas(y1, xf, p["mha1"]["wo"], p["mha1"]["bo"],
                              p["ln1_g"], p["ln1_b"])
    y2, a2 = mha_cross(out1.reshape(B, T, D), enc_out, p["mha2"], cross_key_bias,
                       num_heads)
    out2 = proj_add_ln_pallas(y2, out1, p["mha2"]["wo"], p["mha2"]["bo"],
                              p["ln2_g"], p["ln2_b"])
    out3 = ffn_add_ln_pallas(out2, p["w1"], p["b1"], p["w2"], p["b2"],
                             p["ln3_g"], p["ln3_b"])
    return out3.reshape(B, T, D), a1, a2


def transformer_forward(params, cfg, enc_inp, dec_inp,
                        enc_padding_mask=None, dec_padding_mask=None):
    B_enc, T_enc = enc_inp.shape
    B_dec, T_dec = dec_inp.shape
    D = cfg["d_model"]
    H = cfg["num_heads"]
    V = cfg["vocab_size"]
    NEG = -1e9

    # Per-key additive biases (tiny); causal mask generated inside the kernel.
    if enc_padding_mask is not None:
        enc_key_bias = enc_padding_mask.reshape(B_enc, 1, T_enc).astype(jnp.float32) * NEG
    else:
        enc_key_bias = jnp.zeros((1, 1, T_enc), jnp.float32)
    if dec_padding_mask is not None:
        dec_key_bias = dec_padding_mask.reshape(B_dec, 1, T_dec).astype(jnp.float32) * NEG
    else:
        dec_key_bias = jnp.zeros((1, 1, T_dec), jnp.float32)
    # TODO(synk): reference Decoder body not provided; cross-attention padding
    # mask is applied over keys only when shapes permit, else no mask.
    if dec_padding_mask is not None and T_enc == T_dec:
        cross_key_bias = dec_key_bias
    else:
        cross_key_bias = jnp.zeros((1, 1, T_enc), jnp.float32)

    # Embeddings (gather glue in plain JAX) + learned positional embedding.
    # TODO(synk): embedding dropout omitted (eval mode).
    enc_x = params["enc_tok_emb"][enc_inp] + params["enc_pos_emb"][None, :T_enc, :]
    dec_x = params["dec_tok_emb"][dec_inp] + params["dec_pos_emb"][None, :T_dec, :]

    attentions = {}
    x = enc_x
    for i, lp in enumerate(params["enc_layers"]):
        x, attn = encoder_layer(x, lp, enc_key_bias, H)
        attentions[f"encoder_layer{i + 1}"] = attn
    enc_out = x

    y = dec_x
    for i, lp in enumerate(params["dec_layers"]):
        y, a1, a2 = decoder_layer(y, enc_out, lp, dec_key_bias, cross_key_bias, H)
        attentions[f"decoder_layer{i + 1}_block1"] = a1
        attentions[f"decoder_layer{i + 1}_block2"] = a2
    dec_out = y

    logits = linear_pallas(dec_out.reshape(B_dec * T_dec, D),
                           params["w_logits"], None,
                           out_dtype=jnp.float32).reshape(B_dec, T_dec, V)
    return logits, attentions


# ----------------------------- parameter init ------------------------------

def _rand_w(key, fan_in, fan_out):
    # Weights stored pre-cast to bf16 (MXU operand dtype) -> no per-call casts.
    return (jax.random.normal(key, (fan_in, fan_out), jnp.float32) * 0.02
            ).astype(jnp.bfloat16)


def _init_mha_self(key, d_model):
    kq, kk, kv, ko = jax.random.split(key, 4)
    wqkv = jnp.concatenate([_rand_w(kq, d_model, d_model),
                            _rand_w(kk, d_model, d_model),
                            _rand_w(kv, d_model, d_model)], axis=1)
    return {"wqkv": wqkv, "bqkv": jnp.zeros((3 * d_model,), jnp.float32),
            "wo": _rand_w(ko, d_model, d_model),
            "bo": jnp.zeros((d_model,), jnp.float32)}


def _init_mha_cross(key, d_model):
    kq, kk, kv, ko = jax.random.split(key, 4)
    wkv = jnp.concatenate([_rand_w(kk, d_model, d_model),
                           _rand_w(kv, d_model, d_model)], axis=1)
    return {"wq": _rand_w(kq, d_model, d_model),
            "bq": jnp.zeros((d_model,), jnp.float32),
            "wkv": wkv, "bkv": jnp.zeros((2 * d_model,), jnp.float32),
            "wo": _rand_w(ko, d_model, d_model),
            "bo": jnp.zeros((d_model,), jnp.float32)}


def _init_enc_layer(key, d_model, proj_size):
    k1, k2, k3 = jax.random.split(key, 3)
    return {
        "mha": _init_mha_self(k1, d_model),
        "ln1_g": jnp.ones((d_model,), jnp.float32), "ln1_b": jnp.zeros((d_model,), jnp.float32),
        "ln2_g": jnp.ones((d_model,), jnp.float32), "ln2_b": jnp.zeros((d_model,), jnp.float32),
        "w1": _rand_w(k2, d_model, proj_size), "b1": jnp.zeros((proj_size,), jnp.float32),
        "w2": _rand_w(k3, proj_size, d_model), "b2": jnp.zeros((d_model,), jnp.float32),
    }


def _init_dec_layer(key, d_model, proj_size):
    k1, k2, k3, k4 = jax.random.split(key, 4)
    return {
        "mha1": _init_mha_self(k1, d_model),
        "mha2": _init_mha_cross(k2, d_model),
        "ln1_g": jnp.ones((d_model,), jnp.float32), "ln1_b": jnp.zeros((d_model,), jnp.float32),
        "ln2_g": jnp.ones((d_model,), jnp.float32), "ln2_b": jnp.zeros((d_model,), jnp.float32),
        "ln3_g": jnp.ones((d_model,), jnp.float32), "ln3_b": jnp.zeros((d_model,), jnp.float32),
        "w1": _rand_w(k3, d_model, proj_size), "b1": jnp.zeros((proj_size,), jnp.float32),
        "w2": _rand_w(k4, proj_size, d_model), "b2": jnp.zeros((d_model,), jnp.float32),
    }


def init_params(key, cfg):
    V, D, P, L, BS = (cfg["vocab_size"], cfg["d_model"], cfg["proj_size"],
                      cfg["n_layers"], cfg["block_size"])
    keys = jax.random.split(key, 2 * L + 5)
    return {
        "enc_tok_emb": jax.random.normal(keys[0], (V, D), jnp.float32) * 0.02,
        "dec_tok_emb": jax.random.normal(keys[1], (V, D), jnp.float32) * 0.02,
        "enc_pos_emb": jax.random.normal(keys[2], (BS, D), jnp.float32) * 0.02,
        "dec_pos_emb": jax.random.normal(keys[3], (BS, D), jnp.float32) * 0.02,
        "w_logits": _rand_w(keys[4], D, V),
        "enc_layers": [_init_enc_layer(keys[5 + i], D, P) for i in range(L)],
        "dec_layers": [_init_dec_layer(keys[5 + L + i], D, P) for i in range(L)],
    }


# --------------------------------- main -------------------------------------

if __name__ == "__main__":
    cfg = dict(vocab_size=64, n_embd=32, block_size=16, proj_size=64,
               d_model=32, num_heads=4, n_layers=2)

    key = jax.random.PRNGKey(0)
    kp, ke, kd = jax.random.split(key, 3)
    params = init_params(kp, cfg)

    B, T_enc, T_dec = 2, 8, 8
    enc_inp = jax.random.randint(ke, (B, T_enc), 0, cfg["vocab_size"], dtype=jnp.int32)
    dec_inp = jax.random.randint(kd, (B, T_dec), 0, cfg["vocab_size"], dtype=jnp.int32)

    fwd = jax.jit(lambda p, e, d: transformer_forward(p, cfg, e, d))
    logits, attentions = fwd(params, enc_inp, dec_inp)
    logits = jax.block_until_ready(logits)
    for v in attentions.values():
        jax.block_until_ready(v)

    assert logits.shape == (B, T_dec, cfg["vocab_size"])
    assert bool(jnp.all(jnp.isfinite(logits)))
    print("KERNEL_OK")
</pallas_src>

<mosaic_0001>
module attributes {stable_mosaic.version = 11 : i64} {
  func.func @kernel(%arg0: i32, %arg1: i32, %arg2: memref<16x32xf32, #tpu.memory_space<vmem>>, %arg3: memref<32x96xbf16, #tpu.memory_space<vmem>>, %arg4: memref<1x96xf32, #tpu.memory_space<vmem>>, %arg5: memref<16x96xbf16, #tpu.memory_space<vmem>>) attributes {dimension_semantics = [#tpu.dimension_semantics<parallel>, #tpu.dimension_semantics<parallel>], iteration_bounds = array<i64: 1, 1>, scalar_prefetch = 0 : i64, scratch_operands = 0 : i64, tpu.core_type = #tpu.core_type<tc>, window_params = [{transform_indices = @transform_0, window_bounds = array<i64: 16, 32>}, {transform_indices = @transform_1, window_bounds = array<i64: 32, 96>}, {transform_indices = @transform_2, window_bounds = array<i64: 1, 96>}, {transform_indices = @transform_3, window_bounds = array<i64: 16, 96>}]} {
    %c0 = arith.constant 0 : index
    %c0_0 = arith.constant 0 : index
    %0 = vector.load %arg2[%c0, %c0_0] : memref<16x32xf32, #tpu.memory_space<vmem>>, vector<16x32xf32>
    %1 = arith.truncf %0 : vector<16x32xf32> to vector<16x32xbf16>
    %c0_1 = arith.constant 0 : index
    %c0_2 = arith.constant 0 : index
    %2 = vector.load %arg3[%c0_1, %c0_2] : memref<32x96xbf16, #tpu.memory_space<vmem>>, vector<32x96xbf16>
    %cst = arith.constant dense<0.000000e+00> : vector<16x96xf32>
    %3 = tpu.matmul %1, %2, %cst {dimension_numbers = #tpu.dot_dimension_numbers<[1], [0], [0], [1], [0, 0, 1, 1], [], []>} : vector<16x32xbf16>, vector<32x96xbf16>, vector<16x96xf32> -> vector<16x96xf32>
    %c0_3 = arith.constant 0 : index
    %c0_4 = arith.constant 0 : index
    %4 = vector.load %arg4[%c0_3, %c0_4] : memref<1x96xf32, #tpu.memory_space<vmem>>, vector<1x96xf32>
    %5 = vector.broadcast %4 : vector<1x96xf32> to vector<16x96xf32>
    %6 = arith.addf %3, %5 : vector<16x96xf32>
    %7 = arith.truncf %6 : vector<16x96xf32> to vector<16x96xbf16>
    %c0_5 = arith.constant 0 : index
    %c0_6 = arith.constant 0 : index
    %8 = vector.load %arg5[%c0_5, %c0_6] : memref<16x96xbf16, #tpu.memory_space<vmem>>, vector<16x96xbf16>
    tpu.vector_store %arg5[%c0_5, %c0_6], %7 {strides = array<i32>} : memref<16x96xbf16, #tpu.memory_space<vmem>>, vector<16x96xbf16>,
    return
  }
  func.func @transform_0(%arg0: i32, %arg1: i32) -> (i32, i32) {
    %c0_i32 = arith.constant 0 : i32
    %c0_i32_0 = arith.constant 0 : i32
    return %arg0, %c0_i32 : i32, i32
  }
  func.func @transform_1(%arg0: i32, %arg1: i32) -> (i32, i32) {
    %c0_i32 = arith.constant 0 : i32
    %c0_i32_0 = arith.constant 0 : i32
    return %c0_i32, %arg1 : i32, i32
  }
  func.func @transform_2(%arg0: i32, %arg1: i32) -> (i32, i32) {
    %c0_i32 = arith.constant 0 : i32
    %c0_i32_0 = arith.constant 0 : i32
    return %c0_i32, %arg1 : i32, i32
  }
  func.func @transform_3(%arg0: i32, %arg1: i32) -> (i32, i32) {
    %c0_i32 = arith.constant 0 : i32
    return %arg0, %arg1 : i32, i32
  }
}

module attributes {stable_mosaic.version = 11 : i64} {
  func.func @kernel(%arg0: i32, %arg1: memref<16x32xbf16, #tpu.memory_space<vmem>>, %arg2: memref<16x32xf32, #tpu.memory_space<vmem>>, %arg3: memref<32x32xbf16, #tpu.memory_space<vmem>>, %arg4: memref<1x32xf32, #tpu.memory_space<vmem>>, %arg5: memref<1x32xf32, #tpu.memory_space<vmem>>, %arg6: memref<1x32xf32, #tpu.memory_space<vmem>>, %arg7: memref<16x32xf32, #tpu.memory_space<vmem>>) attributes {dimension_semantics = [#tpu.dimension_semantics<parallel>], iteration_bounds = array<i64: 1>, scalar_prefetch = 0 : i64, scratch_operands = 0 : i64, tpu.core_type = #tpu.core_type<tc>, window_params = [{transform_indices = @transform_0, window_bounds = array<i64: 16, 32>}, {transform_indices = @transform_1, window_bounds = array<i64: 16, 32>}, {pipeline_mode = #tpu.pipeline_mode<synchronous>, transform_indices = @transform_2, window_bounds = array<i64: 32, 32>}, {pipeline_mode = #tpu.pipeline_mode<synchronous>, transform_indices = @transform_3, window_bounds = array<i64: 1, 32>}, {pipeline_mode = #tpu.pipeline_mode<synchronous>, transform_indices = @transform_4, window_bounds = array<i64: 1, 32>}, {pipeline_mode = #tpu.pipeline_mode<synchronous>, transform_indices = @transform_5, window_bounds = array<i64: 1, 32>}, {transform_indices = @transform_6, window_bounds = array<i64: 16, 32>}]} {
    %c0 = arith.constant 0 : index
    %c0_0 = arith.constant 0 : index
    %0 = vector.load %arg1[%c0, %c0_0] : memref<16x32xbf16, #tpu.memory_space<vmem>>, vector<16x32xbf16>
    %c0_1 = arith.constant 0 : index
    %c0_2 = arith.constant 0 : index
    %1 = vector.load %arg3[%c0_1, %c0_2] : memref<32x32xbf16, #tpu.memory_space<vmem>>, vector<32x32xbf16>
    %cst = arith.constant dense<0.000000e+00> : vector<16x32xf32>
    %2 = tpu.matmul %0, %1, %cst {dimension_numbers = #tpu.dot_dimension_numbers<[1], [0], [0], [1], [0, 0, 1, 1], [], []>} : vector<16x32xbf16>, vector<32x32xbf16>, vector<16x32xf32> -> vector<16x32xf32>
    %c0_3 = arith.constant 0 : index
    %c0_4 = arith.constant 0 : index
    %3 = vector.load %arg4[%c0_3, %c0_4] : memref<1x32xf32, #tpu.memory_space<vmem>>, vector<1x32xf32>
    %4 = vector.broadcast %3 : vector<1x32xf32> to vector<16x32xf32>
    %5 = arith.addf %2, %4 : vector<16x32xf32>
    %c0_5 = arith.constant 0 : index
    %c0_6 = arith.constant 0 : index
    %6 = vector.load %arg2[%c0_5, %c0_6] : memref<16x32xf32, #tpu.memory_space<vmem>>, vector<16x32xf32>
    %7 = arith.addf %5, %6 : vector<16x32xf32>
    %cst_7 = arith.constant dense<0.000000e+00> : vector<16xf32>
    %8 = vector.multi_reduction <add>, %7, %cst_7 [1] : vector<16x32xf32> to vector<16xf32>
    %9 = vector.shape_cast %8 : vector<16xf32> to vector<16x1xf32>
    %cst_8 = arith.constant 3.200000e+01 : f32
    %10 = vector.broadcast %cst_8 : f32 to vector<16x1xf32>
    %11 = arith.divf %9, %10 : vector<16x1xf32>
    %12 = vector.broadcast %11 : vector<16x1xf32> to vector<16x32xf32>
    %13 = arith.subf %7, %12 : vector<16x32xf32>
    %14 = vector.broadcast %11 : vector<16x1xf32> to vector<16x32xf32>
    %15 = arith.subf %7, %14 : vector<16x32xf32>
    %16 = arith.mulf %13, %15 : vector<16x32xf32>
    %cst_9 = arith.constant dense<0.000000e+00> : vector<16xf32>
    %17 = vector.multi_reduction <add>, %16, %cst_9 [1] : vector<16x32xf32> to vector<16xf32>
    %18 = vector.shape_cast %17 : vector<16xf32> to vector<16x1xf32>
    %cst_10 = arith.constant 3.200000e+01 : f32
    %19 = vector.broadcast %cst_10 : f32 to vector<16x1xf32>
    %20 = arith.divf %18, %19 : vector<16x1xf32>
    %21 = vector.broadcast %11 : vector<16x1xf32> to vector<16x32xf32>
    %22 = arith.subf %7, %21 : vector<16x32xf32>
    %cst_11 = arith.constant 9.99999974E-6 : f32
    %23 = vector.broadcast %cst_11 : f32 to vector<16x1xf32>
    %24 = arith.addf %20, %23 : vector<16x1xf32>
    %25 = math.rsqrt %24 : vector<16x1xf32>
    %26 = vector.broadcast %25 : vector<16x1xf32> to vector<16x32xf32>
    %27 = arith.mulf %22, %26 : vector<16x32xf32>
    %c0_12 = arith.constant 0 : index
    %c0_13 = arith.constant 0 : index
    %28 = vector.load %arg5[%c0_12, %c0_13] : memref<1x32xf32, #tpu.memory_space<vmem>>, vector<1x32xf32>
    %29 = vector.broadcast %28 : vector<1x32xf32> to vector<16x32xf32>
    %30 = arith.mulf %27, %29 : vector<16x32xf32>
    %c0_14 = arith.constant 0 : index
    %c0_15 = arith.constant 0 : index
    %31 = vector.load %arg6[%c0_14, %c0_15] : memref<1x32xf32, #tpu.memory_space<vmem>>, vector<1x32xf32>
    %32 = vector.broadcast %31 : vector<1x32xf32> to vector<16x32xf32>
    %33 = arith.addf %30, %32 : vector<16x32xf32>
    %c0_16 = arith.constant 0 : index
    %c0_17 = arith.constant 0 : index
    %34 = vector.load %arg7[%c0_16, %c0_17] : memref<16x32xf32, #tpu.memory_space<vmem>>, vector<16x32xf32>
    tpu.vector_store %arg7[%c0_16, %c0_17], %33 {strides = array<i32>} : memref<16x32xf32, #tpu.memory_space<vmem>>, vector<16x32xf32>,
    return
  }
  func.func @transform_0(%arg0: i32) -> (i32, i32) {
    %c0_i32 = arith.constant 0 : i32
    %c0_i32_0 = arith.constant 0 : i32
    return %arg0, %c0_i32 : i32, i32
  }
  func.func @transform_1(%arg0: i32) -> (i32, i32) {
    %c0_i32 = arith.constant 0 : i32
    %c0_i32_0 = arith.constant 0 : i32
    return %arg0, %c0_i32 : i32, i32
  }
  func.func @transform_2(%arg0: i32) -> (i32, i32) {
    %c0_i32 = arith.constant 0 : i32
    %c0_i32_0 = arith.constant 0 : i32
    %c0_i32_1 = arith.constant 0 : i32
    return %c0_i32, %c0_i32_0 : i32, i32
  }
  func.func @transform_3(%arg0: i32) -> (i32, i32) {
    %c0_i32 = arith.constant 0 : i32
    %c0_i32_0 = arith.constant 0 : i32
    %c0_i32_1 = arith.constant 0 : i32
    return %c0_i32, %c0_i32_0 : i32, i32
  }
  func.func @transform_4(%arg0: i32) -> (i32, i32) {
    %c0_i32 = arith.constant 0 : i32
    %c0_i32_0 = arith.constant 0 : i32
    %c0_i32_1 = arith.constant 0 : i32
    return %c0_i32, %c0_i32_0 : i32, i32
  }
  func.func @transform_5(%arg0: i32) -> (i32, i32) {
    %c0_i32 = arith.constant 0 : i32
    %c0_i32_0 = arith.constant 0 : i32
    %c0_i32_1 = arith.constant 0 : i32
    return %c0_i32, %c0_i32_0 : i32, i32
  }
  func.func @transform_6(%arg0: i32) -> (i32, i32) {
    %c0_i32 = arith.constant 0 : i32
    %c0_i32_0 = arith.constant 0 : i32
    return %arg0, %c0_i32 : i32, i32
  }
}

module attributes {stable_mosaic.version = 11 : i64} {
  func.func @kernel(%arg0: i32, %arg1: i32, %arg2: memref<1x8x1x4x8xbf16, #tpu.memory_space<vmem>>, %arg3: memref<1x8x1x4x8xbf16, #tpu.memory_space<vmem>>, %arg4: memref<1x8x1x4x8xbf16, #tpu.memory_space<vmem>>, %arg5: memref<1x1x8xf32, #tpu.memory_space<vmem>>, %arg6: memref<1x8x32xbf16, #tpu.memory_space<vmem>>, %arg7: memref<1x4x8x8xbf16, #tpu.memory_space<vmem>>) attributes {dimension_semantics = [#tpu.dimension_semantics<parallel>, #tpu.dimension_semantics<parallel>], iteration_bounds = array<i64: 2, 1>, scalar_prefetch = 0 : i64, scratch_operands = 0 : i64, tpu.core_type = #tpu.core_type<tc>, window_params = [{transform_indices = @transform_0, window_bounds = array<i64: 1, 8, 1, 4, 8>}, {transform_indices = @transform_1, window_bounds = array<i64: 1, 8, 1, 4, 8>}, {transform_indices = @transform_2, window_bounds = array<i64: 1, 8, 1, 4, 8>}, {pipeline_mode = #tpu.pipeline_mode<synchronous>, transform_indices = @transform_3, window_bounds = array<i64: 1, 1, 8>}, {transform_indices = @transform_4, window_bounds = array<i64: 1, 8, 32>}, {transform_indices = @transform_5, window_bounds = array<i64: 1, 4, 8, 8>}]} {
    %c0 = arith.constant 0 : index
    %c0_0 = arith.constant 0 : index
    %c0_1 = arith.constant 0 : index
    %0 = vector.load %arg5[%c0, %c0_0, %c0_1] : memref<1x1x8xf32, #tpu.memory_space<vmem>>, vector<1x1x8xf32>
    %1 = vector.shape_cast %0 : vector<1x1x8xf32> to vector<1x8xf32>
    %c0_2 = arith.constant 0 : index
    %c0_3 = arith.constant 0 : index
    %c0_4 = arith.constant 0 : index
    %c0_5 = arith.constant 0 : index
    %c0_6 = arith.constant 0 : index
    %2 = vector.load %arg2[%c0_2, %c0_3, %c0_4, %c0_5, %c0_6] : memref<1x8x1x4x8xbf16, #tpu.memory_space<vmem>>, vector<1x8x1x1x8xbf16>
    %3 = vector.shape_cast %2 : vector<1x8x1x1x8xbf16> to vector<8x8xbf16>
    %c0_7 = arith.constant 0 : index
    %c0_8 = arith.constant 0 : index
    %c0_9 = arith.constant 0 : index
    %c0_10 = arith.constant 0 : index
    %c0_11 = arith.constant 0 : index
    %4 = vector.load %arg3[%c0_7, %c0_8, %c0_9, %c0_10, %c0_11] : memref<1x8x1x4x8xbf16, #tpu.memory_space<vmem>>, vector<1x8x1x1x8xbf16>
    %5 = vector.shape_cast %4 : vector<1x8x1x1x8xbf16> to vector<8x8xbf16>
    %c0_12 = arith.constant 0 : index
    %c0_13 = arith.constant 0 : index
    %c0_14 = arith.constant 0 : index
    %c0_15 = arith.constant 0 : index
    %c0_16 = arith.constant 0 : index
    %6 = vector.load %arg4[%c0_12, %c0_13, %c0_14, %c0_15, %c0_16] : memref<1x8x1x4x8xbf16, #tpu.memory_space<vmem>>, vector<1x8x1x1x8xbf16>
    %7 = vector.shape_cast %6 : vector<1x8x1x1x8xbf16> to vector<8x8xbf16>
    %cst = arith.constant dense<0.000000e+00> : vector<8x8xf32>
    %8 = tpu.matmul %3, %5, %cst {dimension_numbers = #tpu.dot_dimension_numbers<[1], [1], [0], [0], [0, 0, 1, 0], [], []>} : vector<8x8xbf16>, vector<8x8xbf16>, vector<8x8xf32> -> vector<8x8xf32>
    %cst_17 = arith.constant 0.353553385 : f32
    %9 = vector.broadcast %cst_17 : f32 to vector<8x8xf32>
    %10 = arith.mulf %8, %9 : vector<8x8xf32>
    %11 = vector.broadcast %1 : vector<1x8xf32> to vector<8x8xf32>
    %12 = arith.addf %10, %11 : vector<8x8xf32>
    %cst_18 = arith.constant dense<0xFF800000> : vector<8xf32>
    %13 = vector.multi_reduction <maximumf>, %12, %cst_18 [1] : vector<8x8xf32> to vector<8xf32>
    %14 = vector.shape_cast %13 : vector<8xf32> to vector<8x1xf32>
    %15 = vector.broadcast %14 : vector<8x1xf32> to vector<8x8xf32>
    %16 = arith.subf %12, %15 : vector<8x8xf32>
    %17 = math.exp %16 : vector<8x8xf32>
    %cst_19 = arith.constant dense<0.000000e+00> : vector<8xf32>
    %18 = vector.multi_reduction <add>, %17, %cst_19 [1] : vector<8x8xf32> to vector<8xf32>
    %19 = vector.shape_cast %18 : vector<8xf32> to vector<8x1xf32>
    %20 = vector.broadcast %19 : vector<8x1xf32> to vector<8x8xf32>
    %21 = arith.divf %17, %20 : vector<8x8xf32>
    %22 = arith.truncf %21 : vector<8x8xf32> to vector<8x8xbf16>
    %c0_20 = arith.constant 0 : index
    %c0_21 = arith.constant 0 : index
    %c0_22 = arith.constant 0 : index
    %c0_23 = arith.constant 0 : index
    %23 = vector.load %arg7[%c0_20, %c0_21, %c0_22, %c0_23] : memref<1x4x8x8xbf16, #tpu.memory_space<vmem>>, vector<1x1x8x8xbf16>
    %24 = vector.shape_cast %23 : vector<1x1x8x8xbf16> to vector<8x8xbf16>
    %25 = vector.shape_cast %22 : vector<8x8xbf16> to vector<1x1x8x8xbf16>
    tpu.vector_store %arg7[%c0_20, %c0_21, %c0_22, %c0_23], %25 {strides = array<i32>} : memref<1x4x8x8xbf16, #tpu.memory_space<vmem>>, vector<1x1x8x8xbf16>,
    %26 = arith.truncf %21 : vector<8x8xf32> to vector<8x8xbf16>
    %cst_24 = arith.constant dense<0.000000e+00> : vector<8x8xf32>
    %27 = tpu.matmul %26, %7, %cst_24 {dimension_numbers = #tpu.dot_dimension_numbers<[1], [0], [0], [1], [0, 0, 1, 1], [], []>} : vector<8x8xbf16>, vector<8x8xbf16>, vector<8x8xf32> -> vector<8x8xf32>
    %28 = arith.truncf %27 : vector<8x8xf32> to vector<8x8xbf16>
    %c0_25 = arith.constant 0 : index
    %c0_26 = arith.constant 0 : index
    %c0_27 = arith.constant 0 : index
    %29 = vector.load %arg6[%c0_25, %c0_26, %c0_27] : memref<1x8x32xbf16, #tpu.memory_space<vmem>>, vector<1x8x8xbf16>
    %30 = vector.shape_cast %29 : vector<1x8x8xbf16> to vector<8x8xbf16>
    %31 = vector.shape_cast %28 : vector<8x8xbf16> to vector<1x8x8xbf16>
    tpu.vector_store %arg6[%c0_25, %c0_26, %c0_27], %31 {strides = array<i32>} : memref<1x8x32xbf16, #tpu.memory_space<vmem>>, vector<1x8x8xbf16>,
    %c0_28 = arith.constant 0 : index
    %c0_29 = arith.constant 0 : index
    %c0_30 = arith.constant 0 : index
    %c1 = arith.constant 1 : index
    %c0_31 = arith.constant 0 : index
    %32 = vector.load %arg2[%c0_28, %c0_29, %c0_30, %c1, %c0_31] : memref<1x8x1x4x8xbf16, #tpu.memory_space<vmem>>, vector<1x8x1x1x8xbf16>
    %33 = vector.shape_cast %32 : vector<1x8x1x1x8xbf16> to vector<8x8xbf16>
    %c0_32 = arith.constant 0 : index
    %c0_33 = arith.constant 0 : index
    %c0_34 = arith.constant 0 : index
    %c1_35 = arith.constant 1 : index
    %c0_36 = arith.constant 0 : index
    %34 = vector.load %arg3[%c0_32, %c0_33, %c0_34, %c1_35, %c0_36] : memref<1x8x1x4x8xbf16, #tpu.memory_space<vmem>>, vector<1x8x1x1x8xbf16>
    %35 = vector.shape_cast %34 : vector<1x8x1x1x8xbf16> to vector<8x8xbf16>
    %c0_37 = arith.constant 0 : index
    %c0_38 = arith.constant 0 : index
    %c0_39 = arith.constant 0 : index
    %c1_40 = arith.constant 1 : index
    %c0_41 = arith.constant 0 : index
    %36 = vector.load %arg4[%c0_37, %c0_38, %c0_39, %c1_40, %c0_41] : memref<1x8x1x4x8xbf16, #tpu.memory_space<vmem>>, vector<1x8x1x1x8xbf16>
    %37 = vector.shape_cast %36 : vector<1x8x1x1x8xbf16> to vector<8x8xbf16>
    %cst_42 = arith.constant dense<0.000000e+00> : vector<8x8xf32>
    %38 = tpu.matmul %33, %35, %cst_42 {dimension_numbers = #tpu.dot_dimension_numbers<[1], [1], [0], [0], [0, 0, 1, 0], [], []>} : vector<8x8xbf16>, vector<8x8xbf16>, vector<8x8xf32> -> vector<8x8xf32>
    %cst_43 = arith.constant 0.353553385 : f32
    %39 = vector.broadcast %cst_43 : f32 to vector<8x8xf32>
    %40 = arith.mulf %38, %39 : vector<8x8xf32>
    %41 = vector.broadcast %1 : vector<1x8xf32> to vector<8x8xf32>
    %42 = arith.addf %40, %41 : vector<8x8xf32>
    %cst_44 = arith.constant dense<0xFF800000> : vector<8xf32>
    %43 = vector.multi_reduction <maximumf>, %42, %cst_44 [1] : vector<8x8xf32> to vector<8xf32>
    %44 = vector.shape_cast %43 : vector<8xf32> to vector<8x1xf32>
    %45 = vector.broadcast %44 : vector<8x1xf32> to vector<8x8xf32>
    %46 = arith.subf %42, %45 : vector<8x8xf32>
    %47 = math.exp %46 : vector<8x8xf32>
    %cst_45 = arith.constant dense<0.000000e+00> : vector<8xf32>
    %48 = vector.multi_reduction <add>, %47, %cst_45 [1] : vector<8x8xf32> to vector<8xf32>
    %49 = vector.shape_cast %48 : vector<8xf32> to vector<8x1xf32>
    %50 = vector.broadcast %49 : vector<8x1xf32> to vector<8x8xf32>
    %51 = arith.divf %47, %50 : vector<8x8xf32>
    %52 = arith.truncf %51 : vector<8x8xf32> to vector<8x8xbf16>
    %c0_46 = arith.constant 0 : index
    %c1_47 = arith.constant 1 : index
    %c0_48 = arith.constant 0 : index
    %c0_49 = arith.constant 0 : index
    %53 = vector.load %arg7[%c0_46, %c1_47, %c0_48, %c0_49] : memref<1x4x8x8xbf16, #tpu.memory_space<vmem>>, vector<1x1x8x8xbf16>
    %54 = vector.shape_cast %53 : vector<1x1x8x8xbf16> to vector<8x8xbf16>
    %55 = vector.shape_cast %52 : vector<8x8xbf16> to vector<1x1x8x8xbf16>
    tpu.vector_store %arg7[%c0_46, %c1_47, %c0_48, %c0_49], %55 {strides = array<i32>} : memref<1x4x8x8xbf16, #tpu.memory_space<vmem>>, vector<1x1x8x8xbf16>,
    %56 = arith.truncf %51 : vector<8x8xf32> to vector<8x8xbf16>
    %cst_50 = arith.constant dense<0.000000e+00> : vector<8x8xf32>
    %57 = tpu.matmul %56, %37, %cst_50 {dimension_numbers = #tpu.dot_dimension_numbers<[1], [0], [0], [1], [0, 0, 1, 1], [], []>} : vector<8x8xbf16>, vector<8x8xbf16>, vector<8x8xf32> -> vector<8x8xf32>
    %58 = arith.truncf %57 : vector<8x8xf32> to vector<8x8xbf16>
    %c0_51 = arith.constant 0 : index
    %c0_52 = arith.constant 0 : index
    %c8 = arith.constant 8 : index
    %59 = vector.load %arg6[%c0_51, %c0_52, %c8] : memref<1x8x32xbf16, #tpu.memory_space<vmem>>, vector<1x8x8xbf16>
    %60 = vector.shape_cast %59 : vector<1x8x8xbf16> to vector<8x8xbf16>
    %61 = vector.shape_cast %58 : vector<8x8xbf16> to vector<1x8x8xbf16>
    tpu.vector_store %arg6[%c0_51, %c0_52, %c8], %61 {strides = array<i32>} : memref<1x8x32xbf16, #tpu.memory_space<vmem>>, vector<1x8x8xbf16>,
    %c0_53 = arith.constant 0 : index
    %c0_54 = arith.constant 0 : index
    %c0_55 = arith.constant 0 : index
    %c2 = arith.constant 2 : index
    %c0_56 = arith.constant 0 : index
    %62 = vector.load %arg2[%c0_53, %c0_54, %c0_55, %c2, %c0_56] : memref<1x8x1x4x8xbf16, #tpu.memory_space<vmem>>, vector<1x8x1x1x8xbf16>
    %63 = vector.shape_cast %62 : vector<1x8x1x1x8xbf16> to vector<8x8xbf16>
    %c0_57 = arith.constant 0 : index
    %c0_58 = arith.constant 0 : index
    %c0_59 = arith.constant 0 : index
    %c2_60 = arith.constant 2 : index
    %c0_61 = arith.constant 0 : index
    %64 = vector.load %arg3[%c0_57, %c0_58, %c0_59, %c2_60, %c0_61] : memref<1x8x1x4x8xbf16, #tpu.memory_space<vmem>>, vector<1x8x1x1x8xbf16>
    %65 = vector.shape_cast %64 : vector<1x8x1x1x8xbf16> to vector<8x8xbf16>
    %c0_62 = arith.constant 0 : index
    %c0_63 = arith.constant 0 : index
    %c0_64 = arith.constant 0 : index
    %c2_65 = arith.constant 2 : index
    %c0_66 = arith.constant 0 : index
    %66 = vector.load %arg4[%c0_62, %c0_63, %c0_64, %c2_65, %c0_66] : memref<1x8x1x4x8xbf16, #tpu.memory_space<vmem>>, vector<1x8x1x1x8xbf16>
    %67 = vector.shape_cast %66 : vector<1x8x1x1x8xbf16> to vector<8x8xbf16>
    %cst_67 = arith.constant dense<0.000000e+00> : vector<8x8xf32>
    %68 = tpu.matmul %63, %65, %cst_67 {dimension_numbers = #tpu.dot_dimension_numbers<[1], [1], [0], [0], [0, 0, 1, 0], [], []>} : vector<8x8xbf16>, vector<8x8xbf16>, vector<8x8xf32> -> vector<8x8xf32>
    %cst_68 = arith.constant 0.353553385 : f32
    %69 = vector.broadcast %cst_68 : f32 to vector<8x8xf32>
    %70 = arith.mulf %68, %69 : vector<8x8xf32>
    %71 = vector.broadcast %1 : vector<1x8xf32> to vector<8x8xf32>
    %72 = arith.addf %70, %71 : vector<8x8xf32>
    %cst_69 = arith.constant dense<0xFF800000> : vector<8xf32>
    %73 = vector.multi_reduction <maximumf>, %72, %cst_69 [1] : vector<8x8xf32> to vector<8xf32>
    %74 = vector.shape_cast %73 : vector<8xf32> to vector<8x1xf32>
    %75 = vector.broadcast %74 : vector<8x1xf32> to vector<8x8xf32>
    %76 = arith.subf %72, %75 : vector<8x8xf32>
    %77 = math.exp %76 : vector<8x8xf32>
    %cst_70 = arith.constant dense<0.000000e+00> : vector<8xf32>
    %78 = vector.multi_reduction <add>, %77, %cst_70 [1] : vector<8x8xf32> to vector<8xf32>
    %79 = vector.shape_cast %78 : vector<8xf32> to vector<8x1xf32>
    %80 = vector.broadcast %79 : vector<8x1xf32> to vector<8x8xf32>
    %81 = arith.divf %77, %80 : vector<8x8xf32>
    %82 = arith.truncf %81 : vector<8x8xf32> to vector<8x8xbf16>
    %c0_71 = arith.constant 0 : index
    %c2_72 = arith.constant 2 : index
    %c0_73 = arith.constant 0 : index
    %c0_74 = arith.constant 0 : index
    %83 = vector.load %arg7[%c0_71, %c2_72, %c0_73, %c0_74] : memref<1x4x8x8xbf16, #tpu.memory_space<vmem>>, vector<1x1x8x8xbf16>
    %84 = vector.shape_cast %83 : vector<1x1x8x8xbf16> to vector<8x8xbf16>
    %85 = vector.shape_cast %82 : vector<8x8xbf16> to vector<1x1x8x8xbf16>
    tpu.vector_store %arg7[%c0_71, %c2_72, %c0_73, %c0_74], %85 {strides = array<i32>} : memref<1x4x8x8xbf16, #tpu.memory_space<vmem>>, vector<1x1x8x8xbf16>,
    %86 = arith.truncf %81 : vector<8x8xf32> to vector<8x8xbf16>
    %cst_75 = arith.constant dense<0.000000e+00> : vector<8x8xf32>
    %87 = tpu.matmul %86, %67, %cst_75 {dimension_numbers = #tpu.dot_dimension_numbers<[1], [0], [0], [1], [0, 0, 1, 1], [], []>} : vector<8x8xbf16>, vector<8x8xbf16>, vector<8x8xf32> -> vector<8x8xf32>
    %88 = arith.truncf %87 : vector<8x8xf32> to vector<8x8xbf16>
    %c0_76 = arith.constant 0 : index
    %c0_77 = arith.constant 0 : index
    %c16 = arith.constant 16 : index
    %89 = vector.load %arg6[%c0_76, %c0_77, %c16] : memref<1x8x32xbf16, #tpu.memory_space<vmem>>, vector<1x8x8xbf16>
    %90 = vector.shape_cast %89 : vector<1x8x8xbf16> to vector<8x8xbf16>
    %91 = vector.shape_cast %88 : vector<8x8xbf16> to vector<1x8x8xbf16>
    tpu.vector_store %arg6[%c0_76, %c0_77, %c16], %91 {strides = array<i32>} : memref<1x8x32xbf16, #tpu.memory_space<vmem>>, vector<1x8x8xbf16>,
    %c0_78 = arith.constant 0 : index
    %c0_79 = arith.constant 0 : index
    %c0_80 = arith.constant 0 : index
    %c3 = arith.constant 3 : index
    %c0_81 = arith.constant 0 : index
    %92 = vector.load %arg2[%c0_78, %c0_79, %c0_80, %c3, %c0_81] : memref<1x8x1x4x8xbf16, #tpu.memory_space<vmem>>, vector<1x8x1x1x8xbf16>
    %93 = vector.shape_cast %92 : vector<1x8x1x1x8xbf16> to vector<8x8xbf16>
    %c0_82 = arith.constant 0 : index
    %c0_83 = arith.constant 0 : index
    %c0_84 = arith.constant 0 : index
    %c3_85 = arith.constant 3 : index
    %c0_86 = arith.constant 0 : index
    %94 = vector.load %arg3[%c0_82, %c0_83, %c0_84, %c3_85, %c0_86] : memref<1x8x1x4x8xbf16, #tpu.memory_space<vmem>>, vector<1x8x1x1x8xbf16>
    %95 = vector.shape_cast %94 : vector<1x8x1x1x8xbf16> to vector<8x8xbf16>
    %c0_87 = arith.constant 0 : index
    %c0_88 = arith.constant 0 : index
    %c0_89 = arith.constant 0 : index
    %c3_90 = arith.constant 3 : index
    %c0_91 = arith.constant 0 : index
    %96 = vector.load %arg4[%c0_87, %c0_88, %c0_89, %c3_90, %c0_91] : memref<1x8x1x4x8xbf16, #tpu.memory_space<vmem>>, vector<1x8x1x1x8xbf16>
    %97 = vector.shape_cast %96 : vector<1x8x1x1x8xbf16> to vector<8x8xbf16>
    %cst_92 = arith.constant dense<0.000000e+00> : vector<8x8xf32>
    %98 = tpu.matmul %93, %95, %cst_92 {dimension_numbers = #tpu.dot_dimension_numbers<[1], [1], [0], [0], [0, 0, 1, 0], [], []>} : vector<8x8xbf16>, vector<8x8xbf16>, vector<8x8xf32> -> vector<8x8xf32>
    %cst_93 = arith.constant 0.353553385 : f32
    %99 = vector.broadcast %cst_93 : f32 to vector<8x8xf32>
    %100 = arith.mulf %98, %99 : vector<8x8xf32>
    %101 = vector.broadcast %1 : vector<1x8xf32> to vector<8x8xf32>
    %102 = arith.addf %100, %101 : vector<8x8xf32>
    %cst_94 = arith.constant dense<0xFF800000> : vector<8xf32>
    %103 = vector.multi_reduction <maximumf>, %102, %cst_94 [1] : vector<8x8xf32> to vector<8xf32>
    %104 = vector.shape_cast %103 : vector<8xf32> to vector<8x1xf32>
    %105 = vector.broadcast %104 : vector<8x1xf32> to vector<8x8xf32>
    %106 = arith.subf %102, %105 : vector<8x8xf32>
    %107 = math.exp %106 : vector<8x8xf32>
    %cst_95 = arith.constant dense<0.000000e+00> : vector<8xf32>
    %108 = vector.multi_reduction <add>, %107, %cst_95 [1] : vector<8x8xf32> to vector<8xf32>
    %109 = vector.shape_cast %108 : vector<8xf32> to vector<8x1xf32>
    %110 = vector.broadcast %109 : vector<8x1xf32> to vector<8x8xf32>
    %111 = arith.divf %107, %110 : vector<8x8xf32>
    %112 = arith.truncf %111 : vector<8x8xf32> to vector<8x8xbf16>
    %c0_96 = arith.constant 0 : index
    %c3_97 = arith.constant 3 : index
    %c0_98 = arith.constant 0 : index
    %c0_99 = arith.constant 0 : index
    %113 = vector.load %arg7[%c0_96, %c3_97, %c0_98, %c0_99] : memref<1x4x8x8xbf16, #tpu.memory_space<vmem>>, vector<1x1x8x8xbf16>
    %114 = vector.shape_cast %113 : vector<1x1x8x8xbf16> to vector<8x8xbf16>
    %115 = vector.shape_cast %112 : vector<8x8xbf16> to vector<1x1x8x8xbf16>
    tpu.vector_store %arg7[%c0_96, %c3_97, %c0_98, %c0_99], %115 {strides = array<i32>} : memref<1x4x8x8xbf16, #tpu.memory_space<vmem>>, vector<1x1x8x8xbf16>,
    %116 = arith.truncf %111 : vector<8x8xf32> to vector<8x8xbf16>
    %cst_100 = arith.constant dense<0.000000e+00> : vector<8x8xf32>
    %117 = tpu.matmul %116, %97, %cst_100 {dimension_numbers = #tpu.dot_dimension_numbers<[1], [0], [0], [1], [0, 0, 1, 1], [], []>} : vector<8x8xbf16>, vector<8x8xbf16>, vector<8x8xf32> -> vector<8x8xf32>
    %118 = arith.truncf %117 : vector<8x8xf32> to vector<8x8xbf16>
    %c0_101 = arith.constant 0 : index
    %c0_102 = arith.constant 0 : index
    %c24 = arith.constant 24 : index
    %119 = vector.load %arg6[%c0_101, %c0_102, %c24] : memref<1x8x32xbf16, #tpu.memory_space<vmem>>, vector<1x8x8xbf16>
    %120 = vector.shape_cast %119 : vector<1x8x8xbf16> to vector<8x8xbf16>
    %121 = vector.shape_cast %118 : vector<8x8xbf16> to vector<1x8x8xbf16>
    tpu.vector_store %arg6[%c0_101, %c0_102, %c24], %121 {strides = array<i32>} : memref<1x8x32xbf16, #tpu.memory_space<vmem>>, vector<1x8x8xbf16>,
    return
  }
  func.func @transform_0(%arg0: i32, %arg1: i32) -> (i32, i32, i32, i32, i32) {
    %c0_i32 = arith.constant 0 : i32
    %c0_i32_0 = arith.constant 0 : i32
    %c0_i32_1 = arith.constant 0 : i32
    %c0_i32_2 = arith.constant 0 : i32
    return %arg0, %arg1, %c0_i32, %c0_i32_0, %c0_i32_1 : i32, i32, i32, i32, i32
  }
  func.func @transform_1(%arg0: i32, %arg1: i32) -> (i32, i32, i32, i32, i32) {
    %c0_i32 = arith.constant 0 : i32
    %c1_i32 = arith.constant 1 : i32
    %c0_i32_0 = arith.constant 0 : i32
    %c0_i32_1 = arith.constant 0 : i32
    %c0_i32_2 = arith.constant 0 : i32
    return %arg0, %c0_i32, %c1_i32, %c0_i32_0, %c0_i32_1 : i32, i32, i32, i32, i32
  }
  func.func @transform_2(%arg0: i32, %arg1: i32) -> (i32, i32, i32, i32, i32) {
    %c0_i32 = arith.constant 0 : i32
    %c2_i32 = arith.constant 2 : i32
    %c0_i32_0 = arith.constant 0 : i32
    %c0_i32_1 = arith.constant 0 : i32
    %c0_i32_2 = arith.constant 0 : i32
    return %arg0, %c0_i32, %c2_i32, %c0_i32_0, %c0_i32_1 : i32, i32, i32, i32, i32
  }
  func.func @transform_3(%arg0: i32, %arg1: i32) -> (i32, i32, i32) {
    %c0_i32 = arith.constant 0 : i32
    %c0_i32_0 = arith.constant 0 : i32
    %c0_i32_1 = arith.constant 0 : i32
    %c0_i32_2 = arith.constant 0 : i32
    return %c0_i32, %c0_i32_0, %c0_i32_1 : i32, i32, i32
  }
  func.func @transform_4(%arg0: i32, %arg1: i32) -> (i32, i32, i32) {
    %c0_i32 = arith.constant 0 : i32
    %c0_i32_0 = arith.constant 0 : i32
    return %arg0, %arg1, %c0_i32 : i32, i32, i32
  }
  func.func @transform_5(%arg0: i32, %arg1: i32) -> (i32, i32, i32, i32) {
    %c0_i32 = arith.constant 0 : i32
    %c0_i32_0 = arith.constant 0 : i32
    %c0_i32_1 = arith.constant 0 : i32
    return %arg0, %c0_i32, %arg1, %c0_i32_0 : i32, i32, i32, i32
  }
}

module attributes {stable_mosaic.version = 11 : i64} {
  func.func @kernel(%arg0: i32, %arg1: i32, %arg2: memref<16x32xf32, #tpu.memory_space<vmem>>, %arg3: memref<32x64xbf16, #tpu.memory_space<vmem>>, %arg4: memref<1x64xf32, #tpu.memory_space<vmem>>, %arg5: memref<64x32xbf16, #tpu.memory_space<vmem>>, %arg6: memref<1x32xf32, #tpu.memory_space<vmem>>, %arg7: memref<1x32xf32, #tpu.memory_space<vmem>>, %arg8: memref<1x32xf32, #tpu.memory_space<vmem>>, %arg9: memref<16x32xf32, #tpu.memory_space<vmem>>, %arg10: memref<16x32xf32, #tpu.memory_space<vmem>>) attributes {dimension_semantics = [#tpu.dimension_semantics<parallel>, #tpu.dimension_semantics<arbitrary>], iteration_bounds = array<i64: 1, 1>, scalar_prefetch = 0 : i64, scratch_operands = 1 : i64, tpu.core_type = #tpu.core_type<tc>, window_params = [{transform_indices = @transform_0, window_bounds = array<i64: 16, 32>}, {transform_indices = @transform_1, window_bounds = array<i64: 32, 64>}, {transform_indices = @transform_2, window_bounds = array<i64: 1, 64>}, {transform_indices = @transform_3, window_bounds = array<i64: 64, 32>}, {pipeline_mode = #tpu.pipeline_mode<synchronous>, transform_indices = @transform_4, window_bounds = array<i64: 1, 32>}, {pipeline_mode = #tpu.pipeline_mode<synchronous>, transform_indices = @transform_5, window_bounds = array<i64: 1, 32>}, {pipeline_mode = #tpu.pipeline_mode<synchronous>, transform_indices = @transform_6, window_bounds = array<i64: 1, 32>}, {transform_indices = @transform_7, window_bounds = array<i64: 16, 32>}]} {
    %c0_i32 = arith.constant 0 : i32
    %0 = arith.cmpi eq, %arg1, %c0_i32 : i32
    %1 = arith.extui %0 : i1 to i32
    %c0_i32_0 = arith.constant 0 : i32
    %2 = arith.cmpi ne, %1, %c0_i32_0 : i32
    scf.if %2 {
      %cst_16 = arith.constant 0.000000e+00 : f32
      %21 = vector.broadcast %cst_16 : f32 to vector<16x32xf32>
      %c0_17 = arith.constant 0 : index
      %c0_18 = arith.constant 0 : index
      %22 = vector.load %arg10[%c0_17, %c0_18] : memref<16x32xf32, #tpu.memory_space<vmem>>, vector<16x32xf32>
      tpu.vector_store %arg10[%c0_17, %c0_18], %21 {strides = array<i32>} : memref<16x32xf32, #tpu.memory_space<vmem>>, vector<16x32xf32>,
    } else {
    }
    %c0 = arith.constant 0 : index
    %c0_1 = arith.constant 0 : index
    %3 = vector.load %arg2[%c0, %c0_1] : memref<16x32xf32, #tpu.memory_space<vmem>>, vector<16x32xf32>
    %4 = arith.truncf %3 : vector<16x32xf32> to vector<16x32xbf16>
    %c0_2 = arith.constant 0 : index
    %c0_3 = arith.constant 0 : index
    %5 = vector.load %arg3[%c0_2, %c0_3] : memref<32x64xbf16, #tpu.memory_space<vmem>>, vector<32x64xbf16>
    %cst = arith.constant dense<0.000000e+00> : vector<16x64xf32>
    %6 = tpu.matmul %4, %5, %cst {dimension_numbers = #tpu.dot_dimension_numbers<[1], [0], [0], [1], [0, 0, 1, 1], [], []>} : vector<16x32xbf16>, vector<32x64xbf16>, vector<16x64xf32> -> vector<16x64xf32>
    %c0_4 = arith.constant 0 : index
    %c0_5 = arith.constant 0 : index
    %7 = vector.load %arg4[%c0_4, %c0_5] : memref<1x64xf32, #tpu.memory_space<vmem>>, vector<1x64xf32>
    %8 = vector.broadcast %7 : vector<1x64xf32> to vector<16x64xf32>
    %9 = arith.addf %6, %8 : vector<16x64xf32>
    %cst_6 = arith.constant 0.000000e+00 : f32
    %10 = vector.broadcast %cst_6 : f32 to vector<16x64xf32>
    %11 = arith.maximumf %9, %10 : vector<16x64xf32>
    %c0_7 = arith.constant 0 : index
    %c0_8 = arith.constant 0 : index
    %12 = vector.load %arg10[%c0_7, %c0_8] : memref<16x32xf32, #tpu.memory_space<vmem>>, vector<16x32xf32>
    %13 = arith.truncf %11 : vector<16x64xf32> to vector<16x64xbf16>
    %c0_9 = arith.constant 0 : index
    %c0_10 = arith.constant 0 : index
    %14 = vector.load %arg5[%c0_9, %c0_10] : memref<64x32xbf16, #tpu.memory_space<vmem>>, vector<64x32xbf16>
    %cst_11 = arith.constant dense<0.000000e+00> : vector<16x32xf32>
    %15 = tpu.matmul %13, %14, %cst_11 {dimension_numbers = #tpu.dot_dimension_numbers<[1], [0], [0], [1], [0, 0, 1, 1], [], []>} : vector<16x64xbf16>, vector<64x32xbf16>, vector<16x32xf32> -> vector<16x32xf32>
    %16 = arith.addf %12, %15 : vector<16x32xf32>
    %c0_12 = arith.constant 0 : index
    %c0_13 = arith.constant 0 : index
    %17 = vector.load %arg10[%c0_12, %c0_13] : memref<16x32xf32, #tpu.memory_space<vmem>>, vector<16x32xf32>
    tpu.vector_store %arg10[%c0_12, %c0_13], %16 {strides = array<i32>} : memref<16x32xf32, #tpu.memory_space<vmem>>, vector<16x32xf32>,
    %c0_i32_14 = arith.constant 0 : i32
    %18 = arith.cmpi eq, %arg1, %c0_i32_14 : i32
    %19 = arith.extui %18 : i1 to i32
    %c0_i32_15 = arith.constant 0 : i32
    %20 = arith.cmpi ne, %19, %c0_i32_15 : i32
    scf.if %20 {
      %c0_16 = arith.constant 0 : index
      %c0_17 = arith.constant 0 : index
      %21 = vector.load %arg10[%c0_16, %c0_17] : memref<16x32xf32, #tpu.memory_space<vmem>>, vector<16x32xf32>
      %c0_18 = arith.constant 0 : index
      %c0_19 = arith.constant 0 : index
      %22 = vector.load %arg6[%c0_18, %c0_19] : memref<1x32xf32, #tpu.memory_space<vmem>>, vector<1x32xf32>
      %23 = vector.broadcast %22 : vector<1x32xf32> to vector<16x32xf32>
      %24 = arith.addf %21, %23 : vector<16x32xf32>
      %c0_20 = arith.constant 0 : index
      %c0_21 = arith.constant 0 : index
      %25 = vector.load %arg2[%c0_20, %c0_21] : memref<16x32xf32, #tpu.memory_space<vmem>>, vector<16x32xf32>
      %26 = arith.addf %24, %25 : vector<16x32xf32>
      %cst_22 = arith.constant dense<0.000000e+00> : vector<16xf32>
      %27 = vector.multi_reduction <add>, %26, %cst_22 [1] : vector<16x32xf32> to vector<16xf32>
      %28 = vector.shape_cast %27 : vector<16xf32> to vector<16x1xf32>
      %cst_23 = arith.constant 3.200000e+01 : f32
      %29 = vector.broadcast %cst_23 : f32 to vector<16x1xf32>
      %30 = arith.divf %28, %29 : vector<16x1xf32>
      %31 = vector.broadcast %30 : vector<16x1xf32> to vector<16x32xf32>
      %32 = arith.subf %26, %31 : vector<16x32xf32>
      %33 = vector.broadcast %30 : vector<16x1xf32> to vector<16x32xf32>
      %34 = arith.subf %26, %33 : vector<16x32xf32>
      %35 = arith.mulf %32, %34 : vector<16x32xf32>
      %cst_24 = arith.constant dense<0.000000e+00> : vector<16xf32>
      %36 = vector.multi_reduction <add>, %35, %cst_24 [1] : vector<16x32xf32> to vector<16xf32>
      %37 = vector.shape_cast %36 : vector<16xf32> to vector<16x1xf32>
      %cst_25 = arith.constant 3.200000e+01 : f32
      %38 = vector.broadcast %cst_25 : f32 to vector<16x1xf32>
      %39 = arith.divf %37, %38 : vector<16x1xf32>
      %40 = vector.broadcast %30 : vector<16x1xf32> to vector<16x32xf32>
      %41 = arith.subf %26, %40 : vector<16x32xf32>
      %cst_26 = arith.constant 9.99999974E-6 : f32
      %42 = vector.broadcast %cst_26 : f32 to vector<16x1xf32>
      %43 = arith.addf %39, %42 : vector<16x1xf32>
      %44 = math.rsqrt %43 : vector<16x1xf32>
      %45 = vector.broadcast %44 : vector<16x1xf32> to vector<16x32xf32>
      %46 = arith.mulf %41, %45 : vector<16x32xf32>
      %c0_27 = arith.constant 0 : index
      %c0_28 = arith.constant 0 : index
      %47 = vector.load %arg7[%c0_27, %c0_28] : memref<1x32xf32, #tpu.memory_space<vmem>>, vector<1x32xf32>
      %48 = vector.broadcast %47 : vector<1x32xf32> to vector<16x32xf32>
      %49 = arith.mulf %46, %48 : vector<16x32xf32>
      %c0_29 = arith.constant 0 : index
      %c0_30 = arith.constant 0 : index
      %50 = vector.load %arg8[%c0_29, %c0_30] : memref<1x32xf32, #tpu.memory_space<vmem>>, vector<1x32xf32>
      %51 = vector.broadcast %50 : vector<1x32xf32> to vector<16x32xf32>
      %52 = arith.addf %49, %51 : vector<16x32xf32>
      %c0_31 = arith.constant 0 : index
      %c0_32 = arith.constant 0 : index
      %53 = vector.load %arg9[%c0_31, %c0_32] : memref<16x32xf32, #tpu.memory_space<vmem>>, vector<16x32xf32>
      tpu.vector_store %arg9[%c0_31, %c0_32], %52 {strides = array<i32>} : memref<16x32xf32, #tpu.memory_space<vmem>>, vector<16x32xf32>,
    } else {
    }
    return
  }
  func.func @transform_0(%arg0: i32, %arg1: i32) -> (i32, i32) {
    %c0_i32 = arith.constant 0 : i32
    %c0_i32_0 = arith.constant 0 : i32
    return %arg0, %c0_i32 : i32, i32
  }
  func.func @transform_1(%arg0: i32, %arg1: i32) -> (i32, i32) {
    %c0_i32 = arith.constant 0 : i32
    %c0_i32_0 = arith.constant 0 : i32
    return %c0_i32, %arg1 : i32, i32
  }
  func.func @transform_2(%arg0: i32, %arg1: i32) -> (i32, i32) {
    %c0_i32 = arith.constant 0 : i32
    %c0_i32_0 = arith.constant 0 : i32
    return %c0_i32, %arg1 : i32, i32
  }
  func.func @transform_3(%arg0: i32, %arg1: i32) -> (i32, i32) {
    %c0_i32 = arith.constant 0 : i32
    %c0_i32_0 = arith.constant 0 : i32
    return %arg1, %c0_i32 : i32, i32
  }
  func.func @transform_4(%arg0: i32, %arg1: i32) -> (i32, i32) {
    %c0_i32 = arith.constant 0 : i32
    %c0_i32_0 = arith.constant 0 : i32
    %c0_i32_1 = arith.constant 0 : i32
    return %c0_i32, %c0_i32_0 : i32, i32
  }
  func.func @transform_5(%arg0: i32, %arg1: i32) -> (i32, i32) {
    %c0_i32 = arith.constant 0 : i32
    %c0_i32_0 = arith.constant 0 : i32
    %c0_i32_1 = arith.constant 0 : i32
    return %c0_i32, %c0_i32_0 : i32, i32
  }
  func.func @transform_6(%arg0: i32, %arg1: i32) -> (i32, i32) {
    %c0_i32 = arith.constant 0 : i32
    %c0_i32_0 = arith.constant 0 : i32
    %c0_i32_1 = arith.constant 0 : i32
    return %c0_i32, %c0_i32_0 : i32, i32
  }
  func.func @transform_7(%arg0: i32, %arg1: i32) -> (i32, i32) {
    %c0_i32 = arith.constant 0 : i32
    %c0_i32_0 = arith.constant 0 : i32
    return %arg0, %c0_i32 : i32, i32
  }
}

module attributes {stable_mosaic.version = 11 : i64} {
  func.func @kernel(%arg0: i32, %arg1: i32, %arg2: memref<16x32xf32, #tpu.memory_space<vmem>>, %arg3: memref<32x64xbf16, #tpu.memory_space<vmem>>, %arg4: memref<1x64xf32, #tpu.memory_space<vmem>>, %arg5: memref<16x64xbf16, #tpu.memory_space<vmem>>) attributes {dimension_semantics = [#tpu.dimension_semantics<parallel>, #tpu.dimension_semantics<parallel>], iteration_bounds = array<i64: 1, 1>, scalar_prefetch = 0 : i64, scratch_operands = 0 : i64, tpu.core_type = #tpu.core_type<tc>, window_params = [{transform_indices = @transform_0, window_bounds = array<i64: 16, 32>}, {transform_indices = @transform_1, window_bounds = array<i64: 32, 64>}, {transform_indices = @transform_2, window_bounds = array<i64: 1, 64>}, {transform_indices = @transform_3, window_bounds = array<i64: 16, 64>}]} {
    %c0 = arith.constant 0 : index
    %c0_0 = arith.constant 0 : index
    %0 = vector.load %arg2[%c0, %c0_0] : memref<16x32xf32, #tpu.memory_space<vmem>>, vector<16x32xf32>
    %1 = arith.truncf %0 : vector<16x32xf32> to vector<16x32xbf16>
    %c0_1 = arith.constant 0 : index
    %c0_2 = arith.constant 0 : index
    %2 = vector.load %arg3[%c0_1, %c0_2] : memref<32x64xbf16, #tpu.memory_space<vmem>>, vector<32x64xbf16>
    %cst = arith.constant dense<0.000000e+00> : vector<16x64xf32>
    %3 = tpu.matmul %1, %2, %cst {dimension_numbers = #tpu.dot_dimension_numbers<[1], [0], [0], [1], [0, 0, 1, 1], [], []>} : vector<16x32xbf16>, vector<32x64xbf16>, vector<16x64xf32> -> vector<16x64xf32>
    %c0_3 = arith.constant 0 : index
    %c0_4 = arith.constant 0 : index
    %4 = vector.load %arg4[%c0_3, %c0_4] : memref<1x64xf32, #tpu.memory_space<vmem>>, vector<1x64xf32>
    %5 = vector.broadcast %4 : vector<1x64xf32> to vector<16x64xf32>
    %6 = arith.addf %3, %5 : vector<16x64xf32>
    %7 = arith.truncf %6 : vector<16x64xf32> to vector<16x64xbf16>
    %c0_5 = arith.constant 0 : index
    %c0_6 = arith.constant 0 : index
    %8 = vector.load %arg5[%c0_5, %c0_6] : memref<16x64xbf16, #tpu.memory_space<vmem>>, vector<16x64xbf16>
    tpu.vector_store %arg5[%c0_5, %c0_6], %7 {strides = array<i32>} : memref<16x64xbf16, #tpu.memory_space<vmem>>, vector<16x64xbf16>,
    return
  }
  func.func @transform_0(%arg0: i32, %arg1: i32) -> (i32, i32) {
    %c0_i32 = arith.constant 0 : i32
    %c0_i32_0 = arith.constant 0 : i32
    return %arg0, %c0_i32 : i32, i32
  }
  func.func @transform_1(%arg0: i32, %arg1: i32) -> (i32, i32) {
    %c0_i32 = arith.constant 0 : i32
    %c0_i32_0 = arith.constant 0 : i32
    return %c0_i32, %arg1 : i32, i32
  }
  func.func @transform_2(%arg0: i32, %arg1: i32) -> (i32, i32) {
    %c0_i32 = arith.constant 0 : i32
    %c0_i32_0 = arith.constant 0 : i32
    return %c0_i32, %arg1 : i32, i32
  }
  func.func @transform_3(%arg0: i32, %arg1: i32) -> (i32, i32) {
    %c0_i32 = arith.constant 0 : i32
    return %arg0, %arg1 : i32, i32
  }
}

module attributes {stable_mosaic.version = 11 : i64} {
  func.func @kernel(%arg0: i32, %arg1: i32, %arg2: memref<1x8x1x4x8xbf16, #tpu.memory_space<vmem>>, %arg3: memref<1x8x1x4x8xbf16, #tpu.memory_space<vmem>>, %arg4: memref<1x8x1x4x8xbf16, #tpu.memory_space<vmem>>, %arg5: memref<1x1x8xf32, #tpu.memory_space<vmem>>, %arg6: memref<1x8x32xbf16, #tpu.memory_space<vmem>>, %arg7: memref<1x4x8x8xbf16, #tpu.memory_space<vmem>>) attributes {dimension_semantics = [#tpu.dimension_semantics<parallel>, #tpu.dimension_semantics<parallel>], iteration_bounds = array<i64: 2, 1>, scalar_prefetch = 0 : i64, scratch_operands = 0 : i64, tpu.core_type = #tpu.core_type<tc>, window_params = [{transform_indices = @transform_0, window_bounds = array<i64: 1, 8, 1, 4, 8>}, {transform_indices = @transform_1, window_bounds = array<i64: 1, 8, 1, 4, 8>}, {transform_indices = @transform_2, window_bounds = array<i64: 1, 8, 1, 4, 8>}, {pipeline_mode = #tpu.pipeline_mode<synchronous>, transform_indices = @transform_3, window_bounds = array<i64: 1, 1, 8>}, {transform_indices = @transform_4, window_bounds = array<i64: 1, 8, 32>}, {transform_indices = @transform_5, window_bounds = array<i64: 1, 4, 8, 8>}]} {
    %c0 = arith.constant 0 : index
    %c0_0 = arith.constant 0 : index
    %c0_1 = arith.constant 0 : index
    %0 = vector.load %arg5[%c0, %c0_0, %c0_1] : memref<1x1x8xf32, #tpu.memory_space<vmem>>, vector<1x1x8xf32>
    %1 = vector.shape_cast %0 : vector<1x1x8xf32> to vector<1x8xf32>
    %c8_i32 = arith.constant 8 : i32
    %2 = arith.muli %arg1, %c8_i32 : i32
    %3 = tpu.iota {dimensions = array<i32: 0>} : vector<8x8xi32>
    %4 = vector.broadcast %2 : i32 to vector<8x8xi32>
    %5 = arith.addi %3, %4 : vector<8x8xi32>
    %6 = tpu.iota {dimensions = array<i32: 1>} : vector<8x8xi32>
    %7 = arith.cmpi sgt, %6, %5 : vector<8x8xi32>
    %cst = arith.constant -1.000000e+09 : f32
    %cst_2 = arith.constant 0.000000e+00 : f32
    %8 = vector.broadcast %cst : f32 to vector<8x8xf32>
    %9 = vector.broadcast %cst_2 : f32 to vector<8x8xf32>
    %10 = arith.select %7, %8, %9 : vector<8x8xi1>, vector<8x8xf32>
    %c0_3 = arith.constant 0 : index
    %c0_4 = arith.constant 0 : index
    %c0_5 = arith.constant 0 : index
    %c0_6 = arith.constant 0 : index
    %c0_7 = arith.constant 0 : index
    %11 = vector.load %arg2[%c0_3, %c0_4, %c0_5, %c0_6, %c0_7] : memref<1x8x1x4x8xbf16, #tpu.memory_space<vmem>>, vector<1x8x1x1x8xbf16>
    %12 = vector.shape_cast %11 : vector<1x8x1x1x8xbf16> to vector<8x8xbf16>
    %c0_8 = arith.constant 0 : index
    %c0_9 = arith.constant 0 : index
    %c0_10 = arith.constant 0 : index
    %c0_11 = arith.constant 0 : index
    %c0_12 = arith.constant 0 : index
    %13 = vector.load %arg3[%c0_8, %c0_9, %c0_10, %c0_11, %c0_12] : memref<1x8x1x4x8xbf16, #tpu.memory_space<vmem>>, vector<1x8x1x1x8xbf16>
    %14 = vector.shape_cast %13 : vector<1x8x1x1x8xbf16> to vector<8x8xbf16>
    %c0_13 = arith.constant 0 : index
    %c0_14 = arith.constant 0 : index
    %c0_15 = arith.constant 0 : index
    %c0_16 = arith.constant 0 : index
    %c0_17 = arith.constant 0 : index
    %15 = vector.load %arg4[%c0_13, %c0_14, %c0_15, %c0_16, %c0_17] : memref<1x8x1x4x8xbf16, #tpu.memory_space<vmem>>, vector<1x8x1x1x8xbf16>
    %16 = vector.shape_cast %15 : vector<1x8x1x1x8xbf16> to vector<8x8xbf16>
    %cst_18 = arith.constant dense<0.000000e+00> : vector<8x8xf32>
    %17 = tpu.matmul %12, %14, %cst_18 {dimension_numbers = #tpu.dot_dimension_numbers<[1], [1], [0], [0], [0, 0, 1, 0], [], []>} : vector<8x8xbf16>, vector<8x8xbf16>, vector<8x8xf32> -> vector<8x8xf32>
    %cst_19 = arith.constant 0.353553385 : f32
    %18 = vector.broadcast %cst_19 : f32 to vector<8x8xf32>
    %19 = arith.mulf %17, %18 : vector<8x8xf32>
    %20 = vector.broadcast %1 : vector<1x8xf32> to vector<8x8xf32>
    %21 = arith.addf %19, %20 : vector<8x8xf32>
    %22 = arith.addf %21, %10 : vector<8x8xf32>
    %cst_20 = arith.constant dense<0xFF800000> : vector<8xf32>
    %23 = vector.multi_reduction <maximumf>, %22, %cst_20 [1] : vector<8x8xf32> to vector<8xf32>
    %24 = vector.shape_cast %23 : vector<8xf32> to vector<8x1xf32>
    %25 = vector.broadcast %24 : vector<8x1xf32> to vector<8x8xf32>
    %26 = arith.subf %22, %25 : vector<8x8xf32>
    %27 = math.exp %26 : vector<8x8xf32>
    %cst_21 = arith.constant dense<0.000000e+00> : vector<8xf32>
    %28 = vector.multi_reduction <add>, %27, %cst_21 [1] : vector<8x8xf32> to vector<8xf32>
    %29 = vector.shape_cast %28 : vector<8xf32> to vector<8x1xf32>
    %30 = vector.broadcast %29 : vector<8x1xf32> to vector<8x8xf32>
    %31 = arith.divf %27, %30 : vector<8x8xf32>
    %32 = arith.truncf %31 : vector<8x8xf32> to vector<8x8xbf16>
    %c0_22 = arith.constant 0 : index
    %c0_23 = arith.constant 0 : index
    %c0_24 = arith.constant 0 : index
    %c0_25 = arith.constant 0 : index
    %33 = vector.load %arg7[%c0_22, %c0_23, %c0_24, %c0_25] : memref<1x4x8x8xbf16, #tpu.memory_space<vmem>>, vector<1x1x8x8xbf16>
    %34 = vector.shape_cast %33 : vector<1x1x8x8xbf16> to vector<8x8xbf16>
    %35 = vector.shape_cast %32 : vector<8x8xbf16> to vector<1x1x8x8xbf16>
    tpu.vector_store %arg7[%c0_22, %c0_23, %c0_24, %c0_25], %35 {strides = array<i32>} : memref<1x4x8x8xbf16, #tpu.memory_space<vmem>>, vector<1x1x8x8xbf16>,
    %36 = arith.truncf %31 : vector<8x8xf32> to vector<8x8xbf16>
    %cst_26 = arith.constant dense<0.000000e+00> : vector<8x8xf32>
    %37 = tpu.matmul %36, %16, %cst_26 {dimension_numbers = #tpu.dot_dimension_numbers<[1], [0], [0], [1], [0, 0, 1, 1], [], []>} : vector<8x8xbf16>, vector<8x8xbf16>, vector<8x8xf32> -> vector<8x8xf32>
    %38 = arith.truncf %37 : vector<8x8xf32> to vector<8x8xbf16>
    %c0_27 = arith.constant 0 : index
    %c0_28 = arith.constant 0 : index
    %c0_29 = arith.constant 0 : index
    %39 = vector.load %arg6[%c0_27, %c0_28, %c0_29] : memref<1x8x32xbf16, #tpu.memory_space<vmem>>, vector<1x8x8xbf16>
    %40 = vector.shape_cast %39 : vector<1x8x8xbf16> to vector<8x8xbf16>
    %41 = vector.shape_cast %38 : vector<8x8xbf16> to vector<1x8x8xbf16>
    tpu.vector_store %arg6[%c0_27, %c0_28, %c0_29], %41 {strides = array<i32>} : memref<1x8x32xbf16, #tpu.memory_space<vmem>>, vector<1x8x8xbf16>,
    %c0_30 = arith.constant 0 : index
    %c0_31 = arith.constant 0 : index
    %c0_32 = arith.constant 0 : index
    %c1 = arith.constant 1 : index
    %c0_33 = arith.constant 0 : index
    %42 = vector.load %arg2[%c0_30, %c0_31, %c0_32, %c1, %c0_33] : memref<1x8x1x4x8xbf16, #tpu.memory_space<vmem>>, vector<1x8x1x1x8xbf16>
    %43 = vector.shape_cast %42 : vector<1x8x1x1x8xbf16> to vector<8x8xbf16>
    %c0_34 = arith.constant 0 : index
    %c0_35 = arith.constant 0 : index
    %c0_36 = arith.constant 0 : index
    %c1_37 = arith.constant 1 : index
    %c0_38 = arith.constant 0 : index
    %44 = vector.load %arg3[%c0_34, %c0_35, %c0_36, %c1_37, %c0_38] : memref<1x8x1x4x8xbf16, #tpu.memory_space<vmem>>, vector<1x8x1x1x8xbf16>
    %45 = vector.shape_cast %44 : vector<1x8x1x1x8xbf16> to vector<8x8xbf16>
    %c0_39 = arith.constant 0 : index
    %c0_40 = arith.constant 0 : index
    %c0_41 = arith.constant 0 : index
    %c1_42 = arith.constant 1 : index
    %c0_43 = arith.constant 0 : index
    %46 = vector.load %arg4[%c0_39, %c0_40, %c0_41, %c1_42, %c0_43] : memref<1x8x1x4x8xbf16, #tpu.memory_space<vmem>>, vector<1x8x1x1x8xbf16>
    %47 = vector.shape_cast %46 : vector<1x8x1x1x8xbf16> to vector<8x8xbf16>
    %cst_44 = arith.constant dense<0.000000e+00> : vector<8x8xf32>
    %48 = tpu.matmul %43, %45, %cst_44 {dimension_numbers = #tpu.dot_dimension_numbers<[1], [1], [0], [0], [0, 0, 1, 0], [], []>} : vector<8x8xbf16>, vector<8x8xbf16>, vector<8x8xf32> -> vector<8x8xf32>
    %cst_45 = arith.constant 0.353553385 : f32
    %49 = vector.broadcast %cst_45 : f32 to vector<8x8xf32>
    %50 = arith.mulf %48, %49 : vector<8x8xf32>
    %51 = vector.broadcast %1 : vector<1x8xf32> to vector<8x8xf32>
    %52 = arith.addf %50, %51 : vector<8x8xf32>
    %53 = arith.addf %52, %10 : vector<8x8xf32>
    %cst_46 = arith.constant dense<0xFF800000> : vector<8xf32>
    %54 = vector.multi_reduction <maximumf>, %53, %cst_46 [1] : vector<8x8xf32> to vector<8xf32>
    %55 = vector.shape_cast %54 : vector<8xf32> to vector<8x1xf32>
    %56 = vector.broadcast %55 : vector<8x1xf32> to vector<8x8xf32>
    %57 = arith.subf %53, %56 : vector<8x8xf32>
    %58 = math.exp %57 : vector<8x8xf32>
    %cst_47 = arith.constant dense<0.000000e+00> : vector<8xf32>
    %59 = vector.multi_reduction <add>, %58, %cst_47 [1] : vector<8x8xf32> to vector<8xf32>
    %60 = vector.shape_cast %59 : vector<8xf32> to vector<8x1xf32>
    %61 = vector.broadcast %60 : vector<8x1xf32> to vector<8x8xf32>
    %62 = arith.divf %58, %61 : vector<8x8xf32>
    %63 = arith.truncf %62 : vector<8x8xf32> to vector<8x8xbf16>
    %c0_48 = arith.constant 0 : index
    %c1_49 = arith.constant 1 : index
    %c0_50 = arith.constant 0 : index
    %c0_51 = arith.constant 0 : index
    %64 = vector.load %arg7[%c0_48, %c1_49, %c0_50, %c0_51] : memref<1x4x8x8xbf16, #tpu.memory_space<vmem>>, vector<1x1x8x8xbf16>
    %65 = vector.shape_cast %64 : vector<1x1x8x8xbf16> to vector<8x8xbf16>
    %66 = vector.shape_cast %63 : vector<8x8xbf16> to vector<1x1x8x8xbf16>
    tpu.vector_store %arg7[%c0_48, %c1_49, %c0_50, %c0_51], %66 {strides = array<i32>} : memref<1x4x8x8xbf16, #tpu.memory_space<vmem>>, vector<1x1x8x8xbf16>,
    %67 = arith.truncf %62 : vector<8x8xf32> to vector<8x8xbf16>
    %cst_52 = arith.constant dense<0.000000e+00> : vector<8x8xf32>
    %68 = tpu.matmul %67, %47, %cst_52 {dimension_numbers = #tpu.dot_dimension_numbers<[1], [0], [0], [1], [0, 0, 1, 1], [], []>} : vector<8x8xbf16>, vector<8x8xbf16>, vector<8x8xf32> -> vector<8x8xf32>
    %69 = arith.truncf %68 : vector<8x8xf32> to vector<8x8xbf16>
    %c0_53 = arith.constant 0 : index
    %c0_54 = arith.constant 0 : index
    %c8 = arith.constant 8 : index
    %70 = vector.load %arg6[%c0_53, %c0_54, %c8] : memref<1x8x32xbf16, #tpu.memory_space<vmem>>, vector<1x8x8xbf16>
    %71 = vector.shape_cast %70 : vector<1x8x8xbf16> to vector<8x8xbf16>
    %72 = vector.shape_cast %69 : vector<8x8xbf16> to vector<1x8x8xbf16>
    tpu.vector_store %arg6[%c0_53, %c0_54, %c8], %72 {strides = array<i32>} : memref<1x8x32xbf16, #tpu.memory_space<vmem>>, vector<1x8x8xbf16>,
    %c0_55 = arith.constant 0 : index
    %c0_56 = arith.constant 0 : index
    %c0_57 = arith.constant 0 : index
    %c2 = arith.constant 2 : index
    %c0_58 = arith.constant 0 : index
    %73 = vector.load %arg2[%c0_55, %c0_56, %c0_57, %c2, %c0_58] : memref<1x8x1x4x8xbf16, #tpu.memory_space<vmem>>, vector<1x8x1x1x8xbf16>
    %74 = vector.shape_cast %73 : vector<1x8x1x1x8xbf16> to vector<8x8xbf16>
    %c0_59 = arith.constant 0 : index
    %c0_60 = arith.constant 0 : index
    %c0_61 = arith.constant 0 : index
    %c2_62 = arith.constant 2 : index
    %c0_63 = arith.constant 0 : index
    %75 = vector.load %arg3[%c0_59, %c0_60, %c0_61, %c2_62, %c0_63] : memref<1x8x1x4x8xbf16, #tpu.memory_space<vmem>>, vector<1x8x1x1x8xbf16>
    %76 = vector.shape_cast %75 : vector<1x8x1x1x8xbf16> to vector<8x8xbf16>
    %c0_64 = arith.constant 0 : index
    %c0_65 = arith.constant 0 : index
    %c0_66 = arith.constant 0 : index
    %c2_67 = arith.constant 2 : index
    %c0_68 = arith.constant 0 : index
    %77 = vector.load %arg4[%c0_64, %c0_65, %c0_66, %c2_67, %c0_68] : memref<1x8x1x4x8xbf16, #tpu.memory_space<vmem>>, vector<1x8x1x1x8xbf16>
    %78 = vector.shape_cast %77 : vector<1x8x1x1x8xbf16> to vector<8x8xbf16>
    %cst_69 = arith.constant dense<0.000000e+00> : vector<8x8xf32>
    %79 = tpu.matmul %74, %76, %cst_69 {dimension_numbers = #tpu.dot_dimension_numbers<[1], [1], [0], [0], [0, 0, 1, 0], [], []>} : vector<8x8xbf16>, vector<8x8xbf16>, vector<8x8xf32> -> vector<8x8xf32>
    %cst_70 = arith.constant 0.353553385 : f32
    %80 = vector.broadcast %cst_70 : f32 to vector<8x8xf32>
    %81 = arith.mulf %79, %80 : vector<8x8xf32>
    %82 = vector.broadcast %1 : vector<1x8xf32> to vector<8x8xf32>
    %83 = arith.addf %81, %82 : vector<8x8xf32>
    %84 = arith.addf %83, %10 : vector<8x8xf32>
    %cst_71 = arith.constant dense<0xFF800000> : vector<8xf32>
    %85 = vector.multi_reduction <maximumf>, %84, %cst_71 [1] : vector<8x8xf32> to vector<8xf32>
    %86 = vector.shape_cast %85 : vector<8xf32> to vector<8x1xf32>
    %87 = vector.broadcast %86 : vector<8x1xf32> to vector<8x8xf32>
    %88 = arith.subf %84, %87 : vector<8x8xf32>
    %89 = math.exp %88 : vector<8x8xf32>
    %cst_72 = arith.constant dense<0.000000e+00> : vector<8xf32>
    %90 = vector.multi_reduction <add>, %89, %cst_72 [1] : vector<8x8xf32> to vector<8xf32>
    %91 = vector.shape_cast %90 : vector<8xf32> to vector<8x1xf32>
    %92 = vector.broadcast %91 : vector<8x1xf32> to vector<8x8xf32>
    %93 = arith.divf %89, %92 : vector<8x8xf32>
    %94 = arith.truncf %93 : vector<8x8xf32> to vector<8x8xbf16>
    %c0_73 = arith.constant 0 : index
    %c2_74 = arith.constant 2 : index
    %c0_75 = arith.constant 0 : index
    %c0_76 = arith.constant 0 : index
    %95 = vector.load %arg7[%c0_73, %c2_74, %c0_75, %c0_76] : memref<1x4x8x8xbf16, #tpu.memory_space<vmem>>, vector<1x1x8x8xbf16>
    %96 = vector.shape_cast %95 : vector<1x1x8x8xbf16> to vector<8x8xbf16>
    %97 = vector.shape_cast %94 : vector<8x8xbf16> to vector<1x1x8x8xbf16>
    tpu.vector_store %arg7[%c0_73, %c2_74, %c0_75, %c0_76], %97 {strides = array<i32>} : memref<1x4x8x8xbf16, #tpu.memory_space<vmem>>, vector<1x1x8x8xbf16>,
    %98 = arith.truncf %93 : vector<8x8xf32> to vector<8x8xbf16>
    %cst_77 = arith.constant dense<0.000000e+00> : vector<8x8xf32>
    %99 = tpu.matmul %98, %78, %cst_77 {dimension_numbers = #tpu.dot_dimension_numbers<[1], [0], [0], [1], [0, 0, 1, 1], [], []>} : vector<8x8xbf16>, vector<8x8xbf16>, vector<8x8xf32> -> vector<8x8xf32>
    %100 = arith.truncf %99 : vector<8x8xf32> to vector<8x8xbf16>
    %c0_78 = arith.constant 0 : index
    %c0_79 = arith.constant 0 : index
    %c16 = arith.constant 16 : index
    %101 = vector.load %arg6[%c0_78, %c0_79, %c16] : memref<1x8x32xbf16, #tpu.memory_space<vmem>>, vector<1x8x8xbf16>
    %102 = vector.shape_cast %101 : vector<1x8x8xbf16> to vector<8x8xbf16>
    %103 = vector.shape_cast %100 : vector<8x8xbf16> to vector<1x8x8xbf16>
    tpu.vector_store %arg6[%c0_78, %c0_79, %c16], %103 {strides = array<i32>} : memref<1x8x32xbf16, #tpu.memory_space<vmem>>, vector<1x8x8xbf16>,
    %c0_80 = arith.constant 0 : index
    %c0_81 = arith.constant 0 : index
    %c0_82 = arith.constant 0 : index
    %c3 = arith.constant 3 : index
    %c0_83 = arith.constant 0 : index
    %104 = vector.load %arg2[%c0_80, %c0_81, %c0_82, %c3, %c0_83] : memref<1x8x1x4x8xbf16, #tpu.memory_space<vmem>>, vector<1x8x1x1x8xbf16>
    %105 = vector.shape_cast %104 : vector<1x8x1x1x8xbf16> to vector<8x8xbf16>
    %c0_84 = arith.constant 0 : index
    %c0_85 = arith.constant 0 : index
    %c0_86 = arith.constant 0 : index
    %c3_87 = arith.constant 3 : index
    %c0_88 = arith.constant 0 : index
    %106 = vector.load %arg3[%c0_84, %c0_85, %c0_86, %c3_87, %c0_88] : memref<1x8x1x4x8xbf16, #tpu.memory_space<vmem>>, vector<1x8x1x1x8xbf16>
    %107 = vector.shape_cast %106 : vector<1x8x1x1x8xbf16> to vector<8x8xbf16>
    %c0_89 = arith.constant 0 : index
    %c0_90 = arith.constant 0 : index
    %c0_91 = arith.constant 0 : index
    %c3_92 = arith.constant 3 : index
    %c0_93 = arith.constant 0 : index
    %108 = vector.load %arg4[%c0_89, %c0_90, %c0_91, %c3_92, %c0_93] : memref<1x8x1x4x8xbf16, #tpu.memory_space<vmem>>, vector<1x8x1x1x8xbf16>
    %109 = vector.shape_cast %108 : vector<1x8x1x1x8xbf16> to vector<8x8xbf16>
    %cst_94 = arith.constant dense<0.000000e+00> : vector<8x8xf32>
    %110 = tpu.matmul %105, %107, %cst_94 {dimension_numbers = #tpu.dot_dimension_numbers<[1], [1], [0], [0], [0, 0, 1, 0], [], []>} : vector<8x8xbf16>, vector<8x8xbf16>, vector<8x8xf32> -> vector<8x8xf32>
    %cst_95 = arith.constant 0.353553385 : f32
    %111 = vector.broadcast %cst_95 : f32 to vector<8x8xf32>
    %112 = arith.mulf %110, %111 : vector<8x8xf32>
    %113 = vector.broadcast %1 : vector<1x8xf32> to vector<8x8xf32>
    %114 = arith.addf %112, %113 : vector<8x8xf32>
    %115 = arith.addf %114, %10 : vector<8x8xf32>
    %cst_96 = arith.constant dense<0xFF800000> : vector<8xf32>
    %116 = vector.multi_reduction <maximumf>, %115, %cst_96 [1] : vector<8x8xf32> to vector<8xf32>
    %117 = vector.shape_cast %116 : vector<8xf32> to vector<8x1xf32>
    %118 = vector.broadcast %117 : vector<8x1xf32> to vector<8x8xf32>
    %119 = arith.subf %115, %118 : vector<8x8xf32>
    %120 = math.exp %119 : vector<8x8xf32>
    %cst_97 = arith.constant dense<0.000000e+00> : vector<8xf32>
    %121 = vector.multi_reduction <add>, %120, %cst_97 [1] : vector<8x8xf32> to vector<8xf32>
    %122 = vector.shape_cast %121 : vector<8xf32> to vector<8x1xf32>
    %123 = vector.broadcast %122 : vector<8x1xf32> to vector<8x8xf32>
    %124 = arith.divf %120, %123 : vector<8x8xf32>
    %125 = arith.truncf %124 : vector<8x8xf32> to vector<8x8xbf16>
    %c0_98 = arith.constant 0 : index
    %c3_99 = arith.constant 3 : index
    %c0_100 = arith.constant 0 : index
    %c0_101 = arith.constant 0 : index
    %126 = vector.load %arg7[%c0_98, %c3_99, %c0_100, %c0_101] : memref<1x4x8x8xbf16, #tpu.memory_space<vmem>>, vector<1x1x8x8xbf16>
    %127 = vector.shape_cast %126 : vector<1x1x8x8xbf16> to vector<8x8xbf16>
    %128 = vector.shape_cast %125 : vector<8x8xbf16> to vector<1x1x8x8xbf16>
    tpu.vector_store %arg7[%c0_98, %c3_99, %c0_100, %c0_101], %128 {strides = array<i32>} : memref<1x4x8x8xbf16, #tpu.memory_space<vmem>>, vector<1x1x8x8xbf16>,
    %129 = arith.truncf %124 : vector<8x8xf32> to vector<8x8xbf16>
    %cst_102 = arith.constant dense<0.000000e+00> : vector<8x8xf32>
    %130 = tpu.matmul %129, %109, %cst_102 {dimension_numbers = #tpu.dot_dimension_numbers<[1], [0], [0], [1], [0, 0, 1, 1], [], []>} : vector<8x8xbf16>, vector<8x8xbf16>, vector<8x8xf32> -> vector<8x8xf32>
    %131 = arith.truncf %130 : vector<8x8xf32> to vector<8x8xbf16>
    %c0_103 = arith.constant 0 : index
    %c0_104 = arith.constant 0 : index
    %c24 = arith.constant 24 : index
    %132 = vector.load %arg6[%c0_103, %c0_104, %c24] : memref<1x8x32xbf16, #tpu.memory_space<vmem>>, vector<1x8x8xbf16>
    %133 = vector.shape_cast %132 : vector<1x8x8xbf16> to vector<8x8xbf16>
    %134 = vector.shape_cast %131 : vector<8x8xbf16> to vector<1x8x8xbf16>
    tpu.vector_store %arg6[%c0_103, %c0_104, %c24], %134 {strides = array<i32>} : memref<1x8x32xbf16, #tpu.memory_space<vmem>>, vector<1x8x8xbf16>,
    return
  }
  func.func @transform_0(%arg0: i32, %arg1: i32) -> (i32, i32, i32, i32, i32) {
    %c0_i32 = arith.constant 0 : i32
    %c0_i32_0 = arith.constant 0 : i32
    %c0_i32_1 = arith.constant 0 : i32
    %c0_i32_2 = arith.constant 0 : i32
    return %arg0, %arg1, %c0_i32, %c0_i32_0, %c0_i32_1 : i32, i32, i32, i32, i32
  }
  func.func @transform_1(%arg0: i32, %arg1: i32) -> (i32, i32, i32, i32, i32) {
    %c0_i32 = arith.constant 0 : i32
    %c1_i32 = arith.constant 1 : i32
    %c0_i32_0 = arith.constant 0 : i32
    %c0_i32_1 = arith.constant 0 : i32
    %c0_i32_2 = arith.constant 0 : i32
    return %arg0, %c0_i32, %c1_i32, %c0_i32_0, %c0_i32_1 : i32, i32, i32, i32, i32
  }
  func.func @transform_2(%arg0: i32, %arg1: i32) -> (i32, i32, i32, i32, i32) {
    %c0_i32 = arith.constant 0 : i32
    %c2_i32 = arith.constant 2 : i32
    %c0_i32_0 = arith.constant 0 : i32
    %c0_i32_1 = arith.constant 0 : i32
    %c0_i32_2 = arith.constant 0 : i32
    return %arg0, %c0_i32, %c2_i32, %c0_i32_0, %c0_i32_1 : i32, i32, i32, i32, i32
  }
  func.func @transform_3(%arg0: i32, %arg1: i32) -> (i32, i32, i32) {
    %c0_i32 = arith.constant 0 : i32
    %c0_i32_0 = arith.constant 0 : i32
    %c0_i32_1 = arith.constant 0 : i32
    %c0_i32_2 = arith.constant 0 : i32
    return %c0_i32, %c0_i32_0, %c0_i32_1 : i32, i32, i32
  }
  func.func @transform_4(%arg0: i32, %arg1: i32) -> (i32, i32, i32) {
    %c0_i32 = arith.constant 0 : i32
    %c0_i32_0 = arith.constant 0 : i32
    return %arg0, %arg1, %c0_i32 : i32, i32, i32
  }
  func.func @transform_5(%arg0: i32, %arg1: i32) -> (i32, i32, i32, i32) {
    %c0_i32 = arith.constant 0 : i32
    %c0_i32_0 = arith.constant 0 : i32
    %c0_i32_1 = arith.constant 0 : i32
    return %arg0, %c0_i32, %arg1, %c0_i32_0 : i32, i32, i32, i32
  }
}

module attributes {stable_mosaic.version = 11 : i64} {
  func.func @kernel(%arg0: i32, %arg1: i32, %arg2: memref<16x32xf32, #tpu.memory_space<vmem>>, %arg3: memref<32x32xbf16, #tpu.memory_space<vmem>>, %arg4: memref<1x32xf32, #tpu.memory_space<vmem>>, %arg5: memref<16x32xbf16, #tpu.memory_space<vmem>>) attributes {dimension_semantics = [#tpu.dimension_semantics<parallel>, #tpu.dimension_semantics<parallel>], iteration_bounds = array<i64: 1, 1>, scalar_prefetch = 0 : i64, scratch_operands = 0 : i64, tpu.core_type = #tpu.core_type<tc>, window_params = [{transform_indices = @transform_0, window_bounds = array<i64: 16, 32>}, {transform_indices = @transform_1, window_bounds = array<i64: 32, 32>}, {transform_indices = @transform_2, window_bounds = array<i64: 1, 32>}, {transform_indices = @transform_3, window_bounds = array<i64: 16, 32>}]} {
    %c0 = arith.constant 0 : index
    %c0_0 = arith.constant 0 : index
    %0 = vector.load %arg2[%c0, %c0_0] : memref<16x32xf32, #tpu.memory_space<vmem>>, vector<16x32xf32>
    %1 = arith.truncf %0 : vector<16x32xf32> to vector<16x32xbf16>
    %c0_1 = arith.constant 0 : index
    %c0_2 = arith.constant 0 : index
    %2 = vector.load %arg3[%c0_1, %c0_2] : memref<32x32xbf16, #tpu.memory_space<vmem>>, vector<32x32xbf16>
    %cst = arith.constant dense<0.000000e+00> : vector<16x32xf32>
    %3 = tpu.matmul %1, %2, %cst {dimension_numbers = #tpu.dot_dimension_numbers<[1], [0], [0], [1], [0, 0, 1, 1], [], []>} : vector<16x32xbf16>, vector<32x32xbf16>, vector<16x32xf32> -> vector<16x32xf32>
    %c0_3 = arith.constant 0 : index
    %c0_4 = arith.constant 0 : index
    %4 = vector.load %arg4[%c0_3, %c0_4] : memref<1x32xf32, #tpu.memory_space<vmem>>, vector<1x32xf32>
    %5 = vector.broadcast %4 : vector<1x32xf32> to vector<16x32xf32>
    %6 = arith.addf %3, %5 : vector<16x32xf32>
    %7 = arith.truncf %6 : vector<16x32xf32> to vector<16x32xbf16>
    %c0_5 = arith.constant 0 : index
    %c0_6 = arith.constant 0 : index
    %8 = vector.load %arg5[%c0_5, %c0_6] : memref<16x32xbf16, #tpu.memory_space<vmem>>, vector<16x32xbf16>
    tpu.vector_store %arg5[%c0_5, %c0_6], %7 {strides = array<i32>} : memref<16x32xbf16, #tpu.memory_space<vmem>>, vector<16x32xbf16>,
    return
  }
  func.func @transform_0(%arg0: i32, %arg1: i32) -> (i32, i32) {
    %c0_i32 = arith.constant 0 : i32
    %c0_i32_0 = arith.constant 0 : i32
    return %arg0, %c0_i32 : i32, i32
  }
  func.func @transform_1(%arg0: i32, %arg1: i32) -> (i32, i32) {
    %c0_i32 = arith.constant 0 : i32
    %c0_i32_0 = arith.constant 0 : i32
    return %c0_i32, %arg1 : i32, i32
  }
  func.func @transform_2(%arg0: i32, %arg1: i32) -> (i32, i32) {
    %c0_i32 = arith.constant 0 : i32
    %c0_i32_0 = arith.constant 0 : i32
    return %c0_i32, %arg1 : i32, i32
  }
  func.func @transform_3(%arg0: i32, %arg1: i32) -> (i32, i32) {
    %c0_i32 = arith.constant 0 : i32
    return %arg0, %arg1 : i32, i32
  }
}

module attributes {stable_mosaic.version = 11 : i64} {
  func.func @kernel(%arg0: i32, %arg1: i32, %arg2: memref<16x32xf32, #tpu.memory_space<vmem>>, %arg3: memref<32x64xbf16, #tpu.memory_space<vmem>>, %arg4: memref<16x64xf32, #tpu.memory_space<vmem>>) attributes {dimension_semantics = [#tpu.dimension_semantics<parallel>, #tpu.dimension_semantics<parallel>], iteration_bounds = array<i64: 1, 1>, scalar_prefetch = 0 : i64, scratch_operands = 0 : i64, tpu.core_type = #tpu.core_type<tc>, window_params = [{transform_indices = @transform_0, window_bounds = array<i64: 16, 32>}, {transform_indices = @transform_1, window_bounds = array<i64: 32, 64>}, {transform_indices = @transform_2, window_bounds = array<i64: 16, 64>}]} {
    %c0 = arith.constant 0 : index
    %c0_0 = arith.constant 0 : index
    %0 = vector.load %arg2[%c0, %c0_0] : memref<16x32xf32, #tpu.memory_space<vmem>>, vector<16x32xf32>
    %1 = arith.truncf %0 : vector<16x32xf32> to vector<16x32xbf16>
    %c0_1 = arith.constant 0 : index
    %c0_2 = arith.constant 0 : index
    %2 = vector.load %arg3[%c0_1, %c0_2] : memref<32x64xbf16, #tpu.memory_space<vmem>>, vector<32x64xbf16>
    %cst = arith.constant dense<0.000000e+00> : vector<16x64xf32>
    %3 = tpu.matmul %1, %2, %cst {dimension_numbers = #tpu.dot_dimension_numbers<[1], [0], [0], [1], [0, 0, 1, 1], [], []>} : vector<16x32xbf16>, vector<32x64xbf16>, vector<16x64xf32> -> vector<16x64xf32>
    %c0_3 = arith.constant 0 : index
    %c0_4 = arith.constant 0 : index
    %4 = vector.load %arg4[%c0_3, %c0_4] : memref<16x64xf32, #tpu.memory_space<vmem>>, vector<16x64xf32>
    tpu.vector_store %arg4[%c0_3, %c0_4], %3 {strides = array<i32>} : memref<16x64xf32, #tpu.memory_space<vmem>>, vector<16x64xf32>,
    return
  }
  func.func @transform_0(%arg0: i32, %arg1: i32) -> (i32, i32) {
    %c0_i32 = arith.constant 0 : i32
    %c0_i32_0 = arith.constant 0 : i32
    return %arg0, %c0_i32 : i32, i32
  }
  func.func @transform_1(%arg0: i32, %arg1: i32) -> (i32, i32) {
    %c0_i32 = arith.constant 0 : i32
    %c0_i32_0 = arith.constant 0 : i32
    return %c0_i32, %arg1 : i32, i32
  }
  func.func @transform_2(%arg0: i32, %arg1: i32) -> (i32, i32) {
    %c0_i32 = arith.constant 0 : i32
    return %arg0, %arg1 : i32, i32
  }
}

module attributes {stable_mosaic.version = 11 : i64} {
  func.func @kernel(%arg0: i32, %arg1: i32, %arg2: memref<1x8x1x4x8xbf16, #tpu.memory_space<vmem>>, %arg3: memref<1x8x1x4x8xbf16, #tpu.memory_space<vmem>>, %arg4: memref<1x8x1x4x8xbf16, #tpu.memory_space<vmem>>, %arg5: memref<1x1x8xf32, #tpu.memory_space<vmem>>, %arg6: memref<1x8x32xbf16, #tpu.memory_space<vmem>>, %arg7: memref<1x4x8x8xbf16, #tpu.memory_space<vmem>>) attributes {dimension_semantics = [#tpu.dimension_semantics<parallel>, #tpu.dimension_semantics<parallel>], iteration_bounds = array<i64: 2, 1>, scalar_prefetch = 0 : i64, scratch_operands = 0 : i64, tpu.core_type = #tpu.core_type<tc>, window_params = [{transform_indices = @transform_0, window_bounds = array<i64: 1, 8, 1, 4, 8>}, {transform_indices = @transform_1, window_bounds = array<i64: 1, 8, 1, 4, 8>}, {transform_indices = @transform_2, window_bounds = array<i64: 1, 8, 1, 4, 8>}, {pipeline_mode = #tpu.pipeline_mode<synchronous>, transform_indices = @transform_3, window_bounds = array<i64: 1, 1, 8>}, {transform_indices = @transform_4, window_bounds = array<i64: 1, 8, 32>}, {transform_indices = @transform_5, window_bounds = array<i64: 1, 4, 8, 8>}]} {
    %c0 = arith.constant 0 : index
    %c0_0 = arith.constant 0 : index
    %c0_1 = arith.constant 0 : index
    %0 = vector.load %arg5[%c0, %c0_0, %c0_1] : memref<1x1x8xf32, #tpu.memory_space<vmem>>, vector<1x1x8xf32>
    %1 = vector.shape_cast %0 : vector<1x1x8xf32> to vector<1x8xf32>
    %c0_2 = arith.constant 0 : index
    %c0_3 = arith.constant 0 : index
    %c0_4 = arith.constant 0 : index
    %c0_5 = arith.constant 0 : index
    %c0_6 = arith.constant 0 : index
    %2 = vector.load %arg2[%c0_2, %c0_3, %c0_4, %c0_5, %c0_6] : memref<1x8x1x4x8xbf16, #tpu.memory_space<vmem>>, vector<1x8x1x1x8xbf16>
    %3 = vector.shape_cast %2 : vector<1x8x1x1x8xbf16> to vector<8x8xbf16>
    %c0_7 = arith.constant 0 : index
    %c0_8 = arith.constant 0 : index
    %c0_9 = arith.constant 0 : index
    %c0_10 = arith.constant 0 : index
    %c0_11 = arith.constant 0 : index
    %4 = vector.load %arg3[%c0_7, %c0_8, %c0_9, %c0_10, %c0_11] : memref<1x8x1x4x8xbf16, #tpu.memory_space<vmem>>, vector<1x8x1x1x8xbf16>
    %5 = vector.shape_cast %4 : vector<1x8x1x1x8xbf16> to vector<8x8xbf16>
    %c0_12 = arith.constant 0 : index
    %c0_13 = arith.constant 0 : index
    %c0_14 = arith.constant 0 : index
    %c0_15 = arith.constant 0 : index
    %c0_16 = arith.constant 0 : index
    %6 = vector.load %arg4[%c0_12, %c0_13, %c0_14, %c0_15, %c0_16] : memref<1x8x1x4x8xbf16, #tpu.memory_space<vmem>>, vector<1x8x1x1x8xbf16>
    %7 = vector.shape_cast %6 : vector<1x8x1x1x8xbf16> to vector<8x8xbf16>
    %cst = arith.constant dense<0.000000e+00> : vector<8x8xf32>
    %8 = tpu.matmul %3, %5, %cst {dimension_numbers = #tpu.dot_dimension_numbers<[1], [1], [0], [0], [0, 0, 1, 0], [], []>} : vector<8x8xbf16>, vector<8x8xbf16>, vector<8x8xf32> -> vector<8x8xf32>
    %cst_17 = arith.constant 0.353553385 : f32
    %9 = vector.broadcast %cst_17 : f32 to vector<8x8xf32>
    %10 = arith.mulf %8, %9 : vector<8x8xf32>
    %11 = vector.broadcast %1 : vector<1x8xf32> to vector<8x8xf32>
    %12 = arith.addf %10, %11 : vector<8x8xf32>
    %cst_18 = arith.constant dense<0xFF800000> : vector<8xf32>
    %13 = vector.multi_reduction <maximumf>, %12, %cst_18 [1] : vector<8x8xf32> to vector<8xf32>
    %14 = vector.shape_cast %13 : vector<8xf32> to vector<8x1xf32>
    %15 = vector.broadcast %14 : vector<8x1xf32> to vector<8x8xf32>
    %16 = arith.subf %12, %15 : vector<8x8xf32>
    %17 = math.exp %16 : vector<8x8xf32>
    %cst_19 = arith.constant dense<0.000000e+00> : vector<8xf32>
    %18 = vector.multi_reduction <add>, %17, %cst_19 [1] : vector<8x8xf32> to vector<8xf32>
    %19 = vector.shape_cast %18 : vector<8xf32> to vector<8x1xf32>
    %20 = vector.broadcast %19 : vector<8x1xf32> to vector<8x8xf32>
    %21 = arith.divf %17, %20 : vector<8x8xf32>
    %22 = arith.truncf %21 : vector<8x8xf32> to vector<8x8xbf16>
    %c0_20 = arith.constant 0 : index
    %c0_21 = arith.constant 0 : index
    %c0_22 = arith.constant 0 : index
    %c0_23 = arith.constant 0 : index
    %23 = vector.load %arg7[%c0_20, %c0_21, %c0_22, %c0_23] : memref<1x4x8x8xbf16, #tpu.memory_space<vmem>>, vector<1x1x8x8xbf16>
    %24 = vector.shape_cast %23 : vector<1x1x8x8xbf16> to vector<8x8xbf16>
    %25 = vector.shape_cast %22 : vector<8x8xbf16> to vector<1x1x8x8xbf16>
    tpu.vector_store %arg7[%c0_20, %c0_21, %c0_22, %c0_23], %25 {strides = array<i32>} : memref<1x4x8x8xbf16, #tpu.memory_space<vmem>>, vector<1x1x8x8xbf16>,
    %26 = arith.truncf %21 : vector<8x8xf32> to vector<8x8xbf16>
    %cst_24 = arith.constant dense<0.000000e+00> : vector<8x8xf32>
    %27 = tpu.matmul %26, %7, %cst_24 {dimension_numbers = #tpu.dot_dimension_numbers<[1], [0], [0], [1], [0, 0, 1, 1], [], []>} : vector<8x8xbf16>, vector<8x8xbf16>, vector<8x8xf32> -> vector<8x8xf32>
    %28 = arith.truncf %27 : vector<8x8xf32> to vector<8x8xbf16>
    %c0_25 = arith.constant 0 : index
    %c0_26 = arith.constant 0 : index
    %c0_27 = arith.constant 0 : index
    %29 = vector.load %arg6[%c0_25, %c0_26, %c0_27] : memref<1x8x32xbf16, #tpu.memory_space<vmem>>, vector<1x8x8xbf16>
    %30 = vector.shape_cast %29 : vector<1x8x8xbf16> to vector<8x8xbf16>
    %31 = vector.shape_cast %28 : vector<8x8xbf16> to vector<1x8x8xbf16>
    tpu.vector_store %arg6[%c0_25, %c0_26, %c0_27], %31 {strides = array<i32>} : memref<1x8x32xbf16, #tpu.memory_space<vmem>>, vector<1x8x8xbf16>,
    %c0_28 = arith.constant 0 : index
    %c0_29 = arith.constant 0 : index
    %c0_30 = arith.constant 0 : index
    %c1 = arith.constant 1 : index
    %c0_31 = arith.constant 0 : index
    %32 = vector.load %arg2[%c0_28, %c0_29, %c0_30, %c1, %c0_31] : memref<1x8x1x4x8xbf16, #tpu.memory_space<vmem>>, vector<1x8x1x1x8xbf16>
    %33 = vector.shape_cast %32 : vector<1x8x1x1x8xbf16> to vector<8x8xbf16>
    %c0_32 = arith.constant 0 : index
    %c0_33 = arith.constant 0 : index
    %c0_34 = arith.constant 0 : index
    %c1_35 = arith.constant 1 : index
    %c0_36 = arith.constant 0 : index
    %34 = vector.load %arg3[%c0_32, %c0_33, %c0_34, %c1_35, %c0_36] : memref<1x8x1x4x8xbf16, #tpu.memory_space<vmem>>, vector<1x8x1x1x8xbf16>
    %35 = vector.shape_cast %34 : vector<1x8x1x1x8xbf16> to vector<8x8xbf16>
    %c0_37 = arith.constant 0 : index
    %c0_38 = arith.constant 0 : index
    %c0_39 = arith.constant 0 : index
    %c1_40 = arith.constant 1 : index
    %c0_41 = arith.constant 0 : index
    %36 = vector.load %arg4[%c0_37, %c0_38, %c0_39, %c1_40, %c0_41] : memref<1x8x1x4x8xbf16, #tpu.memory_space<vmem>>, vector<1x8x1x1x8xbf16>
    %37 = vector.shape_cast %36 : vector<1x8x1x1x8xbf16> to vector<8x8xbf16>
    %cst_42 = arith.constant dense<0.000000e+00> : vector<8x8xf32>
    %38 = tpu.matmul %33, %35, %cst_42 {dimension_numbers = #tpu.dot_dimension_numbers<[1], [1], [0], [0], [0, 0, 1, 0], [], []>} : vector<8x8xbf16>, vector<8x8xbf16>, vector<8x8xf32> -> vector<8x8xf32>
    %cst_43 = arith.constant 0.353553385 : f32
    %39 = vector.broadcast %cst_43 : f32 to vector<8x8xf32>
    %40 = arith.mulf %38, %39 : vector<8x8xf32>
    %41 = vector.broadcast %1 : vector<1x8xf32> to vector<8x8xf32>
    %42 = arith.addf %40, %41 : vector<8x8xf32>
    %cst_44 = arith.constant dense<0xFF800000> : vector<8xf32>
    %43 = vector.multi_reduction <maximumf>, %42, %cst_44 [1] : vector<8x8xf32> to vector<8xf32>
    %44 = vector.shape_cast %43 : vector<8xf32> to vector<8x1xf32>
    %45 = vector.broadcast %44 : vector<8x1xf32> to vector<8x8xf32>
    %46 = arith.subf %42, %45 : vector<8x8xf32>
    %47 = math.exp %46 : vector<8x8xf32>
    %cst_45 = arith.constant dense<0.000000e+00> : vector<8xf32>
    %48 = vector.multi_reduction <add>, %47, %cst_45 [1] : vector<8x8xf32> to vector<8xf32>
    %49 = vector.shape_cast %48 : vector<8xf32> to vector<8x1xf32>
    %50 = vector.broadcast %49 : vector<8x1xf32> to vector<8x8xf32>
    %51 = arith.divf %47, %50 : vector<8x8xf32>
    %52 = arith.truncf %51 : vector<8x8xf32> to vector<8x8xbf16>
    %c0_46 = arith.constant 0 : index
    %c1_47 = arith.constant 1 : index
    %c0_48 = arith.constant 0 : index
    %c0_49 = arith.constant 0 : index
    %53 = vector.load %arg7[%c0_46, %c1_47, %c0_48, %c0_49] : memref<1x4x8x8xbf16, #tpu.memory_space<vmem>>, vector<1x1x8x8xbf16>
    %54 = vector.shape_cast %53 : vector<1x1x8x8xbf16> to vector<8x8xbf16>
    %55 = vector.shape_cast %52 : vector<8x8xbf16> to vector<1x1x8x8xbf16>
    tpu.vector_store %arg7[%c0_46, %c1_47, %c0_48, %c0_49], %55 {strides = array<i32>} : memref<1x4x8x8xbf16, #tpu.memory_space<vmem>>, vector<1x1x8x8xbf16>,
    %56 = arith.truncf %51 : vector<8x8xf32> to vector<8x8xbf16>
    %cst_50 = arith.constant dense<0.000000e+00> : vector<8x8xf32>
    %57 = tpu.matmul %56, %37, %cst_50 {dimension_numbers = #tpu.dot_dimension_numbers<[1], [0], [0], [1], [0, 0, 1, 1], [], []>} : vector<8x8xbf16>, vector<8x8xbf16>, vector<8x8xf32> -> vector<8x8xf32>
    %58 = arith.truncf %57 : vector<8x8xf32> to vector<8x8xbf16>
    %c0_51 = arith.constant 0 : index
    %c0_52 = arith.constant 0 : index
    %c8 = arith.constant 8 : index
    %59 = vector.load %arg6[%c0_51, %c0_52, %c8] : memref<1x8x32xbf16, #tpu.memory_space<vmem>>, vector<1x8x8xbf16>
    %60 = vector.shape_cast %59 : vector<1x8x8xbf16> to vector<8x8xbf16>
    %61 = vector.shape_cast %58 : vector<8x8xbf16> to vector<1x8x8xbf16>
    tpu.vector_store %arg6[%c0_51, %c0_52, %c8], %61 {strides = array<i32>} : memref<1x8x32xbf16, #tpu.memory_space<vmem>>, vector<1x8x8xbf16>,
    %c0_53 = arith.constant 0 : index
    %c0_54 = arith.constant 0 : index
    %c0_55 = arith.constant 0 : index
    %c2 = arith.constant 2 : index
    %c0_56 = arith.constant 0 : index
    %62 = vector.load %arg2[%c0_53, %c0_54, %c0_55, %c2, %c0_56] : memref<1x8x1x4x8xbf16, #tpu.memory_space<vmem>>, vector<1x8x1x1x8xbf16>
    %63 = vector.shape_cast %62 : vector<1x8x1x1x8xbf16> to vector<8x8xbf16>
    %c0_57 = arith.constant 0 : index
    %c0_58 = arith.constant 0 : index
    %c0_59 = arith.constant 0 : index
    %c2_60 = arith.constant 2 : index
    %c0_61 = arith.constant 0 : index
    %64 = vector.load %arg3[%c0_57, %c0_58, %c0_59, %c2_60, %c0_61] : memref<1x8x1x4x8xbf16, #tpu.memory_space<vmem>>, vector<1x8x1x1x8xbf16>
    %65 = vector.shape_cast %64 : vector<1x8x1x1x8xbf16> to vector<8x8xbf16>
    %c0_62 = arith.constant 0 : index
    %c0_63 = arith.constant 0 : index
    %c0_64 = arith.constant 0 : index
    %c2_65 = arith.constant 2 : index
    %c0_66 = arith.constant 0 : index
    %66 = vector.load %arg4[%c0_62, %c0_63, %c0_64, %c2_65, %c0_66] : memref<1x8x1x4x8xbf16, #tpu.memory_space<vmem>>, vector<1x8x1x1x8xbf16>
    %67 = vector.shape_cast %66 : vector<1x8x1x1x8xbf16> to vector<8x8xbf16>
    %cst_67 = arith.constant dense<0.000000e+00> : vector<8x8xf32>
    %68 = tpu.matmul %63, %65, %cst_67 {dimension_numbers = #tpu.dot_dimension_numbers<[1], [1], [0], [0], [0, 0, 1, 0], [], []>} : vector<8x8xbf16>, vector<8x8xbf16>, vector<8x8xf32> -> vector<8x8xf32>
    %cst_68 = arith.constant 0.353553385 : f32
    %69 = vector.broadcast %cst_68 : f32 to vector<8x8xf32>
    %70 = arith.mulf %68, %69 : vector<8x8xf32>
    %71 = vector.broadcast %1 : vector<1x8xf32> to vector<8x8xf32>
    %72 = arith.addf %70, %71 : vector<8x8xf32>
    %cst_69 = arith.constant dense<0xFF800000> : vector<8xf32>
    %73 = vector.multi_reduction <maximumf>, %72, %cst_69 [1] : vector<8x8xf32> to vector<8xf32>
    %74 = vector.shape_cast %73 : vector<8xf32> to vector<8x1xf32>
    %75 = vector.broadcast %74 : vector<8x1xf32> to vector<8x8xf32>
    %76 = arith.subf %72, %75 : vector<8x8xf32>
    %77 = math.exp %76 : vector<8x8xf32>
    %cst_70 = arith.constant dense<0.000000e+00> : vector<8xf32>
    %78 = vector.multi_reduction <add>, %77, %cst_70 [1] : vector<8x8xf32> to vector<8xf32>
    %79 = vector.shape_cast %78 : vector<8xf32> to vector<8x1xf32>
    %80 = vector.broadcast %79 : vector<8x1xf32> to vector<8x8xf32>
    %81 = arith.divf %77, %80 : vector<8x8xf32>
    %82 = arith.truncf %81 : vector<8x8xf32> to vector<8x8xbf16>
    %c0_71 = arith.constant 0 : index
    %c2_72 = arith.constant 2 : index
    %c0_73 = arith.constant 0 : index
    %c0_74 = arith.constant 0 : index
    %83 = vector.load %arg7[%c0_71, %c2_72, %c0_73, %c0_74] : memref<1x4x8x8xbf16, #tpu.memory_space<vmem>>, vector<1x1x8x8xbf16>
    %84 = vector.shape_cast %83 : vector<1x1x8x8xbf16> to vector<8x8xbf16>
    %85 = vector.shape_cast %82 : vector<8x8xbf16> to vector<1x1x8x8xbf16>
    tpu.vector_store %arg7[%c0_71, %c2_72, %c0_73, %c0_74], %85 {strides = array<i32>} : memref<1x4x8x8xbf16, #tpu.memory_space<vmem>>, vector<1x1x8x8xbf16>,
    %86 = arith.truncf %81 : vector<8x8xf32> to vector<8x8xbf16>
    %cst_75 = arith.constant dense<0.000000e+00> : vector<8x8xf32>
    %87 = tpu.matmul %86, %67, %cst_75 {dimension_numbers = #tpu.dot_dimension_numbers<[1], [0], [0], [1], [0, 0, 1, 1], [], []>} : vector<8x8xbf16>, vector<8x8xbf16>, vector<8x8xf32> -> vector<8x8xf32>
    %88 = arith.truncf %87 : vector<8x8xf32> to vector<8x8xbf16>
    %c0_76 = arith.constant 0 : index
    %c0_77 = arith.constant 0 : index
    %c16 = arith.constant 16 : index
    %89 = vector.load %arg6[%c0_76, %c0_77, %c16] : memref<1x8x32xbf16, #tpu.memory_space<vmem>>, vector<1x8x8xbf16>
    %90 = vector.shape_cast %89 : vector<1x8x8xbf16> to vector<8x8xbf16>
    %91 = vector.shape_cast %88 : vector<8x8xbf16> to vector<1x8x8xbf16>
    tpu.vector_store %arg6[%c0_76, %c0_77, %c16], %91 {strides = array<i32>} : memref<1x8x32xbf16, #tpu.memory_space<vmem>>, vector<1x8x8xbf16>,
    %c0_78 = arith.constant 0 : index
    %c0_79 = arith.constant 0 : index
    %c0_80 = arith.constant 0 : index
    %c3 = arith.constant 3 : index
    %c0_81 = arith.constant 0 : index
    %92 = vector.load %arg2[%c0_78, %c0_79, %c0_80, %c3, %c0_81] : memref<1x8x1x4x8xbf16, #tpu.memory_space<vmem>>, vector<1x8x1x1x8xbf16>
    %93 = vector.shape_cast %92 : vector<1x8x1x1x8xbf16> to vector<8x8xbf16>
    %c0_82 = arith.constant 0 : index
    %c0_83 = arith.constant 0 : index
    %c0_84 = arith.constant 0 : index
    %c3_85 = arith.constant 3 : index
    %c0_86 = arith.constant 0 : index
    %94 = vector.load %arg3[%c0_82, %c0_83, %c0_84, %c3_85, %c0_86] : memref<1x8x1x4x8xbf16, #tpu.memory_space<vmem>>, vector<1x8x1x1x8xbf16>
    %95 = vector.shape_cast %94 : vector<1x8x1x1x8xbf16> to vector<8x8xbf16>
    %c0_87 = arith.constant 0 : index
    %c0_88 = arith.constant 0 : index
    %c0_89 = arith.constant 0 : index
    %c3_90 = arith.constant 3 : index
    %c0_91 = arith.constant 0 : index
    %96 = vector.load %arg4[%c0_87, %c0_88, %c0_89, %c3_90, %c0_91] : memref<1x8x1x4x8xbf16, #tpu.memory_space<vmem>>, vector<1x8x1x1x8xbf16>
    %97 = vector.shape_cast %96 : vector<1x8x1x1x8xbf16> to vector<8x8xbf16>
    %cst_92 = arith.constant dense<0.000000e+00> : vector<8x8xf32>
    %98 = tpu.matmul %93, %95, %cst_92 {dimension_numbers = #tpu.dot_dimension_numbers<[1], [1], [0], [0], [0, 0, 1, 0], [], []>} : vector<8x8xbf16>, vector<8x8xbf16>, vector<8x8xf32> -> vector<8x8xf32>
    %cst_93 = arith.constant 0.353553385 : f32
    %99 = vector.broadcast %cst_93 : f32 to vector<8x8xf32>
    %100 = arith.mulf %98, %99 : vector<8x8xf32>
    %101 = vector.broadcast %1 : vector<1x8xf32> to vector<8x8xf32>
    %102 = arith.addf %100, %101 : vector<8x8xf32>
    %cst_94 = arith.constant dense<0xFF800000> : vector<8xf32>
    %103 = vector.multi_reduction <maximumf>, %102, %cst_94 [1] : vector<8x8xf32> to vector<8xf32>
    %104 = vector.shape_cast %103 : vector<8xf32> to vector<8x1xf32>
    %105 = vector.broadcast %104 : vector<8x1xf32> to vector<8x8xf32>
    %106 = arith.subf %102, %105 : vector<8x8xf32>
    %107 = math.exp %106 : vector<8x8xf32>
    %cst_95 = arith.constant dense<0.000000e+00> : vector<8xf32>
    %108 = vector.multi_reduction <add>, %107, %cst_95 [1] : vector<8x8xf32> to vector<8xf32>
    %109 = vector.shape_cast %108 : vector<8xf32> to vector<8x1xf32>
    %110 = vector.broadcast %109 : vector<8x1xf32> to vector<8x8xf32>
    %111 = arith.divf %107, %110 : vector<8x8xf32>
    %112 = arith.truncf %111 : vector<8x8xf32> to vector<8x8xbf16>
    %c0_96 = arith.constant 0 : index
    %c3_97 = arith.constant 3 : index
    %c0_98 = arith.constant 0 : index
    %c0_99 = arith.constant 0 : index
    %113 = vector.load %arg7[%c0_96, %c3_97, %c0_98, %c0_99] : memref<1x4x8x8xbf16, #tpu.memory_space<vmem>>, vector<1x1x8x8xbf16>
    %114 = vector.shape_cast %113 : vector<1x1x8x8xbf16> to vector<8x8xbf16>
    %115 = vector.shape_cast %112 : vector<8x8xbf16> to vector<1x1x8x8xbf16>
    tpu.vector_store %arg7[%c0_96, %c3_97, %c0_98, %c0_99], %115 {strides = array<i32>} : memref<1x4x8x8xbf16, #tpu.memory_space<vmem>>, vector<1x1x8x8xbf16>,
    %116 = arith.truncf %111 : vector<8x8xf32> to vector<8x8xbf16>
    %cst_100 = arith.constant dense<0.000000e+00> : vector<8x8xf32>
    %117 = tpu.matmul %116, %97, %cst_100 {dimension_numbers = #tpu.dot_dimension_numbers<[1], [0], [0], [1], [0, 0, 1, 1], [], []>} : vector<8x8xbf16>, vector<8x8xbf16>, vector<8x8xf32> -> vector<8x8xf32>
    %118 = arith.truncf %117 : vector<8x8xf32> to vector<8x8xbf16>
    %c0_101 = arith.constant 0 : index
    %c0_102 = arith.constant 0 : index
    %c24 = arith.constant 24 : index
    %119 = vector.load %arg6[%c0_101, %c0_102, %c24] : memref<1x8x32xbf16, #tpu.memory_space<vmem>>, vector<1x8x8xbf16>
    %120 = vector.shape_cast %119 : vector<1x8x8xbf16> to vector<8x8xbf16>
    %121 = vector.shape_cast %118 : vector<8x8xbf16> to vector<1x8x8xbf16>
    tpu.vector_store %arg6[%c0_101, %c0_102, %c24], %121 {strides = array<i32>} : memref<1x8x32xbf16, #tpu.memory_space<vmem>>, vector<1x8x8xbf16>,
    return
  }
  func.func @transform_0(%arg0: i32, %arg1: i32) -> (i32, i32, i32, i32, i32) {
    %c0_i32 = arith.constant 0 : i32
    %c0_i32_0 = arith.constant 0 : i32
    %c0_i32_1 = arith.constant 0 : i32
    %c0_i32_2 = arith.constant 0 : i32
    return %arg0, %arg1, %c0_i32, %c0_i32_0, %c0_i32_1 : i32, i32, i32, i32, i32
  }
  func.func @transform_1(%arg0: i32, %arg1: i32) -> (i32, i32, i32, i32, i32) {
    %c0_i32 = arith.constant 0 : i32
    %c0_i32_0 = arith.constant 0 : i32
    %c0_i32_1 = arith.constant 0 : i32
    %c0_i32_2 = arith.constant 0 : i32
    %c0_i32_3 = arith.constant 0 : i32
    return %arg0, %c0_i32, %c0_i32_0, %c0_i32_1, %c0_i32_2 : i32, i32, i32, i32, i32
  }
  func.func @transform_2(%arg0: i32, %arg1: i32) -> (i32, i32, i32, i32, i32) {
    %c0_i32 = arith.constant 0 : i32
    %c1_i32 = arith.constant 1 : i32
    %c0_i32_0 = arith.constant 0 : i32
    %c0_i32_1 = arith.constant 0 : i32
    %c0_i32_2 = arith.constant 0 : i32
    return %arg0, %c0_i32, %c1_i32, %c0_i32_0, %c0_i32_1 : i32, i32, i32, i32, i32
  }
  func.func @transform_3(%arg0: i32, %arg1: i32) -> (i32, i32, i32) {
    %c0_i32 = arith.constant 0 : i32
    %c0_i32_0 = arith.constant 0 : i32
    %c0_i32_1 = arith.constant 0 : i32
    %c0_i32_2 = arith.constant 0 : i32
    return %c0_i32, %c0_i32_0, %c0_i32_1 : i32, i32, i32
  }
  func.func @transform_4(%arg0: i32, %arg1: i32) -> (i32, i32, i32) {
    %c0_i32 = arith.constant 0 : i32
    %c0_i32_0 = arith.constant 0 : i32
    return %arg0, %arg1, %c0_i32 : i32, i32, i32
  }
  func.func @transform_5(%arg0: i32, %arg1: i32) -> (i32, i32, i32, i32) {
    %c0_i32 = arith.constant 0 : i32
    %c0_i32_0 = arith.constant 0 : i32
    %c0_i32_1 = arith.constant 0 : i32
    return %arg0, %c0_i32, %arg1, %c0_i32_0 : i32, i32, i32, i32
  }
}

</mosaic_0001>

<bundles_post_ra>
// kernel: _lambda_.27
= control target key start
LH: loop header
LB: loop body
LE: loop exit
PB: predicated region body
PF: predicated region fallthrough
CT: control target
= control target key end

     0   :  { %v181_v0 = vmov 0.0   ;;  %vm182_vm0 = vmmov 0   ;;  %vm54_vm1 = vcmask 261120   ;;  %s255_s2 = inlined_call_operand.vmem [shape: bf16[32,32], index: 2, kind: input, shape index: {}]   ;;  %s256_s0 = inlined_call_operand.vmem [shape: bf16[16,32], index: 0, kind: input, shape index: {}]   ;;  %s257_s3 = inlined_call_operand.vmem [shape: f32[1,32], index: 3, kind: input, shape index: {}]   ;;  %s258_s1 = inlined_call_operand.vmem [shape: f32[16,32], index: 1, kind: input, shape index: {}]   ;;  %s259_s4 = inlined_call_operand.vmem [shape: f32[1,32], index: 4, kind: input, shape index: {}]   ;;  %s260_s5 = inlined_call_operand.vmem [shape: f32[1,32], index: 5, kind: input, shape index: {}]   ;;  %s261_s6 = inlined_call_operand.vmem [shape: f32[16,32], index: 6, kind: output, shape index: {}]  }
   0x1   :  { %164 = vmatprep.subr.bf16.mxu0 %v181_v0  ;;  %v174_v1 = vld [vmem:[%s255_s2 + $0x8] sm:$0xff]   ;;  %168 = vmatprep.mubr.msk.bf16.mxu0 %vm182_vm0, %v181_v0  ;;  %v175_v2 = vld [vmem:[%s255_s2] sm:$0xff]  }
   0x2   :  { %165 = vmatpush3.bf16.msra.mxu0 %v174_v1  ;;  %v176_v3 = vld [vmem:[%s256_s0] sm:$0xff]   ;;  %v100_v11 = vld [vmem:[%s258_s1 + $0x8] sm:$0xff] }
   0x3   :  { %166 = vmatprep.subr.bf16.mxu0 %v181_v0  ;;  %v154_v4 = vld [vmem:[%s257_s3] ss:$0 sm:$0xff] }
   0x4   :  { %v99_v6 = vld [vmem:[%s258_s1] sm:$0xff] }
   0x5   :  { %v159_v34 = vld [vmem:[%s259_s4] ss:$0 sm:$0xff] }
   0x6   :  { %167 = vmatpush3.bf16.msra.mxu0 %v175_v2  ;;  %v160_v36 = vld [vmem:[%s260_s5] ss:$0 sm:$0xff] }
   0x9   :  { %169 = vmatmul.mubr.msk.bf16.vlgmr.msra.gmra.mxu0 %vm54_vm1, %v176_v3 }
  0xc9   :  { %v92_v5 = vpop.f32.mrf.mxu0 }
  0xca   :  { %v93_v7 = vadd.f32 %v154_v4, %v92_v5 }
  0xcb   :  { %v170_v8 = vpop.f32.mrf.mxu0 }
  0xcc   :  { %v101_v9 = vadd.f32 %v99_v6, %v93_v7 }
  0xcd   :  { %v95_v10 = vpop.f32.mrf.mxu0 }
  0xce   :  { %v96_v12 = vadd.f32 %v154_v4, %v95_v10  ;;  %v103_v13 = vsel %vm54_vm1, %v101_v9, 0.0 }
  0xcf   :  { %104 = vadd.xlane.f32.xlu0 %v103_v13  ;;  %v171_v14 = vpop.f32.mrf.mxu0 }
  0xd0   :  { %v102_v15 = vadd.f32 %v100_v11, %v96_v12 }
  0xd2   :  { %v106_v16 = vsel %vm54_vm1, %v102_v15, 0.0 }
  0xd3   :  { %107 = vadd.xlane.f32.xlu0 %v106_v16 }
 0x158   :  { %v105_v17 = vpop.xlane.xlu0 %104 }
 0x159   :  { %v110_v18 = vmul.f32 0.03125, %v105_v17 }
 0x15b   :  { %v112_v19 = vsub.f32 %v101_v9, %v110_v18 }
 0x15c   :  { %v108_v20 = vpop.xlane.xlu0 %107 }
 0x15d   :  { %v111_v21 = vmul.f32 0.03125, %v108_v20  ;;  %v114_v22 = vmul.f32 %v112_v19, %v112_v19 }
 0x15f   :  { %v113_v23 = vsub.f32 %v102_v15, %v111_v21  ;;  %v116_v24 = vsel %vm54_vm1, %v114_v22, 0.0 }
 0x160   :  { %117 = vadd.xlane.f32.xlu1 %v116_v24 }
 0x161   :  { %v115_v25 = vmul.f32 %v113_v23, %v113_v23 }
 0x163   :  { %v119_v26 = vsel %vm54_vm1, %v115_v25, 0.0 }
 0x164   :  { %120 = vadd.xlane.f32.xlu1 %v119_v26 }
 0x1e9   :  { %v118_v27 = vpop.xlane.xlu1 %117 }
 0x1ea   :  { %v122_v28 = vmul.f32 0.03125, %v118_v27 }
 0x1ec   :  { %v124_v29 = vadd.f32 1e-05, %v122_v28 }
 0x1ed   :  { %v121_v30 = vpop.xlane.xlu1 %120 }
 0x1ee   :  { %177 = vrsqrt.f32 %v124_v29  ;;  %v123_v31 = vmul.f32 0.03125, %v121_v30 }
 0x1f0   :  { %v125_v32 = vadd.f32 1e-05, %v123_v31 }
 0x1f2   :  { %179 = vrsqrt.f32 %v125_v32 }
 0x1fb   :  { %v178_v33 = vpop.eup %177 }
 0x1fc   :  { %v128_v35 = vmul.f32 %v178_v33, %v112_v19 }
 0x1fe   :  { %v137_v37 = vmul.f32 %v159_v34, %v128_v35 }
 0x1ff   :  { %v180_v38 = vpop.eup %179 }
 0x200   :  { %v146_v39 = vadd.f32 %v160_v36, %v137_v37  ;;  %v129_v40 = vmul.f32 %v180_v38, %v113_v23 }
 0x202   :  { %148 = vst.msk [vmem:[%s261_s6] sm:$0xff] %vm54_vm1, %v146_v39  ;;  %v138_v41 = vmul.f32 %v159_v34, %v129_v40 }
 0x204   :  { %v147_v42 = vadd.f32 %v160_v36, %v138_v41 }
 0x206   :  { %149 = vst.msk [vmem:[%s261_s6 + $0x8] sm:$0xff] %vm54_vm1, %v147_v42 }

// kernel: _lambda_.25
= control target key start
LH: loop header
LB: loop body
LE: loop exit
PB: predicated region body
PF: predicated region fallthrough
CT: control target
= control target key end

     0   :  { %v124_v0 = vmov 0.0   ;;  %vm125_vm0 = vmmov 0   ;;  %vm41_vm1 = vcmask 261120   ;;  %vm94_vm2 = vcmask 781312   ;;  %s167_s1 = inlined_call_operand.vmem [shape: bf16[32,96], index: 1, kind: input, shape index: {}]   ;;  %s168_s0 = inlined_call_operand.vmem [shape: f32[16,32], index: 0, kind: input, shape index: {}]   ;;  %s169_s2 = inlined_call_operand.vmem [shape: f32[1,96], index: 2, kind: input, shape index: {}]   ;;  %s170_s3 = inlined_call_operand.vmem [shape: bf16[16,96], index: 3, kind: output, shape index: {}]  }
   0x1   :  { %112 = vmatprep.subr.bf16.mxu0 %v124_v0  ;;  %v122_v1 = vld [vmem:[%s167_s1 + $0x8] sm:$0xff]   ;;  %116 = vmatprep.mubr.msk.bf16.mxu0 %vm125_vm0, %v124_v0  ;;  %v123_v2 = vld [vmem:[%s167_s1] sm:$0xff]  }
   0x2   :  { %113 = vmatpush3.bf16.msra.mxu0 %v122_v1  ;;  %v15_v3 = vld [vmem:[%s168_s0] sm:$0xff]  ;;  %v16_v4 = vld [vmem:[%s168_s0 + $0x8] sm:$0xff] }
   0x3   :  { %114 = vmatprep.subr.bf16.mxu0 %v124_v0  ;;  %v17_v5 = vpack.c.bf16 %v16_v4, %v15_v3  ;;  %v101_v6 = vld [vmem:[%s169_s2] ss:$0 sm:$0xff] }
   0x6   :  { %115 = vmatpush3.bf16.msra.mxu0 %v123_v2 }
   0x9   :  { %117 = vmatmul.mubr.msk.bf16.vlgmr.msra.gmra.mxu0 %vm41_vm1, %v17_v5 }
  0xc9   :  { %v79_v7 = vpop.f32.mrf.mxu0 }
  0xca   :  { %v80_v8 = vadd.f32 %v101_v6, %v79_v7 }
  0xcb   :  { %v118_v9 = vpop.f32.mrf.mxu0 }
  0xcc   :  { %v107_v10 = vpack.c.bf16 %v80_v8, %v80_v8 }
  0xcd   :  { %v82_v11 = vpop.f32.mrf.mxu0 }
  0xce   :  { %95 = vst.msk [vmem:[%s170_s3] sm:$0xf] %vm94_vm2, %v107_v10  ;;  %v83_v12 = vadd.f32 %v101_v6, %v82_v11 }
  0xcf   :  { %v119_v13 = vpop.f32.mrf.mxu0 }
  0xd0   :  { %v108_v14 = vpack.c.bf16 %v83_v12, %v83_v12 }
  0xd2   :  { %96 = vst.msk [vmem:[%s170_s3 + $0x4] sm:$0xf] %vm94_vm2, %v108_v14 }

// kernel: _lambda_.28
= control target key start
LH: loop header
LB: loop body
LE: loop exit
PB: predicated region body
PF: predicated region fallthrough
CT: control target
= control target key end

     0   :  { %vm31_vm0 = vcmask 261120   ;;  %v312_v0 = vmov 0.0   ;;  %vm313_vm1 = vmmov 0   ;;  %vm142_vm2 = vcmask 523264   ;;  %s407_s1 = inlined_call_operand.vmem [shape: bf16[32,64], index: 1, kind: input, shape index: {}]   ;;  %s408_s0 = inlined_call_operand.vmem [shape: f32[16,32], index: 0, kind: input, shape index: {}]   ;;  %s409_s3 = inlined_call_operand.vmem [shape: bf16[64,32], index: 3, kind: input, shape index: {}]   ;;  %s410_s2 = inlined_call_operand.vmem [shape: f32[1,64], index: 2, kind: input, shape index: {}]   ;;  %s411_s4 = inlined_call_operand.vmem [shape: f32[1,32], index: 4, kind: input, shape index: {}]   ;;  %s412_s5 = inlined_call_operand.vmem [shape: f32[1,32], index: 5, kind: input, shape index: {}]   ;;  %s413_s6 = inlined_call_operand.vmem [shape: f32[1,32], index: 6, kind: input, shape index: {}]   ;;  %s414_s7 = inlined_call_operand.vmem [shape: f32[16,32], index: 7, kind: output, shape index: {}]  }
   0x1   :  { %280 = vmatprep.subr.bf16.mxu0 %v312_v0  ;;  %v302_v1 = vld [vmem:[%s407_s1 + $0x8] sm:$0xff]   ;;  %284 = vmatprep.mubr.msk.bf16.mxu0 %vm313_vm1, %v312_v0  ;;  %32 = vst.msk [vmem:[#allocation2] sm:$0xff] %vm31_vm0, %v312_v0  ;;  %33 = vst.msk [vmem:[#allocation2 + $0x8] sm:$0xff] %vm31_vm0, %v312_v0  ;;  %v303_v2 = vld [vmem:[%s407_s1] sm:$0xff]  }
   0x2   :  { %288 = vmatprep.subr.bf16.mxu1 %v312_v0  ;;  %296 = vmatprep.mubr.msk.bf16.mxu1 %vm313_vm1, %v312_v0  ;;  %v34_v3 = vld [vmem:[%s408_s0] sm:$0xff]  ;;  %v35_v4 = vld [vmem:[%s408_s0 + $0x8] sm:$0xff]  ;;  %v304_v5 = vld [vmem:[%s409_s3 + $0x18] sm:$0xff]  }
   0x3   :  { %281 = vmatpush3.bf16.msra.mxu0 %v302_v1  ;;  %v36_v6 = vpack.c.bf16 %v35_v4, %v34_v3  ;;  %289 = vmatpush3.bf16.msra.mxu1 %v304_v5  ;;  %v305_v7 = vld [vmem:[%s409_s3 + $0x10] sm:$0xff]   ;;  %v306_v8 = vld [vmem:[%s409_s3 + $0x8] sm:$0xff]   ;;  %v307_v9 = vld [vmem:[%s409_s3] sm:$0xff]  }
   0x4   :  { %282 = vmatprep.subr.bf16.mxu0 %v312_v0  ;;  %290 = vmatprep.subr.bf16.mxu1 %v312_v0  ;;  %v260_v10 = vld [vmem:[%s410_s2] ss:$0 sm:$0xff] }
   0x5   :  { %v269_v28 = vld [vmem:[%s411_s4] ss:$0 sm:$0xff] }
   0x6   :  { %v270_v54 = vld [vmem:[%s412_s5] ss:$0 sm:$0xff] }
   0x7   :  { %283 = vmatpush3.bf16.msra.mxu0 %v303_v2  ;;  %291 = vmatpush3.bf16.msra.mxu1 %v305_v7  ;;  %v271_v56 = vld [vmem:[%s413_s6] ss:$0 sm:$0xff] }
   0x8   :  { %292 = vmatprep.subr.bf16.mxu1 %v312_v0  ;;  %v107_v20 = vld [vmem:[#allocation2] sm:$0xff]  ;;  %v108_v24 = vld [vmem:[#allocation2 + $0x8] sm:$0xff] }
   0xa   :  { %285 = vmatmul.mubr.msk.bf16.vlgmr.msra.gmra.mxu0 %vm31_vm0, %v36_v6 }
   0xb   :  { %293 = vmatpush3.bf16.msra.mxu1 %v306_v8 }
   0xc   :  { %294 = vmatprep.subr.bf16.mxu1 %v312_v0 }
   0xf   :  { %295 = vmatpush3.bf16.msra.mxu1 %v307_v9 }
  0xca   :  { %v98_v11 = vpop.f32.mrf.mxu0 }
  0xcb   :  { %v99_v13 = vadd.f32 %v260_v10, %v98_v11 }
  0xcc   :  { %v286_v12 = vpop.f32.mrf.mxu0 }
  0xcd   :  { %v105_v17 = vmax.f32 %v99_v13, 0.0 }
  0xce   :  { %v101_v14 = vpop.f32.mrf.mxu0 }
  0xcf   :  { %v102_v15 = vadd.f32 %v260_v10, %v101_v14 }
  0xd0   :  { %v287_v16 = vpop.f32.mrf.mxu0 }
  0xd1   :  { %v106_v18 = vmax.f32 %v102_v15, 0.0 }
  0xd3   :  { %v109_v19 = vpack.c.bf16 %v106_v18, %v105_v17 }
  0xd5   :  { %297 = vmatmul.mubr.msk.bf16.vlgmr.msra.gmra.mxu1 %vm142_vm2, %v109_v19 }
 0x195   :  { %v180_v21 = vpop.f32.mrf.mxu1 }
 0x196   :  { %v187_v22 = vadd.f32 %v180_v21, %v107_v20 }
 0x197   :  { %v298_v23 = vpop.f32.mrf.mxu1 }
 0x198   :  { %189 = vst.msk [vmem:[#allocation2] sm:$0xff] %vm31_vm0, %v187_v22 }
 0x199   :  { %v183_v25 = vpop.f32.mrf.mxu1 }
 0x19a   :  { %v188_v26 = vadd.f32 %v183_v25, %v108_v24 }
 0x19b   :  { %v299_v27 = vpop.f32.mrf.mxu1 }
 0x19c   :  { %190 = vst.msk [vmem:[#allocation2 + $0x8] sm:$0xff] %vm31_vm0, %v188_v26 }
 0x19f   :  { %v194_v29 = vld [vmem:[#allocation2] sm:$0xff] }
 0x1a0   :  { %v203_v30 = vadd.f32 %v269_v28, %v194_v29 }
 0x1a2   :  { %v207_v31 = vadd.f32 %v203_v30, %v34_v3 }
 0x1a3   :  { %v195_v32 = vld [vmem:[#allocation2 + $0x8] sm:$0xff] }
 0x1a4   :  { %v209_v33 = vsel %vm31_vm0, %v207_v31, 0.0  ;;  %v204_v34 = vadd.f32 %v269_v28, %v195_v32 }
 0x1a5   :  { %210 = vadd.xlane.f32.xlu0 %v209_v33 }
 0x1a6   :  { %v208_v35 = vadd.f32 %v204_v34, %v35_v4 }
 0x1a8   :  { %v212_v36 = vsel %vm31_vm0, %v208_v35, 0.0 }
 0x1a9   :  { %213 = vadd.xlane.f32.xlu0 %v212_v36 }
 0x22e   :  { %v211_v37 = vpop.xlane.xlu0 %210 }
 0x22f   :  { %v216_v38 = vmul.f32 0.03125, %v211_v37 }
 0x231   :  { %v218_v39 = vsub.f32 %v207_v31, %v216_v38 }
 0x232   :  { %v214_v40 = vpop.xlane.xlu0 %213 }
 0x233   :  { %v217_v41 = vmul.f32 0.03125, %v214_v40  ;;  %v220_v42 = vmul.f32 %v218_v39, %v218_v39 }
 0x235   :  { %v219_v43 = vsub.f32 %v208_v35, %v217_v41  ;;  %v222_v44 = vsel %vm31_vm0, %v220_v42, 0.0 }
 0x236   :  { %223 = vadd.xlane.f32.xlu1 %v222_v44 }
 0x237   :  { %v221_v45 = vmul.f32 %v219_v43, %v219_v43 }
 0x239   :  { %v225_v46 = vsel %vm31_vm0, %v221_v45, 0.0 }
 0x23a   :  { %226 = vadd.xlane.f32.xlu1 %v225_v46 }
 0x2bf   :  { %v224_v47 = vpop.xlane.xlu1 %223 }
 0x2c0   :  { %v228_v48 = vmul.f32 0.03125, %v224_v47 }
 0x2c2   :  { %v230_v49 = vadd.f32 1e-05, %v228_v48 }
 0x2c3   :  { %v227_v50 = vpop.xlane.xlu1 %226 }
 0x2c4   :  { %308 = vrsqrt.f32 %v230_v49  ;;  %v229_v51 = vmul.f32 0.03125, %v227_v50 }
 0x2c6   :  { %v231_v52 = vadd.f32 1e-05, %v229_v51 }
 0x2c8   :  { %310 = vrsqrt.f32 %v231_v52 }
 0x2d1   :  { %v309_v53 = vpop.eup %308 }
 0x2d2   :  { %v234_v55 = vmul.f32 %v309_v53, %v218_v39 }
 0x2d4   :  { %v243_v57 = vmul.f32 %v270_v54, %v234_v55 }
 0x2d5   :  { %v311_v58 = vpop.eup %310 }
 0x2d6   :  { %v252_v59 = vadd.f32 %v271_v56, %v243_v57  ;;  %v235_v60 = vmul.f32 %v311_v58, %v219_v43 }
 0x2d8   :  { %254 = vst.msk [vmem:[%s414_s7] sm:$0xff] %vm31_vm0, %v252_v59  ;;  %v244_v61 = vmul.f32 %v270_v54, %v235_v60 }
 0x2da   :  { %v253_v62 = vadd.f32 %v271_v56, %v244_v61 }
 0x2dc   :  { %255 = vst.msk [vmem:[%s414_s7 + $0x8] sm:$0xff] %vm31_vm0, %v253_v62 }

// kernel: _lambda_.37
= control target key start
LH: loop header
LB: loop body
LE: loop exit
PB: predicated region body
PF: predicated region fallthrough
CT: control target
= control target key end

     0   :  { %v124_v0 = vmov 0.0   ;;  %vm125_vm0 = vmmov 0   ;;  %vm41_vm1 = vcmask 261120   ;;  %vm94_vm2 = vcmask 519168   ;;  %s167_s1 = inlined_call_operand.vmem [shape: bf16[32,64], index: 1, kind: input, shape index: {}]   ;;  %s168_s0 = inlined_call_operand.vmem [shape: f32[16,32], index: 0, kind: input, shape index: {}]   ;;  %s169_s2 = inlined_call_operand.vmem [shape: f32[1,64], index: 2, kind: input, shape index: {}]   ;;  %s170_s3 = inlined_call_operand.vmem [shape: bf16[16,64], index: 3, kind: output, shape index: {}]  }
   0x1   :  { %112 = vmatprep.subr.bf16.mxu0 %v124_v0  ;;  %v122_v1 = vld [vmem:[%s167_s1 + $0x8] sm:$0xff]   ;;  %116 = vmatprep.mubr.msk.bf16.mxu0 %vm125_vm0, %v124_v0  ;;  %v123_v2 = vld [vmem:[%s167_s1] sm:$0xff]  }
   0x2   :  { %113 = vmatpush3.bf16.msra.mxu0 %v122_v1  ;;  %v15_v3 = vld [vmem:[%s168_s0] sm:$0xff]  ;;  %v16_v4 = vld [vmem:[%s168_s0 + $0x8] sm:$0xff] }
   0x3   :  { %114 = vmatprep.subr.bf16.mxu0 %v124_v0  ;;  %v17_v5 = vpack.c.bf16 %v16_v4, %v15_v3  ;;  %v101_v6 = vld [vmem:[%s169_s2] ss:$0 sm:$0xff] }
   0x6   :  { %115 = vmatpush3.bf16.msra.mxu0 %v123_v2 }
   0x9   :  { %117 = vmatmul.mubr.msk.bf16.vlgmr.msra.gmra.mxu0 %vm41_vm1, %v17_v5 }
  0xc9   :  { %v79_v7 = vpop.f32.mrf.mxu0 }
  0xca   :  { %v80_v8 = vadd.f32 %v101_v6, %v79_v7 }
  0xcb   :  { %v118_v9 = vpop.f32.mrf.mxu0 }
  0xcc   :  { %v107_v10 = vpack.c.bf16 %v80_v8, %v80_v8 }
  0xcd   :  { %v82_v11 = vpop.f32.mrf.mxu0 }
  0xce   :  { %95 = vst.msk [vmem:[%s170_s3] sm:$0xf] %vm94_vm2, %v107_v10  ;;  %v83_v12 = vadd.f32 %v101_v6, %v82_v11 }
  0xcf   :  { %v119_v13 = vpop.f32.mrf.mxu0 }
  0xd0   :  { %v108_v14 = vpack.c.bf16 %v83_v12, %v83_v12 }
  0xd2   :  { %96 = vst.msk [vmem:[%s170_s3 + $0x4] sm:$0xf] %vm94_vm2, %v108_v14 }

// kernel: _lambda_.26
= control target key start
LH: loop header
LB: loop body
LE: loop exit
PB: predicated region body
PF: predicated region fallthrough
CT: control target
= control target key end

     0   :  { %11 = vsyncpa [#allocation6], 0  ;;  %s3300_s0 = inlined_call_operand.vmem [shape: bf16[2,8,3,4,8], index: 0, kind: input, shape index: {}, may-alias: {0,1,2}]   ;;  %s3301_s1 = inlined_call_operand.vmem [shape: bf16[2,8,3,4,8], index: 1, kind: input, shape index: {}, may-alias: {0,1,2}]   ;;  %s3302_s2 = inlined_call_operand.vmem [shape: bf16[2,8,3,4,8], index: 2, kind: input, shape index: {}, may-alias: {0,1,2}]   ;;  %s3303_s3 = inlined_call_operand.vmem [shape: f32[1,1,8], index: 3, kind: input, shape index: {}]   ;;  %s3304_s4 = inlined_call_operand.vmem [shape: bf16[2,8,32], index: 4, kind: output, shape index: {0}]   ;;  %s3305_s5 = inlined_call_operand.hbm [shape: bf16[2,4,8,8], index: 5, kind: output, shape index: {1}]  }
   0x1   :  { %13 = vsyncpa [#allocation6 + $0x1], 0  ;;  %s2726_s18 = smov 0   ;;  %s2728_s19 = smov 0  }
   0x2   :  { %s2730_s20 = smov 0   ;;  %s2732_s21 = smov 0  }
   0x3   :  { %s2734_s22 = smov 0   ;;  %s2736_s23 = smov 0  }
   0x4 LB: > { %s2315_s24 = sadd.s32 4294967295, %s2686_s23   ;;  %s2316_s25 = sadd.s32 4294967294, %s2686_s23   ;;  %s2686_s23 = sphi %s2736_s23, %s19_s23   ;;  %s2682_s22 = sphi %s2734_s22, %s3313_s22   ;;  %s2678_s21 = sphi %s2732_s21, %s3312_s21   ;;  %s2674_s20 = sphi %s2730_s20, %s3311_s20   ;;  %s2670_s19 = sphi %s2728_s19, %s3310_s19   ;;  %s2666_s18 = sphi %s2726_s18, %s3309_s18  }
   0x5   : > { %s31_s26 = sadd.s32 1, %s2682_s22  ;;  %s40_s27 = sadd.s32 1, %s2674_s20 }
   0x6   : > { %p33_p0 = scmp.ge.s32.totalorder %s31_s26, 2  ;;  %p47_p1 = scmp.ne.s32.totalorder %s2674_s20, %s2670_s19 }
   0x7   : > { %p48_p2 = scmp.eq.s32.totalorder %s2686_s23, 0  ;;  %p180_p3 = scmp.eq.s32.totalorder %s2315_s24, 1 }
   0x8   : > { %s3315_s26 = smov (%p33_p0, %s31_s26), 0  ;;  %p185_p6 = scmp.ne.s32.totalorder %s2670_s19, %s2666_s18 }
   0x9   : > { %p2765_p4 = por %p48_p2, %p47_p1  ;;  %p2769_p5 = por %p180_p3, %p47_p1 }
   0xa   : > { %s35_s30 = ssub.s32 %s2682_s22, %s3315_s26  ;;  %p186_p8 = scmp.eq.s32.totalorder %s2316_s25, 1 }
   0xb   : > { %p38_p7 = scmp.eq.s32.totalorder %s35_s30, 0  ;;  %p2318_p10 = scmp.ge.s32.totalorder %s2686_s23, 2 }
   0xc   : > { %p2780_p9 = por %p186_p8, %p185_p6 }
   0xd   : > { %s2778_s6 = scalar_select %p38_p7, %s2674_s20, %s40_s27  }
   0xe   : > { %205 = sbr.rel (%p2318_p10) target bundleno = 49 (0x31), region = 20 }
  0x13   : > { %208 = sbr.rel (!%p2765_p4) target bundleno = 29 (0x1d), region = 24  ;;  %s210_s8 = sand.u32 (%p2765_p4), 1, %s2674_s20  }
  0x14   : > { %s2531_s9 = smul.u32 (%p2765_p4), 48, %s2682_s22  ;;  %s2319_s10 = sshll.u32 (%p2765_p4), %s210_s8, 4 }
  0x15   : > { %s212_s14 = scalar_lea.vmem (%p2765_p4), [#allocation2], %s2319_s10 }
  0x16   : > { %s218_s13 = scalar_lea.vmem (%p2765_p4), %s3300_s0, %s2531_s9 }
  0x17   : > { %v235_v0 = vld [vmem:[%s218_s13] sm:$0x3] (%p2765_p4)  ;;  %v237_v1 = vld [vmem:[%s218_s13 + $0x6] sm:$0x3] (%p2765_p4)  ;;  %v239_v2 = vld [vmem:[%s218_s13 + $0xc] sm:$0x3] (%p2765_p4) }
  0x18   : > { %236 = vst [vmem:[%s212_s14] sm:$0x3] %v235_v0  ;;  %238 = vst [vmem:[%s212_s14 + $0x2] sm:$0x3] %v237_v1  ;;  %v241_v3 = vld [vmem:[%s218_s13 + $0x12] sm:$0x3] }
  0x19   : > { %240 = vst [vmem:[%s212_s14 + $0x4] sm:$0x3] %v239_v2  ;;  %v243_v4 = vld [vmem:[%s218_s13 + $0x18] sm:$0x3]  ;;  %v245_v5 = vld [vmem:[%s218_s13 + $0x1e] sm:$0x3] }
  0x1a   : > { %242 = vst [vmem:[%s212_s14 + $0x6] sm:$0x3] %v241_v3  ;;  %244 = vst [vmem:[%s212_s14 + $0x8] sm:$0x3] %v243_v4  ;;  %v247_v6 = vld [vmem:[%s218_s13 + $0x24] sm:$0x3] }
  0x1b   : > { %246 = vst [vmem:[%s212_s14 + $0xa] sm:$0x3] %v245_v5  ;;  %v249_v7 = vld [vmem:[%s218_s13 + $0x2a] sm:$0x3]  ;;  %248 = vst [vmem:[%s212_s14 + $0xc] sm:$0x3] %v247_v6 }
  0x1c   : > { %250 = vst [vmem:[%s212_s14 + $0xe] sm:$0x3] %v249_v7 }
  0x1d PF: > { %290 = sbr.rel (!%p2765_p4) target bundleno = 39 (0x27), region = 65  ;;  %s292_s15 = sand.u32 (%p2765_p4), 1, %s2674_s20  }
  0x1e   : > { %s2322_s16 = smul.u32 (%p2765_p4), 48, %s2682_s22  ;;  %s2321_s17 = sshll.u32 (%p2765_p4), %s292_s15, 4 }
  0x1f   : > { %s294_s30 = scalar_lea.vmem (%p2765_p4), [#allocation3], %s2321_s17 }
  0x20   : > { %s2208_s27 = scalar_lea.vmem (%p2765_p4), %s3301_s1, %s2322_s16 }
  0x21   : > { %v2323_v8 = vld [vmem:[%s2208_s27 + $0x2] sm:$0x3] (%p2765_p4)  ;;  %v2324_v9 = vld [vmem:[%s2208_s27 + $0x8] sm:$0x3] (%p2765_p4)  ;;  %v2325_v10 = vld [vmem:[%s2208_s27 + $0xe] sm:$0x3] (%p2765_p4) }
  0x22   : > { %316 = vst [vmem:[%s294_s30] sm:$0x3] %v2323_v8  ;;  %318 = vst [vmem:[%s294_s30 + $0x2] sm:$0x3] %v2324_v9  ;;  %v2326_v11 = vld [vmem:[%s2208_s27 + $0x14] sm:$0x3] }
  0x23   : > { %320 = vst [vmem:[%s294_s30 + $0x4] sm:$0x3] %v2325_v10  ;;  %v2327_v12 = vld [vmem:[%s2208_s27 + $0x1a] sm:$0x3]  ;;  %v2328_v13 = vld [vmem:[%s2208_s27 + $0x20] sm:$0x3] }
  0x24   : > { %322 = vst [vmem:[%s294_s30 + $0x6] sm:$0x3] %v2326_v11  ;;  %324 = vst [vmem:[%s294_s30 + $0x8] sm:$0x3] %v2327_v12  ;;  %v2329_v14 = vld [vmem:[%s2208_s27 + $0x26] sm:$0x3] }
  0x25   : > { %326 = vst [vmem:[%s294_s30 + $0xa] sm:$0x3] %v2328_v13  ;;  %v2330_v15 = vld [vmem:[%s2208_s27 + $0x2c] sm:$0x3]  ;;  %328 = vst [vmem:[%s294_s30 + $0xc] sm:$0x3] %v2329_v14 }
  0x26   : > { %330 = vst [vmem:[%s294_s30 + $0xe] sm:$0x3] %v2330_v15 }
  0x27 PF: > { %370 = sbr.rel (!%p2765_p4) target bundleno = 49 (0x31), region = 106  ;;  %s372_s8 = sand.u32 (%p2765_p4), 1, %s2674_s20  }
  0x28   : > { %s2332_s9 = smul.u32 (%p2765_p4), 48, %s2682_s22  ;;  %s2331_s10 = sshll.u32 (%p2765_p4), %s372_s8, 4 }
  0x29   : > { %s374_s14 = scalar_lea.vmem (%p2765_p4), [#allocation4], %s2331_s10 }
  0x2a   : > { %s2214_s13 = scalar_lea.vmem (%p2765_p4), %s3302_s2, %s2332_s9 }
  0x2b   : > { %v2333_v16 = vld [vmem:[%s2214_s13 + $0x4] sm:$0x3] (%p2765_p4)  ;;  %v2334_v17 = vld [vmem:[%s2214_s13 + $0xa] sm:$0x3] (%p2765_p4)  ;;  %v2335_v18 = vld [vmem:[%s2214_s13 + $0x10] sm:$0x3] (%p2765_p4) }
  0x2c   : > { %396 = vst [vmem:[%s374_s14] sm:$0x3] %v2333_v16  ;;  %398 = vst [vmem:[%s374_s14 + $0x2] sm:$0x3] %v2334_v17  ;;  %v2336_v19 = vld [vmem:[%s2214_s13 + $0x16] sm:$0x3] }
  0x2d   : > { %400 = vst [vmem:[%s374_s14 + $0x4] sm:$0x3] %v2335_v18  ;;  %v2337_v20 = vld [vmem:[%s2214_s13 + $0x1c] sm:$0x3]  ;;  %v2338_v21 = vld [vmem:[%s2214_s13 + $0x22] sm:$0x3] }
  0x2e   : > { %402 = vst [vmem:[%s374_s14 + $0x6] sm:$0x3] %v2336_v19  ;;  %404 = vst [vmem:[%s374_s14 + $0x8] sm:$0x3] %v2337_v20  ;;  %v2339_v22 = vld [vmem:[%s2214_s13 + $0x28] sm:$0x3] }
  0x2f   : > { %406 = vst [vmem:[%s374_s14 + $0xa] sm:$0x3] %v2338_v21  ;;  %v2340_v23 = vld [vmem:[%s2214_s13 + $0x2e] sm:$0x3]  ;;  %408 = vst [vmem:[%s374_s14 + $0xc] sm:$0x3] %v2339_v22 }
  0x30   : > { %410 = vst [vmem:[%s374_s14 + $0xe] sm:$0x3] %v2340_v23 }
  0x31 PF: > { %p2341_p11 = scmp.ge.s32.totalorder %s2686_s23, 1  ;;  %p449_p12 = scmp.lt.s32.totalorder %s2686_s23, 3 }
  0x33   : > { %p450_p13 = pnand %p2341_p11, %p449_p12 }
  0x34   : > { %s456_s28 = sand.u32 (!%p450_p13), 1, %s2670_s19   ;;  %p513_p0 = scmp.lt.s32.totalorder (!%p450_p13), %s2678_s21, 1 }
  0x35   : > { %453 = sbr.rel (%p450_p13) target bundleno = 1448 (0x5a8), region = 147  ;;  %s2814_s15 = sshll.u32 (!%p450_p13), %s456_s28, 4 }
  0x36   : > { %s2818_s16 = scalar_lea.vmem (!%p450_p13), [#allocation3], %s2814_s15  ;;  %s2872_s17 = scalar_lea.vmem (!%p450_p13), [#allocation2], %s2814_s15 }
  0x37   : > { %s2954_s27 = scalar_lea.vmem (!%p450_p13), [#allocation4], %s2814_s15  ;;  %s3115_s30 = scalar_lea.vmem (!%p450_p13), [#allocation5], %s2814_s15 }
  0x38   : > { %s2690_s13 = smov (!%p450_p13), 8   ;;  %s2466_s14 = sshll.u32 (!%p450_p13), %s2678_s21, 8 }
  0x39   : > { %s2163_s15 = sshll.u32 (!%p450_p13), %s3115_s30, 4  ;;  %s3245_s24 = scalar_lea.hbm (!%p450_p13), %s3305_s5, %s2466_s14  ;;  %s3247_s15 = int_to_ptr.vmem [resolvable:$true] %s2163_s15 }
  0x3a   : > { %v2688_v24 = vmov 0.0   ;;  %v2821_v25 = vld.sshfl [vmem:[%s2818_s16] sm:$0x1 pattern:$0x76325410]  ;;  %vm2689_vm0 = vmmov 0  }
  0x3b   : > { %2483 = vmatprep.subr.bf16.mxu0 %v2688_v24  ;;  %2489 = vmatprep.subr.bf16.mxu1 %v2688_v24  ;;  %v2828_v26 = vld.sshfl [vmem:[%s2818_s16 + $0x2] sm:$0x1 pattern:$0x76325410]  ;;  %v704_v28 = vunpack.c.l.b16 %v2821_v25  ;;  %vm619_vm1 = vcmask 1041409   ;;  %vm622_vm2 = vcmask 1042434  }
  0x3c   : > { %2485 = vmatprep.mubr.msk.bf16.mxu0 %vm2689_vm0, %v2688_v24  ;;  %2491 = vmatprep.mubr.msk.bf16.mxu1 %vm2689_vm0, %v2688_v24  ;;  %v2831_v27 = vld.sshfl [vmem:[%s2818_s16 + $0x4] sm:$0x1 pattern:$0x76325410]  ;;  %v705_v29 = vunpack.c.l.b16 %v2828_v26  ;;  %vm625_vm3 = vcmask 1043459   ;;  %vm628_vm4 = vcmask 1044484  }
  0x3d   : > { %v2836_v30 = vld.sshfl [vmem:[%s2818_s16 + $0x6] sm:$0x1 pattern:$0x76325410]  ;;  %v706_v31 = vunpack.c.l.b16 %v2831_v27  ;;  %vm631_vm5 = vcmask 1045509   ;;  %vm634_vm6 = vcmask 1046534  }
  0x3e   : > { %v2840_v32 = vld.sshfl [vmem:[%s2818_s16 + $0x8] sm:$0x1 pattern:$0x76325410]  ;;  %v707_v33 = vunpack.c.l.b16 %v2836_v30  ;;  %v712_v34 = vrot.slane %v705_v29, 7  ;;  %vm637_vm7 = vcmask 1047559  }
  0x3f   : > { %v2846_v35 = vld.sshfl [vmem:[%s2818_s16 + $0xa] sm:$0x1 pattern:$0x76325410]  ;;  %v708_v36 = vunpack.c.l.b16 %v2840_v32  ;;  %v714_v37 = vrot.slane %v706_v31, 6  ;;  %vm727_vm8 = vcmask 64512  }
  0x40   : > { %v2852_v38 = vld.sshfl [vmem:[%s2818_s16 + $0xc] sm:$0x1 pattern:$0x76325410]  ;;  %v709_v39 = vunpack.c.l.b16 %v2846_v35  ;;  %v713_v40 = vsel %vm619_vm1, %v712_v34, %v704_v28  ;;  %v716_v41 = vrot.slane %v707_v33, 5  ;;  %vm886_vm9 = vcmask 1043456  }
  0x41   : > { %v2861_v42 = vld.sshfl [vmem:[%s2818_s16 + $0xe] sm:$0x1 pattern:$0x76325410]  ;;  %v710_v43 = vunpack.c.l.b16 %v2852_v38  ;;  %v715_v44 = vsel %vm622_vm2, %v714_v37, %v713_v40  ;;  %v718_v45 = vrot.slane %v708_v36, 4  ;;  %v1121_v25 = vrot.slane %v708_v36, 5 }
  0x42   : > { %v711_v46 = vunpack.c.l.b16 %v2861_v42  ;;  %v717_v47 = vsel %vm625_vm3, %v716_v41, %v715_v44  ;;  %v720_v48 = vrot.slane %v709_v39, 3  ;;  %v2875_v49 = vld.sshfl [vmem:[%s2872_s17] sm:$0x1 pattern:$0x76325410]  ;;  %v1123_v26 = vrot.slane %v709_v39, 4 }
  0x43   : > { %v719_v50 = vsel %vm628_vm4, %v718_v45, %v717_v47  ;;  %v722_v51 = vrot.slane %v710_v43, 2  ;;  %v2881_v52 = vld.sshfl [vmem:[%s2872_s17 + $0x2] sm:$0x1 pattern:$0x76325410]  ;;  %v610_v56 = vunpack.c.l.b16 %v2875_v49  ;;  %vm794_vm10 = vcmask 60416  }
  0x44   : > { %v721_v53 = vsel %vm631_vm5, %v720_v48, %v719_v50  ;;  %v724_v54 = vrot.slane %v711_v46, 1  ;;  %v2887_v55 = vld.sshfl [vmem:[%s2872_s17 + $0x4] sm:$0x1 pattern:$0x76325410]  ;;  %v611_v57 = vunpack.c.l.b16 %v2881_v52  ;;  %v1127_v38 = vrot.slane %v711_v46, 2 }
  0x45   : > { %v723_v58 = vsel %vm634_vm6, %v722_v51, %v721_v53  ;;  %v2893_v59 = vld.sshfl [vmem:[%s2872_s17 + $0x6] sm:$0x1 pattern:$0x76325410]  ;;  %v612_v60 = vunpack.c.l.b16 %v2887_v55  ;;  %v2945_v37 = vld [vmem:[%s3303_s3] ss:$0 sm:$0xff] }
  0x46   : > { %v725_v61 = vsel %vm637_vm7, %v724_v54, %v723_v58  ;;  %v2898_v62 = vld.sshfl [vmem:[%s2872_s17 + $0x8] sm:$0x1 pattern:$0x76325410]  ;;  %v613_v63 = vunpack.c.l.b16 %v2893_v59  ;;  %v618_v0 = vrot.slane %v611_v57, 7  ;;  %v1028_v32 = vrot.slane %v610_v56, 1 }
  0x47   : > { %v726_v1 = vpack.c.b16 %v725_v61, %v725_v61  ;;  %v2904_v2 = vld.sshfl [vmem:[%s2872_s17 + $0xa] sm:$0x1 pattern:$0x76325410]  ;;  %v614_v3 = vunpack.c.l.b16 %v2898_v62  ;;  %v621_v4 = vrot.slane %v612_v60, 6  ;;  %s514_s8 = scalar_select %p513_p0, %s2678_s21, 1 }
  0x48   : > { %v2910_v5 = vld.sshfl [vmem:[%s2872_s17 + $0xc] sm:$0x1 pattern:$0x76325410]  ;;  %v615_v6 = vunpack.c.l.b16 %v2904_v2  ;;  %v620_v7 = vsel %vm619_vm1, %v618_v0, %v610_v56  ;;  %v624_v8 = vrot.slane %v613_v63, 5  ;;  %v1032_v42 = vrot.slane %v613_v63, 6 }
  0x49   : > { %v732_v9 = vsel %vm727_vm8, %v726_v1, 0  ;;  %v2920_v10 = vld.sshfl [vmem:[%s2872_s17 + $0xe] sm:$0x1 pattern:$0x76325410]  ;;  %v616_v11 = vunpack.c.l.b16 %v2910_v5  ;;  %v623_v12 = vsel %vm622_vm2, %v621_v4, %v620_v7  ;;  %v627_v13 = vrot.slane %v614_v3, 4 }
  0x4a   : > { %2484 = vmatpush3.bf16.xpose.msra.mxu0 %v732_v9  ;;  %v617_v14 = vunpack.c.l.b16 %v2920_v10  ;;  %v626_v15 = vsel %vm625_vm3, %v624_v8, %v623_v12  ;;  %v630_v16 = vrot.slane %v615_v6, 3  ;;  %v2957_v61 = vld.sshfl [vmem:[%s2954_s27] sm:$0x1 pattern:$0x76325410]  ;;  %s2346_s9 = sshll.u32 %s514_s8, 2 }
  0x4b   : > { %v629_v17 = vsel %vm628_vm4, %v627_v13, %v626_v15  ;;  %v633_v18 = vrot.slane %v616_v11, 2  ;;  %2501 = vmatprep.subr.bf16.mxu0 %v2688_v24  ;;  %v2960_v0 = vld.sshfl [vmem:[%s2954_s27 + $0x2] sm:$0x1 pattern:$0x76325410]  ;;  %v860_v4 = vunpack.c.l.b16 %v2957_v61  ;;  %v1038_v2 = vrot.slane %v616_v11, 3  ;;  %s3152_s12 = scalar_lea.vmem %s3304_s4, %s2346_s9 }
  0x4c   : > { %v632_v19 = vsel %vm631_vm5, %v630_v16, %v629_v17  ;;  %v636_v20 = vrot.slane %v617_v14, 1  ;;  %v2963_v1 = vld.sshfl [vmem:[%s2954_s27 + $0x4] sm:$0x1 pattern:$0x76325410]  ;;  %v861_v7 = vunpack.c.l.b16 %v2960_v0  ;;  %s3251_s25 = scalar_lea.sflag [#allocation6], %s456_s28 }
  0x4d   : > { %v635_v21 = vsel %vm634_vm6, %v633_v18, %v632_v19  ;;  %v2968_v8 = vld.sshfl [vmem:[%s2954_s27 + $0x6] sm:$0x1 pattern:$0x76325410]  ;;  %v862_v9 = vunpack.c.l.b16 %v2963_v1  ;;  %s2691_s21 = smov [#allocation5]  }
  0x4e   : > { %v638_v22 = vsel %vm637_vm7, %v636_v20, %v635_v21  ;;  %v2972_v12 = vld.sshfl [vmem:[%s2954_s27 + $0x8] sm:$0x1 pattern:$0x76325410]  ;;  %v863_v13 = vunpack.c.l.b16 %v2968_v8  ;;  %v868_v15 = vrot.slane %v861_v7, 7 }
  0x4f   : > { %v639_v23 = vpack.c.b16 %v638_v22, %v638_v22  ;;  %v2978_v16 = vld.sshfl [vmem:[%s2954_s27 + $0xa] sm:$0x1 pattern:$0x76325410]  ;;  %v864_v17 = vunpack.c.l.b16 %v2972_v12  ;;  %v870_v18 = vrot.slane %v862_v9, 6 }
  0x50   : > { %v2984_v19 = vld.sshfl [vmem:[%s2954_s27 + $0xc] sm:$0x1 pattern:$0x76325410]  ;;  %v865_v20 = vunpack.c.l.b16 %v2978_v16  ;;  %v869_v21 = vsel %vm619_vm1, %v868_v15, %v860_v4  ;;  %v872_v22 = vrot.slane %v863_v13, 5 }
  0x51   : > { %2486 = vmatmul.mubr.msk.bf16.vlgmr.msra.gmra.mxu0 %vm727_vm8, %v639_v23  ;;  %v2993_v23 = vld.sshfl [vmem:[%s2954_s27 + $0xe] sm:$0x1 pattern:$0x76325410] }
  0x52   : > { %2503 = vmatprep.mubr.msk.bf16.mxu0 %vm2689_vm0, %v2688_v24  ;;  %v2414_v36 = vld.sshfl [vmem:[%s2818_s16 + $0x8] sm:$0x2 pattern:$0x76325410] }
  0x53   : > { %v2415_v56 = vld.sshfl [vmem:[%s2818_s16 + $0xa] sm:$0x2 pattern:$0x76325410] }
  0x54   : > { %v3062_v46 = vld.sshfl [vmem:[%s2818_s16 + $0xc] sm:$0x2 pattern:$0x76325410] }
  0x55   : > { %v3073_v59 = vld.sshfl [vmem:[%s2872_s17 + $0x6] sm:$0x2 pattern:$0x76325410] }
  0x56   : > { %v1425_v62 = vunpack.c.l.b16 %v3073_v59 }
 0x111   : > { %v768_v34 = vpop.f32.mrf.mxu0 }
 0x112   : > { %v774_v40 = vmul.f32 0.35355338, %v768_v34  ;;  %v866_v34 = vunpack.c.l.b16 %v2984_v19  ;;  %v2421_v19 = vld.sshfl [vmem:[%s2954_s27 + $0x2] sm:$0x2 pattern:$0x76325410] }
 0x113   : > { %v2487_v41 = vpop.f32.mrf.mxu0 }
 0x114   : > { %v781_v44 = vadd.f32 %v2945_v37, %v774_v40  ;;  %v871_v40 = vsel %vm622_vm2, %v870_v18, %v869_v21  ;;  %v874_v41 = vrot.slane %v864_v17, 4 }
 0x115   : > { %v771_v45 = vpop.f32.mrf.mxu0 }
 0x116   : > { %v782_v47 = vsel %vm727_vm8, %v781_v44, -inf  ;;  %v873_v45 = vsel %vm625_vm3, %v872_v22, %v871_v40  ;;  %v1115_v22 = vrot.slane %v704_v28, 1  ;;  %v1117_v40 = vrot.slane %v706_v31, 7 }
 0x117   : > { %783 = vmax.xlane.f32.xlu0 %v782_v47  ;;  %v2488_v48 = vpop.f32.mrf.mxu0  ;;  %v876_v47 = vrot.slane %v865_v20, 3 }
 0x118   : > { %v875_v48 = vsel %vm628_vm4, %v874_v41, %v873_v45  ;;  %v1116_v41 = vsel %vm619_vm1, %v705_v29, %v1115_v22  ;;  %v2410_v45 = vld.sshfl [vmem:[%s2818_s16] sm:$0x2 pattern:$0x76325410] }
 0x119   : > { %v1509_v28 = vunpack.c.l.b16 %v2410_v45  ;;  %v3031_v29 = vld.sshfl [vmem:[%s2818_s16 + $0x6] sm:$0x2 pattern:$0x76325410] }
 0x1a0   : > { %v784_v50 = vpop.xlane.xlu0 %783 }
 0x1a1   : > { %v785_v51 = vsub.f32 %v781_v44, %v784_v50  ;;  %v867_v44 = vunpack.c.l.b16 %v2993_v23  ;;  %v878_v50 = vrot.slane %v866_v34, 2  ;;  %v1659_v23 = vunpack.c.l.b16 %v2421_v19 }
 0x1a3   : > { %v786_v53 = vmul.f32 1.442695, %v785_v51  ;;  %v877_v51 = vsel %vm631_vm5, %v876_v47, %v875_v48  ;;  %v1119_v47 = vrot.slane %v707_v33, 6  ;;  %v1276_v8 = vrot.slane %v867_v44, 2 }
 0x1a4   : > { %v2411_v48 = vld.sshfl [vmem:[%s2818_s16 + $0x2] sm:$0x2 pattern:$0x76325410] }
 0x1a5   : > { %2594 = vpow2.f32 %v786_v53  ;;  %v880_v53 = vrot.slane %v867_v44, 1  ;;  %v1510_v27 = vunpack.c.l.b16 %v2411_v48  ;;  %v2412_v33 = vld.sshfl [vmem:[%s2818_s16 + $0x4] sm:$0x2 pattern:$0x76325410] }
 0x1a6   : > { %v1511_v39 = vunpack.c.l.b16 %v2412_v33  ;;  %v3067_v48 = vld.sshfl [vmem:[%s2818_s16 + $0xe] sm:$0x2 pattern:$0x76325410] }
 0x1a7   : > { %v2423_v44 = vld.sshfl [vmem:[%s2954_s27 + $0x6] sm:$0x2 pattern:$0x76325410] }
 0x1b2   : > { %v2949_v54 = vpop.eup %2594 }
 0x1b3   : > { %v788_v58 = vsel %vm727_vm8, %v2949_v54, 0.0 }
 0x1b4   : > { %789 = vadd.xlane.f32.xlu0 %v788_v58  ;;  %v879_v58 = vsel %vm634_vm6, %v878_v50, %v877_v51  ;;  %v1118_v50 = vsel %vm622_vm2, %v1117_v40, %v1116_v41  ;;  %v1517_v51 = vrot.slane %v1509_v28, 2  ;;  %v1030_v40 = vrot.slane %v612_v60, 7 }
 0x1b5   : > { %v881_v15 = vsel %vm637_vm7, %v880_v53, %v879_v58  ;;  %v1120_v31 = vsel %vm625_vm3, %v1119_v47, %v1118_v50  ;;  %v1518_v53 = vrot.slane %v1510_v27, 1  ;;  %v1125_v58 = vrot.slane %v710_v43, 3 }
 0x1b6   : > { %v882_v18 = vpack.c.b16 %v881_v15, %v881_v15  ;;  %v1122_v30 = vsel %vm628_vm4, %v1121_v25, %v1120_v31  ;;  %v1512_v15 = vunpack.c.l.b16 %v3031_v29  ;;  %v1029_v43 = vsel %vm619_vm1, %v611_v57, %v1028_v32 }
 0x1b7   : > { %v1124_v35 = vsel %vm631_vm5, %v1123_v26, %v1122_v30  ;;  %v1519_v49 = vsel %vm619_vm1, %v1518_v53, %v1517_v51  ;;  %v1513_v41 = vunpack.c.l.b16 %v2414_v36  ;;  %v1031_v57 = vsel %vm622_vm2, %v1030_v40, %v1029_v43  ;;  %v2404_v51 = vld.sshfl [vmem:[%s2872_s17 + $0x4] sm:$0x2 pattern:$0x76325410] }
 0x1b8   : > { %v888_v21 = vsel %vm886_vm9, %v882_v18, 0  ;;  %v3042_v18 = vld.sshfl [vmem:[%s2872_s17] sm:$0x2 pattern:$0x76325410]  ;;  %v1126_v45 = vsel %vm634_vm6, %v1125_v58, %v1124_v35  ;;  %v1521_v55 = vrot.slane %v1512_v15, 7  ;;  %v1520_v52 = vsel %vm622_vm2, %v1511_v39, %v1519_v49 }
 0x1b9   : > { %2490 = vmatpush3.bf16.msra.mxu1 %v888_v21  ;;  %v2403_v21 = vld.sshfl [vmem:[%s2872_s17 + $0x2] sm:$0x2 pattern:$0x76325410]  ;;  %v1422_v60 = vunpack.c.l.b16 %v3042_v18  ;;  %v1514_v50 = vunpack.c.l.b16 %v2415_v56  ;;  %v1919_v25 = vrot.slane %v1509_v28, 3  ;;  %v1920_v31 = vrot.slane %v1510_v27, 2 }
 0x1ba   : > { %2495 = vmatprep.subr.bf16.mxu1 %v2688_v24  ;;  %v1423_v47 = vunpack.c.l.b16 %v2403_v21  ;;  %v1128_v26 = vsel %vm637_vm7, %v1127_v38, %v1126_v45  ;;  %v1034_v30 = vrot.slane %v614_v3, 5  ;;  %v1523_v33 = vrot.slane %v1513_v41, 6  ;;  %v2406_v35 = vld.sshfl [vmem:[%s2872_s17 + $0x8] sm:$0x2 pattern:$0x76325410] }
 0x1bb   : > { %v1522_v63 = vsel %vm625_vm3, %v1521_v55, %v1520_v52  ;;  %v1430_v53 = vrot.slane %v1422_v60, 2  ;;  %v1033_v36 = vsel %vm625_vm3, %v1032_v42, %v1031_v57  ;;  %v1515_v58 = vunpack.c.l.b16 %v3062_v46  ;;  %v2407_v56 = vld.sshfl [vmem:[%s2872_s17 + $0xa] sm:$0x2 pattern:$0x76325410] }
 0x1bc   : > { %v1431_v32 = vrot.slane %v1423_v47, 1  ;;  %v1922_v28 = vrot.slane %v1511_v39, 1  ;;  %v1129_v27 = vpack.c.b16 %v1128_v26, %v1128_v26  ;;  %v1525_v18 = vrot.slane %v1514_v50, 5 }
 0x1bd   : > { %v1921_v3 = vsel %vm619_vm1, %v1920_v31, %v1919_v25  ;;  %v1036_v21 = vrot.slane %v615_v6, 4  ;;  %v1524_v40 = vsel %vm628_vm4, %v1523_v33, %v1522_v63  ;;  %v1424_v49 = vunpack.c.l.b16 %v2404_v51  ;;  %v2408_v26 = vld.sshfl [vmem:[%s2872_s17 + $0xc] sm:$0x2 pattern:$0x76325410] }
 0x1be   : > { %v1035_v38 = vsel %vm628_vm4, %v1034_v30, %v1033_v36  ;;  %v1432_v39 = vsel %vm619_vm1, %v1431_v32, %v1430_v53  ;;  %v1527_v43 = vrot.slane %v1515_v58, 4  ;;  %v1426_v45 = vunpack.c.l.b16 %v2406_v35 }
 0x1bf   : > { %v1923_v55 = vsel %vm622_vm2, %v1922_v28, %v1921_v3  ;;  %v1134_v42 = vsel %vm727_vm8, %v1129_v27, 0  ;;  %v1526_v6 = vsel %vm631_vm5, %v1525_v18, %v1524_v40  ;;  %v1434_v46 = vrot.slane %v1425_v62, 7  ;;  %v2409_v27 = vld.sshfl [vmem:[%s2872_s17 + $0xe] sm:$0x2 pattern:$0x76325410] }
 0x1c0   : > { %v1037_v52 = vsel %vm631_vm5, %v1036_v21, %v1035_v38  ;;  %v1925_v25 = vrot.slane %v1513_v41, 7  ;;  %v1427_v30 = vunpack.c.l.b16 %v2407_v56  ;;  %v1924_v5 = vsel %vm625_vm3, %v1512_v15, %v1923_v55 }
 0x1c1   : > { %v1832_v11 = vrot.slane %v1422_v60, 3  ;;  %v1833_v33 = vrot.slane %v1423_v47, 2  ;;  %v1040_v51 = vrot.slane %v617_v14, 2  ;;  %v1528_v53 = vsel %vm634_vm6, %v1527_v43, %v1526_v6 }
 0x1c2   : > { %v1436_v32 = vrot.slane %v1426_v45, 6  ;;  %v1039_v41 = vsel %vm634_vm6, %v1038_v2, %v1037_v52  ;;  %v1927_v28 = vrot.slane %v1514_v50, 6  ;;  %v1428_v15 = vunpack.c.l.b16 %v2408_v26 }
 0x1c3   : > { %v1926_v60 = vsel %vm628_vm4, %v1925_v25, %v1924_v5  ;;  %v1835_v47 = vrot.slane %v1424_v49, 1  ;;  %v1438_v10 = vrot.slane %v1427_v30, 5  ;;  %v1834_v14 = vsel %vm619_vm1, %v1833_v33, %v1832_v11 }
 0x1c4   : > { %v1929_v35 = vrot.slane %v1515_v58, 5  ;;  %v1041_v50 = vsel %vm637_vm7, %v1040_v51, %v1039_v41  ;;  %v1429_v3 = vunpack.c.l.b16 %v2409_v27  ;;  %v1928_v21 = vsel %vm631_vm5, %v1927_v28, %v1926_v60 }
 0x1c5   : > { %v1836_v58 = vsel %vm622_vm2, %v1835_v47, %v1834_v14  ;;  %v1042_v43 = vpack.c.b16 %v1041_v50, %v1041_v50  ;;  %v1838_v55 = vrot.slane %v1426_v45, 7  ;;  %v1842_v45 = vrot.slane %v1428_v15, 5 }
 0x1c6   : > { %v1930_v56 = vsel %vm634_vm6, %v1929_v35, %v1928_v21  ;;  %v1837_v2 = vsel %vm625_vm3, %v1425_v62, %v1836_v58 }
 0x23d   : > { %v790_v22 = vpop.xlane.xlu0 %789 }
 0x23e   : > { %2596 = vrcp.f32 %v790_v22  ;;  %v1516_v22 = vunpack.c.l.b16 %v3067_v48  ;;  %v1433_v48 = vsel %vm622_vm2, %v1424_v49, %v1432_v39  ;;  %v1440_v49 = vrot.slane %v1428_v15, 4 }
 0x23f   : > { %v1435_v36 = vsel %vm625_vm3, %v1434_v46, %v1433_v48 }
 0x240   : > { %v1529_v57 = vrot.slane %v1516_v22, 3  ;;  %v1437_v18 = vsel %vm628_vm4, %v1436_v32, %v1435_v36  ;;  %v1931_v39 = vrot.slane %v1516_v22, 4  ;;  %v1839_v22 = vsel %vm628_vm4, %v1838_v55, %v1837_v2 }
 0x241   : > { %v1439_v38 = vsel %vm631_vm5, %v1438_v10, %v1437_v18 }
 0x242   : > { %v1441_v46 = vsel %vm634_vm6, %v1440_v49, %v1439_v38  ;;  %v1932_v52 = vsel %vm637_vm7, %v1931_v39, %v1930_v56 }
 0x243   : > { %v1933_v62 = vpack.c.b16 %v1932_v52, %v1932_v52 }
 0x245   : > { %v1938_v26 = vsel %vm727_vm8, %v1933_v62, 0 }
 0x24b   : > { %v2597_v31 = vpop.eup %2596 }
 0x24c   : > { %v792_v63 = vmul.f32 %v2597_v31, %v2949_v54  ;;  %v1530_v54 = vsel %vm637_vm7, %v1529_v57, %v1528_v53  ;;  %v1840_v57 = vrot.slane %v1427_v30, 6  ;;  %v1844_v31 = vrot.slane %v1429_v3, 4 }
 0x24d   : > { %v1531_v40 = vpack.c.b16 %v1530_v54, %v1530_v54 }
 0x24e   : > { %v793_v29 = vpack.c.bf16 %v792_v63, %v792_v63  ;;  %v1841_v48 = vsel %vm631_vm5, %v1840_v57, %v1839_v22 }
 0x24f   : > { %v1536_v6 = vsel %vm727_vm8, %v1531_v40, 0  ;;  %v1843_v30 = vsel %vm634_vm6, %v1842_v45, %v1841_v48  ;;  %v1264_v45 = vrot.slane %v860_v4, 1  ;;  %v1270_v4 = vrot.slane %v864_v17, 5 }
 0x250   : > { %2492 = vmatmul.mubr.msk.bf16.vlgmr.msra.gmra.mxu1 %vm727_vm8, %v793_v29  ;;  %795 = vst.msk [vmem:[%s3115_s30] sm:$0xf] %vm794_vm10, %v793_v29  ;;  %v1845_v5 = vsel %vm637_vm7, %v1844_v31, %v1843_v30  ;;  %v1268_v30 = vrot.slane %v863_v13, 6 }
 0x251   : > { %2496 = vmatpush3.bf16.xpose.msra.mxu1 %v1134_v42  ;;  %2497 = vmatprep.mubr.msk.bf16.mxu1 %vm2689_vm0, %v2688_v24  ;;  %v1442_v42 = vrot.slane %v1429_v3, 3  ;;  %v1846_v11 = vpack.c.b16 %v1845_v5, %v1845_v5 }
 0x252   : > { %2507 = vmatprep.subr.bf16.mxu1 %v2688_v24 }
 0x253   : > { %v1443_v59 = vsel %vm637_vm7, %v1442_v42, %v1441_v46 }
 0x254   : > { %v1444_v25 = vpack.c.b16 %v1443_v59, %v1443_v59 }
 0x258   : > { %2498 = vmatmul.mubr.msk.bf16.vlgmr.msra.gmra.mxu1 %vm727_vm8, %v1042_v43 }
 0x259   : > { %2508 = vmatpush3.bf16.xpose.msra.mxu1 %v1536_v6  ;;  %2509 = vmatprep.mubr.msk.bf16.mxu1 %vm2689_vm0, %v2688_v24 }
 0x25a   : > { %2519 = vmatprep.subr.bf16.mxu1 %v2688_v24 }
 0x260   : > { %2510 = vmatmul.mubr.msk.bf16.vlgmr.msra.gmra.mxu1 %vm727_vm8, %v1444_v25  ;;  %v1266_v25 = vrot.slane %v862_v9, 7  ;;  %v1272_v9 = vrot.slane %v865_v20, 4  ;;  %v2420_v20 = vld.sshfl [vmem:[%s2954_s27] sm:$0x2 pattern:$0x76325410] }
 0x261   : > { %2520 = vmatpush3.bf16.xpose.msra.mxu1 %v1938_v26  ;;  %2521 = vmatprep.mubr.msk.bf16.mxu1 %vm2689_vm0, %v2688_v24  ;;  %v1265_v26 = vsel %vm619_vm1, %v861_v7, %v1264_v45  ;;  %v1274_v7 = vrot.slane %v866_v34, 3  ;;  %v1658_v34 = vunpack.c.l.b16 %v2420_v20 }
 0x262   : > { %v1267_v61 = vsel %vm622_vm2, %v1266_v25, %v1265_v26 }
 0x263   : > { %v1269_v1 = vsel %vm625_vm3, %v1268_v30, %v1267_v61 }
 0x264   : > { %v1271_v0 = vsel %vm628_vm4, %v1270_v4, %v1269_v1 }
 0x265   : > { %v1273_v13 = vsel %vm631_vm5, %v1272_v9, %v1271_v0 }
 0x266   : > { %v1275_v12 = vsel %vm634_vm6, %v1274_v7, %v1273_v13 }
 0x267   : > { %v1277_v17 = vsel %vm637_vm7, %v1276_v8, %v1275_v12 }
 0x268   : > { %2522 = vmatmul.mubr.msk.bf16.vlgmr.msra.gmra.mxu1 %vm727_vm8, %v1846_v11  ;;  %v1278_v5 = vpack.c.b16 %v1277_v17, %v1277_v17  ;;  %v2422_v11 = vld.sshfl [vmem:[%s2954_s27 + $0x4] sm:$0x2 pattern:$0x76325410] }
 0x26a   : > { %v1283_v16 = vsel %vm886_vm9, %v1278_v5, 0 }
 0x26b   : > { %2502 = vmatpush3.bf16.msra.mxu0 %v1283_v16 }
 0x26c   : > { %2513 = vmatprep.subr.bf16.mxu0 %v2688_v24 }
 0x310   : > { %v924_v33 = vpop.f32.mrf.mxu1 }
 0x311   : > { %v930_v63 = vpack.c.bf16 %v924_v33, %v924_v33  ;;  %v1666_v33 = vrot.slane %v1658_v34, 2 }
 0x312   : > { %v2493_v51 = vpop.f32.mrf.mxu1 }
 0x313   : > { %931 = vst.msk [vmem:[%s3152_s12] sm:$0xf] %vm794_vm10, %v930_v63  ;;  %v1667_v63 = vrot.slane %v1659_v23, 1 }
 0x314   : > { %v927_v53 = vpop.f32.mrf.mxu1  ;;  %v2424_v51 = vld.sshfl [vmem:[%s2954_s27 + $0x8] sm:$0x2 pattern:$0x76325410] }
 0x315   : > { %v1661_v53 = vunpack.c.l.b16 %v2423_v44 }
 0x316   : > { %v2494_v32 = vpop.f32.mrf.mxu1 }
 0x317   : > { %v1660_v32 = vunpack.c.l.b16 %v2422_v11 }
 0x318   : > { %v1170_v41 = vpop.f32.mrf.mxu1 }
 0x319   : > { %v1176_v36 = vmul.f32 0.35355338, %v1170_v41  ;;  %v1668_v41 = vsel %vm619_vm1, %v1667_v63, %v1666_v33 }
 0x31a   : > { %v2499_v28 = vpop.f32.mrf.mxu1 }
 0x31b   : > { %v1177_v29 = vadd.f32 %v2945_v37, %v1176_v36  ;;  %v2425_v36 = vld.sshfl [vmem:[%s2954_s27 + $0xa] sm:$0x2 pattern:$0x76325410]  ;;  %v1662_v28 = vunpack.c.l.b16 %v2424_v51 }
 0x31c   : > { %v1173_v27 = vpop.f32.mrf.mxu1 }
 0x31d   : > { %v1178_v15 = vsel %vm727_vm8, %v1177_v29, -inf  ;;  %v1669_v27 = vsel %vm622_vm2, %v1660_v32, %v1668_v41 }
 0x31e   : > { %1179 = vmax.xlane.f32.xlu1 %v1178_v15  ;;  %v2500_v60 = vpop.f32.mrf.mxu1  ;;  %v2426_v15 = vld.sshfl [vmem:[%s2954_s27 + $0xc] sm:$0x2 pattern:$0x76325410] }
 0x31f   : > { %v1663_v60 = vunpack.c.l.b16 %v2425_v36 }
 0x320   : > { %v1572_v47 = vpop.f32.mrf.mxu1 }
 0x321   : > { %v1578_v54 = vmul.f32 0.35355338, %v1572_v47  ;;  %v2068_v47 = vrot.slane %v1658_v34, 3 }
 0x322   : > { %v2511_v10 = vpop.f32.mrf.mxu1 }
 0x323   : > { %v1579_v14 = vadd.f32 %v2945_v37, %v1578_v54  ;;  %v2069_v54 = vrot.slane %v1659_v23, 2  ;;  %v1672_v10 = vrot.slane %v1662_v28, 6 }
 0x324   : > { %v1575_v18 = vpop.f32.mrf.mxu1 }
 0x325   : > { %v1580_v35 = vsel %vm727_vm8, %v1579_v14, -inf  ;;  %v2427_v18 = vld.sshfl [vmem:[%s2954_s27 + $0xe] sm:$0x2 pattern:$0x76325410]  ;;  %s2610_s27 = scalar_lea.vmem %s3247_s15, 256 }
 0x326   : > { %1581 = vmax.xlane.f32.xlu1 %v1580_v35  ;;  %v2512_v50 = vpop.f32.mrf.mxu1  ;;  %v1664_v35 = vunpack.c.l.b16 %v2426_v15  ;;  %p2611_p1 = scmp.ne.s32.totalorder %s3247_s15, %s2610_s27 }
 0x327   : > { %v2071_v50 = vrot.slane %v1660_v32, 1 }
 0x328   : > { %v1974_v3 = vpop.f32.mrf.mxu1  ;;  %p2612_p2 = pnand %p2611_p1, %p2769_p5 }
 0x329   : > { %v1980_v21 = vmul.f32 0.35355338, %v1974_v3 }
 0x32a   : > { %v2523_v40 = vpop.f32.mrf.mxu1  ;;  %p2613_p3 = pneg %p2612_p2 }
 0x32b   : > { %v1981_v49 = vadd.f32 %v2945_v37, %v1980_v21  ;;  %v1674_v21 = vrot.slane %v1663_v60, 5  ;;  %v2070_v40 = vsel %vm619_vm1, %v2069_v54, %v2068_v47 }
 0x32c   : > { %v1977_v58 = vpop.f32.mrf.mxu1 }
 0x32d   : > { %v1982_v38 = vsel %vm727_vm8, %v1981_v49, -inf  ;;  %v1665_v58 = vunpack.c.l.b16 %v2427_v18 }
 0x32e   : > { %1983 = vmax.xlane.f32.xlu0 %v1982_v38  ;;  %v2524_v39 = vpop.f32.mrf.mxu1  ;;  %v1676_v38 = vrot.slane %v1664_v35, 4 }
 0x32f   : > { %v2072_v39 = vsel %vm622_vm2, %v2071_v50, %v2070_v40 }
 0x3a7   : > { %v1180_v43 = vpop.xlane.xlu1 %1179 }
 0x3a8   : > { %v1181_v56 = vsub.f32 %v1177_v29, %v1180_v43  ;;  %v1670_v29 = vrot.slane %v1661_v53, 7 }
 0x3aa   : > { %v1182_v55 = vmul.f32 1.442695, %v1181_v56  ;;  %v2074_v56 = vrot.slane %v1662_v28, 7 }
 0x3ac   : > { %2598 = vpow2.f32 %v1182_v55  ;;  %v1678_v55 = vrot.slane %v1665_v58, 3 }
 0x3af   : > { %v1582_v42 = vpop.xlane.xlu1 %1581 }
 0x3b0   : > { %v1583_v2 = vsub.f32 %v1579_v14, %v1582_v42  ;;  %v1671_v14 = vsel %vm625_vm3, %v1670_v29, %v1669_v27  ;;  %v2073_v42 = vsel %vm625_vm3, %v1661_v53, %v2072_v39 }
 0x3b2   : > { %v1584_v6 = vmul.f32 1.442695, %v1583_v2 }
 0x3b4   : > { %2600 = vpow2.f32 %v1584_v6 }
 0x3b7   : > { %v1984_v46 = vpop.xlane.xlu0 %1983 }
 0x3b8   : > { %v1985_v52 = vsub.f32 %v1981_v49, %v1984_v46  ;;  %v1673_v49 = vsel %vm628_vm4, %v1672_v10, %v1671_v14  ;;  %v2076_v46 = vrot.slane %v1663_v60, 6 }
 0x3b9   : > { %v3162_v57 = vpop.eup %2598  ;;  %v1675_v43 = vsel %vm631_vm5, %v1674_v21, %v1673_v49 }
 0x3ba   : > { %v1986_v22 = vmul.f32 1.442695, %v1985_v52  ;;  %v1184_v37 = vsel %vm727_vm8, %v3162_v57, 0.0  ;;  %v1677_v2 = vsel %vm634_vm6, %v1676_v38, %v1675_v43  ;;  %v2075_v52 = vsel %vm628_vm4, %v2074_v56, %v2073_v42 }
 0x3bb   : > { %1185 = vadd.xlane.f32.xlu1 %v1184_v37  ;;  %v2078_v37 = vrot.slane %v1664_v35, 5 }
 0x3bc   : > { %2602 = vpow2.f32 %v1986_v22  ;;  %v1679_v22 = vsel %vm637_vm7, %v1678_v55, %v1677_v2 }
 0x3bd   : > { %v1680_v45 = vpack.c.b16 %v1679_v22, %v1679_v22 }
 0x3bf   : > { %v1685_v1 = vsel %vm886_vm9, %v1680_v45, 0 }
 0x3c1   : > { %v3166_v59 = vpop.eup %2600 }
 0x3c2   : > { %v1586_v62 = vsel %vm727_vm8, %v3166_v59, 0.0 }
 0x3c3   : > { %1587 = vadd.xlane.f32.xlu0 %v1586_v62  ;;  %v2077_v62 = vsel %vm631_vm5, %v2076_v46, %v2075_v52 }
 0x3c4   : > { %v2079_v30 = vsel %vm634_vm6, %v2078_v37, %v2077_v62 }
 0x3c9   : > { %v3172_v48 = vpop.eup %2602 }
 0x3ca   : > { %v1988_v31 = vsel %vm727_vm8, %v3172_v48, 0.0 }
 0x3cb   : > { %1989 = vadd.xlane.f32.xlu1 %v1988_v31  ;;  %v2080_v31 = vrot.slane %v1665_v58, 4 }
 0x3cd   : > { %v2081_v9 = vsel %vm637_vm7, %v2080_v31, %v2079_v30 }
 0x444   : > { %v1186_v3 = vpop.xlane.xlu1 %1185 }
 0x445   : > { %2604 = vrcp.f32 %v1186_v3 }
 0x44c   : > { %v1588_v6 = vpop.xlane.xlu0 %1587 }
 0x44d   : > { %2606 = vrcp.f32 %v1588_v6 }
 0x452   : > { %v2605_v25 = vpop.eup %2604 }
 0x453   : > { %v1188_v26 = vmul.f32 %v2605_v25, %v3162_v57  ;;  %v2082_v57 = vpack.c.b16 %v2081_v9, %v2081_v9 }
 0x454   : > { %v1990_v61 = vpop.xlane.xlu1 %1989 }
 0x455   : > { %2608 = vrcp.f32 %v1990_v61  ;;  %v1189_v4 = vpack.c.bf16 %v1188_v26, %v1188_v26  ;;  %v2087_v13 = vsel %vm886_vm9, %v2082_v57, 0 }
 0x457   : > { %2391 = vst.msk [vmem:[%s3115_s30 + $0x4] sm:$0xf] %vm794_vm10, %v1189_v4  ;;  %2504 = vmatmul.mubr.msk.bf16.vlgmr.msra.gmra.mxu0 %vm727_vm8, %v1189_v4 }
 0x458   : > { %2514 = vmatpush3.bf16.msra.mxu0 %v1685_v1  ;;  %2515 = vmatprep.mubr.msk.bf16.mxu0 %vm2689_vm0, %v2688_v24 }
 0x459   : > { %2525 = vmatprep.subr.bf16.mxu0 %v2688_v24 }
 0x45a   : > { %v2607_v0 = vpop.eup %2606 }
 0x45b   : > { %v1590_v7 = vmul.f32 %v2607_v0, %v3166_v59 }
 0x45d   : > { %v1591_v8 = vpack.c.bf16 %v1590_v7, %v1590_v7 }
 0x45f   : > { %2419 = vst.msk [vmem:[%s3115_s30 + $0x8] sm:$0xf] %vm794_vm10, %v1591_v8  ;;  %2516 = vmatmul.mubr.msk.bf16.vlgmr.msra.gmra.mxu0 %vm727_vm8, %v1591_v8 }
 0x460   : > { %2526 = vmatpush3.bf16.msra.mxu0 %v2087_v13  ;;  %2527 = vmatprep.mubr.msk.bf16.mxu0 %vm2689_vm0, %v2688_v24 }
 0x462   : > { %v2609_v12 = vpop.eup %2608 }
 0x463   : > { %v1992_v17 = vmul.f32 %v2609_v12, %v3172_v48 }
 0x465   : > { %v1993_v5 = vpack.c.bf16 %v1992_v17, %v1992_v17 }
 0x467   : > { %2447 = vst.msk [vmem:[%s3115_s30 + $0xc] sm:$0xf] %vm794_vm10, %v1993_v5  ;;  %2528 = vmatmul.mubr.msk.bf16.vlgmr.msra.gmra.mxu0 %vm727_vm8, %v1993_v5  ;;  %s2614_s30 = sshll.u32 %s2691_s21, 4  ;;  %s2615_s30 = int_to_ptr.vmem [resolvable:$false] %s2614_s30 }
 0x468   : > { %s2616_s8 = scalar_lea.vmem %s2615_s30, 512  ;;  %p2617_p4 = scmp.lt.s32.totalorder %s3247_s15, %s2615_s30 }
 0x469   : > { %p2618_p6 = scmp.lt.s32.totalorder %s2616_s8, %s2610_s27 }
 0x46b   : > { %p2619_p7 = por %p2618_p6, %p2617_p4 }
 0x46d   : > { %p2620_p8 = pnand %p2619_p7, %p2613_p3 }
 0x517   : > { %v1319_v59 = vpop.f32.mrf.mxu0 }
 0x518   : > { %v2463_v16 = vpack.c.bf16 %v1319_v59, %v1319_v59 }
 0x519   : > { %v2505_v20 = vpop.f32.mrf.mxu0 }
 0x51a   : > { %1329 = vrot.lane.b32.xlu0 %v2463_v16, %s2690_s13 }
 0x51b   : > { %v1322_v19 = vpop.f32.mrf.mxu0 }
 0x51d   : > { %v2506_v24 = vpop.f32.mrf.mxu0 }
 0x51f   : > { %v1721_v48 = vpop.f32.mrf.mxu0 }
 0x520   : > { %2623 = shalt.err (!%p2620_p8)
}
 0x521   : > { %s2624_s28 = scalar_lea.hbm %s3245_s24, 256  ;;  %s2628_s11 = scalar_lea.hbm %s3305_s5, 512 }
 0x522   : > { %p2625_p11 = scmp.ne.s32.totalorder %s3245_s24, %s2624_s28  ;;  %p2629_p0 = scmp.lt.s32.totalorder %s3245_s24, %s3305_s5 }
 0x523   : > { %p2630_p1 = scmp.lt.s32.totalorder %s2628_s11, %s2624_s28 }
 0x524   : > { %p2626_p12 = pnand %p2625_p11, %p2769_p5 }
 0x525   : > { %p2631_p2 = por %p2630_p1, %p2629_p0 }
 0x526   : > { %p2627_p13 = pneg %p2626_p12 }
 0x528   : > { %p2632_p3 = pnand %p2631_p2, %p2627_p13 }
 0x52a   : > { %2635 = shalt.err (!%p2632_p3)
}
 0x52b   : > { %s2692_s16 = smov 64   ;;  %s2693_s17 = smov 4   ;;  %v2464_v34 = vpack.c.bf16 %v1721_v48, %v1721_v48  ;;  %v2517_v23 = vpop.f32.mrf.mxu0  ;;  %vm1332_vm11 = vcmask 126016   ;;  %vm1734_vm12 = vcmask 191616   ;;  %vm2136_vm13 = vcmask 257216  }
 0x52c   : > { %2532 = dma.vmem_to_hbm [thread:$0]  (%p2769_p5), %s3247_s15, 256, %s3245_s24, %s3251_s25, %s2692_s16, %s2692_s16, %s2693_s17  }
 0x52d   : > { %s2694_s27 = smov 16   ;;  %v1724_v44 = vpop.f32.mrf.mxu0  ;;  %s2695_s21 = smov 24  }
 0x52e   : > { %1731 = vrot.lane.b32.xlu1 %v2464_v34, %s2694_s27 }
 0x52f   : > { %v2518_v11 = vpop.f32.mrf.mxu0 }
 0x531   : > { %v2123_v33 = vpop.f32.mrf.mxu0 }
 0x532   : > { %v2465_v63 = vpack.c.bf16 %v2123_v33, %v2123_v33 }
 0x533   : > { %v2529_v51 = vpop.f32.mrf.mxu0 }
 0x534   : > { %2133 = vrot.lane.b32.xlu1 %v2465_v63, %s2695_s21 }
 0x535   : > { %v2126_v53 = vpop.f32.mrf.mxu0 }
 0x537   : > { %v2530_v32 = vpop.f32.mrf.mxu0 }
 0x58c   : > { %v1330_v41 = vpop.permute.xlu0 %1329 }
 0x58d   : > { %1333 = vst.msk [vmem:[%s3152_s12] sm:$0xf] %vm1332_vm11, %v1330_v41 }
 0x5a0   : > { %v1732_v36 = vpop.permute.xlu1 %1731 }
 0x5a1   : > { %1735 = vst.msk [vmem:[%s3152_s12] sm:$0xf] %vm1734_vm12, %v1732_v36 }
 0x5a6   : > { %v2134_v28 = vpop.permute.xlu1 %2133 }
 0x5a7   : > { %2137 = vst.msk [vmem:[%s3152_s12] sm:$0xf] %vm2136_vm13, %v2134_v28 }
 0x5a8 PF: > { %s2188_s29 = sand.u32 1, %s2666_s18   ;;  %p2535_p5 = pnand %p2318_p10, %p2780_p9 }
 0x5a9   : > { %s2189_s15 = scalar_lea.sflag [#allocation6], %s2188_s29 }
 0x5aa   : > { %p2536_p4 = pneg %p2535_p5 }
 0x5ac   : > { %2661 = dma.done.wait (%p2536_p4), %s2189_s15, 256  }
 0x5ad   : > { %2663 = vsyncadd (%p2536_p4), %s2189_s15, 4294967040  ;;  %s19_s23 = sadd.s32 1, %s2686_s23   ;;  %s3309_s18 = smov %s2670_s19 }
 0x5ae   : > { %p16_p6 = scmp.ge.s32.totalorder %s19_s23, 4   ;;  %s3310_s19 = smov %s2674_s20 }
 0x5af   : > { %s3311_s20 = smov %s2778_s6  ;;  %s3312_s21 = smov %s2682_s22 }
 0x5b0   : > { %s3313_s22 = smov %s3315_s26  ;;  %18 = sbr.rel (!%p16_p6) target bundleno = 4 (0x4), region = 230 }
 0x5b5   :  { %2194 = vsyncpa [#allocation6], 1 }
 0x5b6   :  { %2196 = vsyncpa [#allocation6 + $0x1], 1 }

// kernel: _lambda_.36
= control target key start
LH: loop header
LB: loop body
LE: loop exit
PB: predicated region body
PF: predicated region fallthrough
CT: control target
= control target key end

     0   :  { %v124_v0 = vmov 0.0   ;;  %vm125_vm0 = vmmov 0   ;;  %vm41_vm1 = vcmask 261120   ;;  %vm94_vm2 = vcmask 257024   ;;  %s167_s1 = inlined_call_operand.vmem [shape: bf16[32,32], index: 1, kind: input, shape index: {}]   ;;  %s168_s0 = inlined_call_operand.vmem [shape: f32[16,32], index: 0, kind: input, shape index: {}]   ;;  %s169_s2 = inlined_call_operand.vmem [shape: f32[1,32], index: 2, kind: input, shape index: {}]   ;;  %s170_s3 = inlined_call_operand.vmem [shape: bf16[16,32], index: 3, kind: output, shape index: {}]  }
   0x1   :  { %112 = vmatprep.subr.bf16.mxu0 %v124_v0  ;;  %v122_v1 = vld [vmem:[%s167_s1 + $0x8] sm:$0xff]   ;;  %116 = vmatprep.mubr.msk.bf16.mxu0 %vm125_vm0, %v124_v0  ;;  %v123_v2 = vld [vmem:[%s167_s1] sm:$0xff]  }
   0x2   :  { %113 = vmatpush3.bf16.msra.mxu0 %v122_v1  ;;  %v15_v3 = vld [vmem:[%s168_s0] sm:$0xff]  ;;  %v16_v4 = vld [vmem:[%s168_s0 + $0x8] sm:$0xff] }
   0x3   :  { %114 = vmatprep.subr.bf16.mxu0 %v124_v0  ;;  %v17_v5 = vpack.c.bf16 %v16_v4, %v15_v3  ;;  %v101_v6 = vld [vmem:[%s169_s2] ss:$0 sm:$0xff] }
   0x6   :  { %115 = vmatpush3.bf16.msra.mxu0 %v123_v2 }
   0x9   :  { %117 = vmatmul.mubr.msk.bf16.vlgmr.msra.gmra.mxu0 %vm41_vm1, %v17_v5 }
  0xc9   :  { %v79_v7 = vpop.f32.mrf.mxu0 }
  0xca   :  { %v80_v8 = vadd.f32 %v101_v6, %v79_v7 }
  0xcb   :  { %v118_v9 = vpop.f32.mrf.mxu0 }
  0xcc   :  { %v107_v10 = vpack.c.bf16 %v80_v8, %v80_v8 }
  0xcd   :  { %v82_v11 = vpop.f32.mrf.mxu0 }
  0xce   :  { %95 = vst.msk [vmem:[%s170_s3] sm:$0xf] %vm94_vm2, %v107_v10  ;;  %v83_v12 = vadd.f32 %v101_v6, %v82_v11 }
  0xcf   :  { %v119_v13 = vpop.f32.mrf.mxu0 }
  0xd0   :  { %v108_v14 = vpack.c.bf16 %v83_v12, %v83_v12 }
  0xd2   :  { %96 = vst.msk [vmem:[%s170_s3 + $0x4] sm:$0xf] %vm94_vm2, %v108_v14 }

// kernel: _lambda_.49
= control target key start
LH: loop header
LB: loop body
LE: loop exit
PB: predicated region body
PF: predicated region fallthrough
CT: control target
= control target key end

     0   :  { %v139_v1 = vmov 0.0   ;;  %vm140_vm0 = vmmov 0   ;;  %s174_s0 = inlined_call_operand.vmem [shape: f32[16,32], index: 0, kind: input, shape index: {}]   ;;  %s175_s1 = inlined_call_operand.vmem [shape: bf16[32,64], index: 1, kind: input, shape index: {}]   ;;  %s176_s2 = inlined_call_operand.hbm [shape: f32[16,64], index: 2, kind: output, shape index: {}]  }
   0x1   :  { %v115_v0 = vld [vmem:[%s175_s1 + $0x8] sm:$0xff]   ;;  %102 = vmatprep.subr.bf16.mxu0 %v139_v1  ;;  %v116_v2 = vld [vmem:[%s175_s1] sm:$0xff]   ;;  %106 = vmatprep.mubr.msk.bf16.mxu0 %vm140_vm0, %v139_v1 }
   0x2   :  { %103 = vmatpush3.bf16.msra.mxu0 %v115_v0  ;;  %v13_v3 = vld [vmem:[%s174_s0] sm:$0xff]  ;;  %v14_v4 = vld [vmem:[%s174_s0 + $0x8] sm:$0xff] }
   0x3   :  { %7 = vsyncpa [#allocation3], 0  ;;  %104 = vmatprep.subr.bf16.mxu0 %v139_v1  ;;  %v15_v5 = vpack.c.bf16 %v14_v4, %v13_v3  ;;  %vm32_vm1 = vcmask 261120   ;;  %vm77_vm2 = vcmask 523264   ;;  %s141_s17 = smov [#allocation2]  }
   0x4   :  { %s85_s1 = sshll.u32 %s141_s17, 4  ;;  %s86_s1 = int_to_ptr.vmem [resolvable:$true] %s85_s1 }
   0x5   :  { %s117_s18 = scalar_lea.vmem %s86_s1, 256  ;;  %p122_p1 = scmp.lt.s32.totalorder %s86_s1, %s86_s1 }
   0x6   :  { %105 = vmatpush3.bf16.msra.mxu0 %v116_v2  ;;  %p118_p0 = scmp.ne.s32.totalorder %s86_s1, %s117_s18  ;;  %p123_p2 = scmp.lt.s32.totalorder %s117_s18, %s117_s18 }
   0x8   :  { %p124_p3 = por %p123_p2, %p122_p1 }
   0x9   :  { %107 = vmatmul.mubr.msk.bf16.vlgmr.msra.gmra.mxu0 %vm32_vm1, %v15_v5 }
   0xa   :  { %p125_p4 = pnand %p124_p3, %p118_p0 }
  0xc9   :  { %v70_v6 = vpop.f32.mrf.mxu0 }
  0xca   :  { %78 = vst.msk [vmem:[#allocation2] sm:$0xff] %vm77_vm2, %v70_v6 }
  0xcb   :  { %v108_v7 = vpop.f32.mrf.mxu0 }
  0xcd   :  { %v73_v8 = vpop.f32.mrf.mxu0 }
  0xce   :  { %79 = vst.msk [vmem:[#allocation2 + $0x8] sm:$0xff] %vm77_vm2, %v73_v8 }
  0xcf   :  { %v109_v9 = vpop.f32.mrf.mxu0 }
  0xd0   :  { %128 = shalt.err (!%p125_p4)
}
  0xd1   :  { %s142_s0 = smov 128   ;;  %s143_s19 = smov 8  }
  0xd2   :  { %91 = dma.vmem_to_hbm [thread:$0]  %s86_s1, 256, %s176_s2, [#allocation3], %s142_s0, %s142_s0, %s143_s19  }
  0xd3   :  { %137 = dma.done.wait [#allocation3], 256  }
  0xd4   :  { %138 = vsyncadd [#allocation3], 4294967040 }
  0xd5   :  { %95 = vsyncpa [#allocation3], 1 }

// kernel: _lambda_.34
= control target key start
LH: loop header
LB: loop body
LE: loop exit
PB: predicated region body
PF: predicated region fallthrough
CT: control target
= control target key end

     0   :  { %11 = vsyncpa [#allocation6], 0  ;;  %s3320_s0 = inlined_call_operand.vmem [shape: bf16[2,8,3,4,8], index: 0, kind: input, shape index: {}, may-alias: {0,1,2}]   ;;  %s3321_s1 = inlined_call_operand.vmem [shape: bf16[2,8,3,4,8], index: 1, kind: input, shape index: {}, may-alias: {0,1,2}]   ;;  %s3322_s2 = inlined_call_operand.vmem [shape: bf16[2,8,3,4,8], index: 2, kind: input, shape index: {}, may-alias: {0,1,2}]   ;;  %s3323_s3 = inlined_call_operand.vmem [shape: f32[1,1,8], index: 3, kind: input, shape index: {}]   ;;  %s3324_s4 = inlined_call_operand.vmem [shape: bf16[2,8,32], index: 4, kind: output, shape index: {0}]   ;;  %s3325_s5 = inlined_call_operand.hbm [shape: bf16[2,4,8,8], index: 5, kind: output, shape index: {1}]  }
   0x1   :  { %13 = vsyncpa [#allocation6 + $0x1], 0  ;;  %s2739_s18 = smov 0   ;;  %s2741_s19 = smov 0  }
   0x2   :  { %s2743_s20 = smov 0   ;;  %s2745_s21 = smov 0  }
   0x3   :  { %s2747_s22 = smov 0   ;;  %s2749_s23 = smov 0  }
   0x4 LB: > { %s2328_s24 = sadd.s32 4294967295, %s2699_s23   ;;  %s2329_s25 = sadd.s32 4294967294, %s2699_s23   ;;  %s2699_s23 = sphi %s2749_s23, %s19_s23   ;;  %s2695_s22 = sphi %s2747_s22, %s3333_s22   ;;  %s2691_s21 = sphi %s2745_s21, %s3332_s21   ;;  %s2687_s20 = sphi %s2743_s20, %s3331_s20   ;;  %s2683_s19 = sphi %s2741_s19, %s3330_s19   ;;  %s2679_s18 = sphi %s2739_s18, %s3329_s18  }
   0x5   : > { %s31_s26 = sadd.s32 1, %s2695_s22  ;;  %s40_s27 = sadd.s32 1, %s2687_s20 }
   0x6   : > { %p33_p0 = scmp.ge.s32.totalorder %s31_s26, 2  ;;  %p47_p1 = scmp.ne.s32.totalorder %s2687_s20, %s2683_s19 }
   0x7   : > { %p48_p2 = scmp.eq.s32.totalorder %s2699_s23, 0  ;;  %p180_p3 = scmp.eq.s32.totalorder %s2328_s24, 1 }
   0x8   : > { %s3335_s26 = smov (%p33_p0, %s31_s26), 0  ;;  %p185_p6 = scmp.ne.s32.totalorder %s2683_s19, %s2679_s18 }
   0x9   : > { %p2778_p4 = por %p48_p2, %p47_p1  ;;  %p2782_p5 = por %p180_p3, %p47_p1 }
   0xa   : > { %s35_s30 = ssub.s32 %s2695_s22, %s3335_s26  ;;  %p186_p8 = scmp.eq.s32.totalorder %s2329_s25, 1 }
   0xb   : > { %p38_p7 = scmp.eq.s32.totalorder %s35_s30, 0  ;;  %p2331_p10 = scmp.ge.s32.totalorder %s2699_s23, 2 }
   0xc   : > { %p2793_p9 = por %p186_p8, %p185_p6 }
   0xd   : > { %s2791_s6 = scalar_select %p38_p7, %s2687_s20, %s40_s27  }
   0xe   : > { %205 = sbr.rel (%p2331_p10) target bundleno = 49 (0x31), region = 20 }
  0x13   : > { %208 = sbr.rel (!%p2778_p4) target bundleno = 29 (0x1d), region = 24  ;;  %s210_s8 = sand.u32 (%p2778_p4), 1, %s2687_s20  }
  0x14   : > { %s2544_s9 = smul.u32 (%p2778_p4), 48, %s2695_s22  ;;  %s2332_s10 = sshll.u32 (%p2778_p4), %s210_s8, 4 }
  0x15   : > { %s212_s14 = scalar_lea.vmem (%p2778_p4), [#allocation2], %s2332_s10 }
  0x16   : > { %s218_s13 = scalar_lea.vmem (%p2778_p4), %s3320_s0, %s2544_s9 }
  0x17   : > { %v235_v0 = vld [vmem:[%s218_s13] sm:$0x3] (%p2778_p4)  ;;  %v237_v1 = vld [vmem:[%s218_s13 + $0x6] sm:$0x3] (%p2778_p4)  ;;  %v239_v2 = vld [vmem:[%s218_s13 + $0xc] sm:$0x3] (%p2778_p4) }
  0x18   : > { %236 = vst [vmem:[%s212_s14] sm:$0x3] %v235_v0  ;;  %238 = vst [vmem:[%s212_s14 + $0x2] sm:$0x3] %v237_v1  ;;  %v241_v3 = vld [vmem:[%s218_s13 + $0x12] sm:$0x3] }
  0x19   : > { %240 = vst [vmem:[%s212_s14 + $0x4] sm:$0x3] %v239_v2  ;;  %v243_v4 = vld [vmem:[%s218_s13 + $0x18] sm:$0x3]  ;;  %v245_v5 = vld [vmem:[%s218_s13 + $0x1e] sm:$0x3] }
  0x1a   : > { %242 = vst [vmem:[%s212_s14 + $0x6] sm:$0x3] %v241_v3  ;;  %244 = vst [vmem:[%s212_s14 + $0x8] sm:$0x3] %v243_v4  ;;  %v247_v6 = vld [vmem:[%s218_s13 + $0x24] sm:$0x3] }
  0x1b   : > { %246 = vst [vmem:[%s212_s14 + $0xa] sm:$0x3] %v245_v5  ;;  %v249_v7 = vld [vmem:[%s218_s13 + $0x2a] sm:$0x3]  ;;  %248 = vst [vmem:[%s212_s14 + $0xc] sm:$0x3] %v247_v6 }
  0x1c   : > { %250 = vst [vmem:[%s212_s14 + $0xe] sm:$0x3] %v249_v7 }
  0x1d PF: > { %290 = sbr.rel (!%p2778_p4) target bundleno = 39 (0x27), region = 65  ;;  %s292_s15 = sand.u32 (%p2778_p4), 1, %s2687_s20  }
  0x1e   : > { %s2335_s16 = smul.u32 (%p2778_p4), 48, %s2695_s22  ;;  %s2334_s17 = sshll.u32 (%p2778_p4), %s292_s15, 4 }
  0x1f   : > { %s294_s30 = scalar_lea.vmem (%p2778_p4), [#allocation3], %s2334_s17 }
  0x20   : > { %s2221_s27 = scalar_lea.vmem (%p2778_p4), %s3321_s1, %s2335_s16 }
  0x21   : > { %v2336_v8 = vld [vmem:[%s2221_s27 + $0x2] sm:$0x3] (%p2778_p4)  ;;  %v2337_v9 = vld [vmem:[%s2221_s27 + $0x8] sm:$0x3] (%p2778_p4)  ;;  %v2338_v10 = vld [vmem:[%s2221_s27 + $0xe] sm:$0x3] (%p2778_p4) }
  0x22   : > { %316 = vst [vmem:[%s294_s30] sm:$0x3] %v2336_v8  ;;  %318 = vst [vmem:[%s294_s30 + $0x2] sm:$0x3] %v2337_v9  ;;  %v2339_v11 = vld [vmem:[%s2221_s27 + $0x14] sm:$0x3] }
  0x23   : > { %320 = vst [vmem:[%s294_s30 + $0x4] sm:$0x3] %v2338_v10  ;;  %v2340_v12 = vld [vmem:[%s2221_s27 + $0x1a] sm:$0x3]  ;;  %v2341_v13 = vld [vmem:[%s2221_s27 + $0x20] sm:$0x3] }
  0x24   : > { %322 = vst [vmem:[%s294_s30 + $0x6] sm:$0x3] %v2339_v11  ;;  %324 = vst [vmem:[%s294_s30 + $0x8] sm:$0x3] %v2340_v12  ;;  %v2342_v14 = vld [vmem:[%s2221_s27 + $0x26] sm:$0x3] }
  0x25   : > { %326 = vst [vmem:[%s294_s30 + $0xa] sm:$0x3] %v2341_v13  ;;  %v2343_v15 = vld [vmem:[%s2221_s27 + $0x2c] sm:$0x3]  ;;  %328 = vst [vmem:[%s294_s30 + $0xc] sm:$0x3] %v2342_v14 }
  0x26   : > { %330 = vst [vmem:[%s294_s30 + $0xe] sm:$0x3] %v2343_v15 }
  0x27 PF: > { %370 = sbr.rel (!%p2778_p4) target bundleno = 49 (0x31), region = 106  ;;  %s372_s8 = sand.u32 (%p2778_p4), 1, %s2687_s20  }
  0x28   : > { %s2345_s9 = smul.u32 (%p2778_p4), 48, %s2695_s22  ;;  %s2344_s10 = sshll.u32 (%p2778_p4), %s372_s8, 4 }
  0x29   : > { %s374_s14 = scalar_lea.vmem (%p2778_p4), [#allocation4], %s2344_s10 }
  0x2a   : > { %s2227_s13 = scalar_lea.vmem (%p2778_p4), %s3322_s2, %s2345_s9 }
  0x2b   : > { %v2346_v16 = vld [vmem:[%s2227_s13 + $0x4] sm:$0x3] (%p2778_p4)  ;;  %v2347_v17 = vld [vmem:[%s2227_s13 + $0xa] sm:$0x3] (%p2778_p4)  ;;  %v2348_v18 = vld [vmem:[%s2227_s13 + $0x10] sm:$0x3] (%p2778_p4) }
  0x2c   : > { %396 = vst [vmem:[%s374_s14] sm:$0x3] %v2346_v16  ;;  %398 = vst [vmem:[%s374_s14 + $0x2] sm:$0x3] %v2347_v17  ;;  %v2349_v19 = vld [vmem:[%s2227_s13 + $0x16] sm:$0x3] }
  0x2d   : > { %400 = vst [vmem:[%s374_s14 + $0x4] sm:$0x3] %v2348_v18  ;;  %v2350_v20 = vld [vmem:[%s2227_s13 + $0x1c] sm:$0x3]  ;;  %v2351_v21 = vld [vmem:[%s2227_s13 + $0x22] sm:$0x3] }
  0x2e   : > { %402 = vst [vmem:[%s374_s14 + $0x6] sm:$0x3] %v2349_v19  ;;  %404 = vst [vmem:[%s374_s14 + $0x8] sm:$0x3] %v2350_v20  ;;  %v2352_v22 = vld [vmem:[%s2227_s13 + $0x28] sm:$0x3] }
  0x2f   : > { %406 = vst [vmem:[%s374_s14 + $0xa] sm:$0x3] %v2351_v21  ;;  %v2353_v23 = vld [vmem:[%s2227_s13 + $0x2e] sm:$0x3]  ;;  %408 = vst [vmem:[%s374_s14 + $0xc] sm:$0x3] %v2352_v22 }
  0x30   : > { %410 = vst [vmem:[%s374_s14 + $0xe] sm:$0x3] %v2353_v23 }
  0x31 PF: > { %p2354_p11 = scmp.ge.s32.totalorder %s2699_s23, 1  ;;  %p449_p12 = scmp.lt.s32.totalorder %s2699_s23, 3 }
  0x33   : > { %p450_p13 = pnand %p2354_p11, %p449_p12 }
  0x34   : > { %s456_s28 = sand.u32 (!%p450_p13), 1, %s2683_s19   ;;  %p513_p0 = scmp.lt.s32.totalorder (!%p450_p13), %s2691_s21, 1 }
  0x35   : > { %453 = sbr.rel (%p450_p13) target bundleno = 1452 (0x5ac), region = 147  ;;  %s2827_s15 = sshll.u32 (!%p450_p13), %s456_s28, 4 }
  0x36   : > { %s2831_s16 = scalar_lea.vmem (!%p450_p13), [#allocation3], %s2827_s15  ;;  %s2885_s17 = scalar_lea.vmem (!%p450_p13), [#allocation2], %s2827_s15 }
  0x37   : > { %s2971_s27 = scalar_lea.vmem (!%p450_p13), [#allocation4], %s2827_s15  ;;  %s3132_s30 = scalar_lea.vmem (!%p450_p13), [#allocation5], %s2827_s15 }
  0x38   : > { %s2703_s13 = smov (!%p450_p13), 8   ;;  %s2479_s14 = sshll.u32 (!%p450_p13), %s2691_s21, 8 }
  0x39   : > { %s2176_s15 = sshll.u32 (!%p450_p13), %s3132_s30, 4  ;;  %s3265_s24 = scalar_lea.hbm (!%p450_p13), %s3325_s5, %s2479_s14  ;;  %s3267_s15 = int_to_ptr.vmem [resolvable:$true] %s2176_s15 }
  0x3a   : > { %v2701_v24 = vmov 0.0   ;;  %v2834_v25 = vld.sshfl [vmem:[%s2831_s16] sm:$0x1 pattern:$0x76325410]  ;;  %vm2702_vm0 = vmmov 0  }
  0x3b   : > { %2496 = vmatprep.subr.bf16.mxu0 %v2701_v24  ;;  %2502 = vmatprep.subr.bf16.mxu1 %v2701_v24  ;;  %v2841_v26 = vld.sshfl [vmem:[%s2831_s16 + $0x2] sm:$0x1 pattern:$0x76325410]  ;;  %v713_v28 = vunpack.c.l.b16 %v2834_v25  ;;  %vm628_vm1 = vcmask 1041409   ;;  %vm631_vm2 = vcmask 1042434  }
  0x3c   : > { %2498 = vmatprep.mubr.msk.bf16.mxu0 %vm2702_vm0, %v2701_v24  ;;  %2504 = vmatprep.mubr.msk.bf16.mxu1 %vm2702_vm0, %v2701_v24  ;;  %v2844_v27 = vld.sshfl [vmem:[%s2831_s16 + $0x4] sm:$0x1 pattern:$0x76325410]  ;;  %v714_v29 = vunpack.c.l.b16 %v2841_v26  ;;  %vm634_vm3 = vcmask 1043459   ;;  %vm637_vm4 = vcmask 1044484  }
  0x3d   : > { %v2849_v30 = vld.sshfl [vmem:[%s2831_s16 + $0x6] sm:$0x1 pattern:$0x76325410]  ;;  %v715_v31 = vunpack.c.l.b16 %v2844_v27  ;;  %vm640_vm5 = vcmask 1045509   ;;  %vm643_vm6 = vcmask 1046534  }
  0x3e   : > { %v2853_v32 = vld.sshfl [vmem:[%s2831_s16 + $0x8] sm:$0x1 pattern:$0x76325410]  ;;  %v716_v33 = vunpack.c.l.b16 %v2849_v30  ;;  %v721_v34 = vrot.slane %v714_v29, 7  ;;  %vm646_vm7 = vcmask 1047559  }
  0x3f   : > { %v2859_v35 = vld.sshfl [vmem:[%s2831_s16 + $0xa] sm:$0x1 pattern:$0x76325410]  ;;  %v717_v36 = vunpack.c.l.b16 %v2853_v32  ;;  %v723_v37 = vrot.slane %v715_v31, 6  ;;  %vm736_vm8 = vcmask 64512  }
  0x40   : > { %v2865_v38 = vld.sshfl [vmem:[%s2831_s16 + $0xc] sm:$0x1 pattern:$0x76325410]  ;;  %v718_v39 = vunpack.c.l.b16 %v2859_v35  ;;  %v722_v40 = vsel %vm628_vm1, %v721_v34, %v713_v28  ;;  %v725_v41 = vrot.slane %v716_v33, 5  ;;  %v523_v34 = vlaneseq  ;;  %s514_s8 = scalar_select %p513_p0, %s2691_s21, 1 }
  0x41   : > { %v2874_v42 = vld.sshfl [vmem:[%s2831_s16 + $0xe] sm:$0x1 pattern:$0x76325410]  ;;  %v719_v43 = vunpack.c.l.b16 %v2865_v38  ;;  %v724_v44 = vsel %vm631_vm2, %v723_v37, %v722_v40  ;;  %v727_v45 = vrot.slane %v717_v36, 4  ;;  %vm896_vm10 = vcmask 1043456  }
  0x42   : > { %v720_v46 = vunpack.c.l.b16 %v2874_v42  ;;  %v726_v47 = vsel %vm634_vm3, %v725_v41, %v724_v44  ;;  %v729_v48 = vrot.slane %v718_v39, 3  ;;  %v2888_v49 = vld.sshfl [vmem:[%s2885_s17] sm:$0x1 pattern:$0x76325410]  ;;  %v524_v37 = vshrl.u32 %v523_v34, 7 }
  0x43   : > { %v728_v50 = vsel %vm637_vm4, %v727_v45, %v726_v47  ;;  %v731_v51 = vrot.slane %v719_v43, 2  ;;  %v2894_v52 = vld.sshfl [vmem:[%s2885_s17 + $0x2] sm:$0x1 pattern:$0x76325410]  ;;  %v619_v56 = vunpack.c.l.b16 %v2888_v49  ;;  %v528_v40 = vand.u32 127, %v523_v34 }
  0x44   : > { %v730_v53 = vsel %vm640_vm5, %v729_v48, %v728_v50  ;;  %v733_v54 = vrot.slane %v720_v46, 1  ;;  %v2900_v55 = vld.sshfl [vmem:[%s2885_s17 + $0x4] sm:$0x1 pattern:$0x76325410]  ;;  %v620_v57 = vunpack.c.l.b16 %v2894_v52  ;;  %v1131_v25 = vrot.slane %v717_v36, 5 }
  0x45   : > { %v732_v58 = vsel %vm643_vm6, %v731_v51, %v730_v53  ;;  %v2906_v59 = vld.sshfl [vmem:[%s2885_s17 + $0x6] sm:$0x1 pattern:$0x76325410]  ;;  %v621_v60 = vunpack.c.l.b16 %v2900_v55  ;;  %vm529_vm9 = vcmp.gt.s32.totalorder %v528_v40, %v524_v37  ;;  %v2958_v41 = vld [vmem:[%s3323_s3] ss:$0 sm:$0xff] }
  0x46   : > { %v734_v61 = vsel %vm646_vm7, %v733_v54, %v732_v58  ;;  %v2911_v62 = vld.sshfl [vmem:[%s2885_s17 + $0x8] sm:$0x1 pattern:$0x76325410]  ;;  %v622_v63 = vunpack.c.l.b16 %v2906_v59  ;;  %v627_v0 = vrot.slane %v620_v57, 7  ;;  %v1133_v26 = vrot.slane %v718_v39, 4 }
  0x47   : > { %v735_v1 = vpack.c.b16 %v734_v61, %v734_v61  ;;  %v2917_v2 = vld.sshfl [vmem:[%s2885_s17 + $0xa] sm:$0x1 pattern:$0x76325410]  ;;  %v623_v3 = vunpack.c.l.b16 %v2911_v62  ;;  %v630_v4 = vrot.slane %v621_v60, 6  ;;  %v1038_v32 = vrot.slane %v619_v56, 1 }
  0x48   : > { %v2923_v5 = vld.sshfl [vmem:[%s2885_s17 + $0xc] sm:$0x1 pattern:$0x76325410]  ;;  %v624_v6 = vunpack.c.l.b16 %v2917_v2  ;;  %v629_v7 = vsel %vm628_vm1, %v627_v0, %v619_v56  ;;  %v633_v8 = vrot.slane %v622_v63, 5  ;;  %v1137_v38 = vrot.slane %v720_v46, 2 }
  0x49   : > { %v741_v9 = vsel %vm736_vm8, %v735_v1, 0  ;;  %v2933_v10 = vld.sshfl [vmem:[%s2885_s17 + $0xe] sm:$0x1 pattern:$0x76325410]  ;;  %v625_v11 = vunpack.c.l.b16 %v2923_v5  ;;  %v632_v12 = vsel %vm631_vm2, %v630_v4, %v629_v7  ;;  %v636_v13 = vrot.slane %v623_v3, 4 }
  0x4a   : > { %2497 = vmatpush3.bf16.xpose.msra.mxu0 %v741_v9  ;;  %v626_v14 = vunpack.c.l.b16 %v2933_v10  ;;  %v635_v15 = vsel %vm634_vm3, %v633_v8, %v632_v12  ;;  %v639_v16 = vrot.slane %v624_v6, 3  ;;  %v2961_v48 = vsel %vm529_vm9, -1e+09, %v2701_v24  ;;  %s2359_s9 = sshll.u32 %s514_s8, 2  ;;  %s3271_s25 = scalar_lea.sflag [#allocation6], %s456_s28 }
  0x4b   : > { %v638_v17 = vsel %vm637_vm4, %v636_v13, %v635_v15  ;;  %v642_v18 = vrot.slane %v625_v11, 2  ;;  %2514 = vmatprep.subr.bf16.mxu0 %v2701_v24  ;;  %v2974_v8 = vld.sshfl [vmem:[%s2971_s27] sm:$0x1 pattern:$0x76325410]  ;;  %v1042_v42 = vrot.slane %v622_v63, 6  ;;  %s3169_s12 = scalar_lea.vmem %s3324_s4, %s2359_s9 }
  0x4c   : > { %v641_v19 = vsel %vm640_vm5, %v639_v16, %v638_v17  ;;  %v645_v20 = vrot.slane %v626_v14, 1  ;;  %v2977_v9 = vld.sshfl [vmem:[%s2971_s27 + $0x2] sm:$0x1 pattern:$0x76325410]  ;;  %v870_v13 = vunpack.c.l.b16 %v2974_v8  ;;  %v1048_v2 = vrot.slane %v625_v11, 3 }
  0x4d   : > { %v644_v21 = vsel %vm643_vm6, %v642_v18, %v641_v19  ;;  %v2980_v12 = vld.sshfl [vmem:[%s2971_s27 + $0x4] sm:$0x1 pattern:$0x76325410]  ;;  %v871_v15 = vunpack.c.l.b16 %v2977_v9  ;;  %vm804_vm11 = vcmask 60416   ;;  %s2704_s21 = smov [#allocation5]  }
  0x4e   : > { %v647_v22 = vsel %vm646_vm7, %v645_v20, %v644_v21  ;;  %v2985_v16 = vld.sshfl [vmem:[%s2971_s27 + $0x6] sm:$0x1 pattern:$0x76325410]  ;;  %v872_v17 = vunpack.c.l.b16 %v2980_v12 }
  0x4f   : > { %v648_v23 = vpack.c.b16 %v647_v22, %v647_v22  ;;  %v2989_v18 = vld.sshfl [vmem:[%s2971_s27 + $0x8] sm:$0x1 pattern:$0x76325410]  ;;  %v873_v19 = vunpack.c.l.b16 %v2985_v16  ;;  %v878_v20 = vrot.slane %v871_v15, 7 }
  0x50   : > { %v2995_v21 = vld.sshfl [vmem:[%s2971_s27 + $0xa] sm:$0x1 pattern:$0x76325410]  ;;  %v874_v22 = vunpack.c.l.b16 %v2989_v18 }
  0x51   : > { %2499 = vmatmul.mubr.msk.bf16.vlgmr.msra.gmra.mxu0 %vm736_vm8, %v648_v23  ;;  %v880_v23 = vrot.slane %v872_v17, 6  ;;  %v3001_v34 = vld.sshfl [vmem:[%s2971_s27 + $0xc] sm:$0x1 pattern:$0x76325410]  ;;  %v875_v37 = vunpack.c.l.b16 %v2995_v21  ;;  %v879_v40 = vsel %vm628_vm1, %v878_v20, %v870_v13 }
  0x52   : > { %2516 = vmatprep.mubr.msk.bf16.mxu0 %vm2702_vm0, %v2701_v24  ;;  %v2427_v36 = vld.sshfl [vmem:[%s2831_s16 + $0x8] sm:$0x2 pattern:$0x76325410] }
  0x53   : > { %v2428_v56 = vld.sshfl [vmem:[%s2831_s16 + $0xa] sm:$0x2 pattern:$0x76325410] }
  0x54   : > { %v3079_v46 = vld.sshfl [vmem:[%s2831_s16 + $0xc] sm:$0x2 pattern:$0x76325410] }
  0x55   : > { %v3090_v59 = vld.sshfl [vmem:[%s2885_s17 + $0x6] sm:$0x2 pattern:$0x76325410] }
  0x56   : > { %v1436_v62 = vunpack.c.l.b16 %v3090_v59 }
 0x111   : > { %v777_v44 = vpop.f32.mrf.mxu0 }
 0x112   : > { %v783_v45 = vmul.f32 0.35355338, %v777_v44  ;;  %v882_v44 = vrot.slane %v873_v19, 5 }
 0x113   : > { %v2500_v47 = vpop.f32.mrf.mxu0 }
 0x114   : > { %v790_v50 = vadd.f32 %v2958_v41, %v783_v45  ;;  %v3010_v45 = vld.sshfl [vmem:[%s2971_s27 + $0xe] sm:$0x1 pattern:$0x76325410]  ;;  %v876_v47 = vunpack.c.l.b16 %v3001_v34 }
 0x115   : > { %v780_v51 = vpop.f32.mrf.mxu0  ;;  %v2434_v34 = vld.sshfl [vmem:[%s2971_s27 + $0x2] sm:$0x2 pattern:$0x76325410] }
 0x116   : > { %v791_v53 = vadd.f32 %v790_v50, %v2961_v48  ;;  %v881_v50 = vsel %vm631_vm2, %v880_v23, %v879_v40  ;;  %v884_v51 = vrot.slane %v874_v22, 4 }
 0x117   : > { %v2501_v54 = vpop.f32.mrf.mxu0 }
 0x118   : > { %v792_v58 = vsel %vm736_vm8, %v791_v53, -inf  ;;  %v883_v54 = vsel %vm634_vm3, %v882_v44, %v881_v50  ;;  %v1125_v50 = vrot.slane %v713_v28, 1 }
 0x119   : > { %793 = vmax.xlane.f32.xlu0 %v792_v58  ;;  %v886_v58 = vrot.slane %v875_v37, 3 }
 0x1a2   : > { %v794_v61 = vpop.xlane.xlu0 %793 }
 0x1a3   : > { %v795_v0 = vsub.f32 %v791_v53, %v794_v61  ;;  %v877_v53 = vunpack.c.l.b16 %v3010_v45  ;;  %v885_v61 = vsel %vm637_vm4, %v884_v51, %v883_v54  ;;  %v1127_v51 = vrot.slane %v715_v31, 7 }
 0x1a4   : > { %v1126_v54 = vsel %vm628_vm1, %v714_v29, %v1125_v50  ;;  %v3048_v29 = vld.sshfl [vmem:[%s2831_s16 + $0x6] sm:$0x2 pattern:$0x76325410]  ;;  %v1671_v45 = vunpack.c.l.b16 %v2434_v34 }
 0x1a5   : > { %v796_v1 = vmul.f32 1.442695, %v795_v0  ;;  %v888_v0 = vrot.slane %v876_v47, 2  ;;  %v1287_v16 = vrot.slane %v877_v53, 2 }
 0x1a6   : > { %v2416_v50 = vld.sshfl [vmem:[%s2885_s17 + $0x2] sm:$0x2 pattern:$0x76325410] }
 0x1a7   : > { %2607 = vpow2.f32 %v796_v1  ;;  %v887_v1 = vsel %vm640_vm5, %v886_v58, %v885_v61  ;;  %v2423_v58 = vld.sshfl [vmem:[%s2831_s16] sm:$0x2 pattern:$0x76325410]  ;;  %v1129_v61 = vrot.slane %v716_v33, 6 }
 0x1a8   : > { %v889_v20 = vsel %vm643_vm6, %v888_v0, %v887_v1  ;;  %v2424_v0 = vld.sshfl [vmem:[%s2831_s16 + $0x2] sm:$0x2 pattern:$0x76325410]  ;;  %v1128_v1 = vsel %vm631_vm2, %v1127_v51, %v1126_v54  ;;  %v1520_v28 = vunpack.c.l.b16 %v2423_v58  ;;  %v1040_v54 = vrot.slane %v621_v60, 7 }
 0x1a9   : > { %v1521_v27 = vunpack.c.l.b16 %v2424_v0  ;;  %v1130_v31 = vsel %vm634_vm3, %v1129_v61, %v1128_v1  ;;  %v2425_v33 = vld.sshfl [vmem:[%s2831_s16 + $0x4] sm:$0x2 pattern:$0x76325410]  ;;  %v1524_v58 = vunpack.c.l.b16 %v2427_v36  ;;  %v1434_v0 = vunpack.c.l.b16 %v2416_v50 }
 0x1aa   : > { %v1132_v30 = vsel %vm637_vm4, %v1131_v25, %v1130_v31  ;;  %v1522_v39 = vunpack.c.l.b16 %v2425_v33  ;;  %v3084_v1 = vld.sshfl [vmem:[%s2831_s16 + $0xe] sm:$0x2 pattern:$0x76325410]  ;;  %v1525_v25 = vunpack.c.l.b16 %v2428_v56  ;;  %v1931_v31 = vrot.slane %v1520_v28, 3 }
 0x1ab   : > { %v1134_v35 = vsel %vm640_vm5, %v1133_v26, %v1132_v30  ;;  %v1932_v26 = vrot.slane %v1521_v27, 2  ;;  %v1044_v33 = vrot.slane %v623_v3, 5  ;;  %v1442_v36 = vrot.slane %v1434_v0, 1 }
 0x1ac   : > { %v2419_v50 = vld.sshfl [vmem:[%s2885_s17 + $0x8] sm:$0x2 pattern:$0x76325410] }
 0x1ad   : > { %v1933_v3 = vsel %vm628_vm1, %v1932_v26, %v1931_v31  ;;  %v1937_v26 = vrot.slane %v1524_v58, 7 }
 0x1b4   : > { %v2966_v4 = vpop.eup %2607 }
 0x1b5   : > { %v798_v7 = vsel %vm736_vm8, %v2966_v4, 0.0 }
 0x1b6   : > { %799 = vadd.xlane.f32.xlu0 %v798_v7  ;;  %v890_v7 = vrot.slane %v877_v53, 1  ;;  %v2436_v53 = vld.sshfl [vmem:[%s2971_s27 + $0x6] sm:$0x2 pattern:$0x76325410] }
 0x1b8   : > { %v891_v23 = vsel %vm646_vm7, %v890_v7, %v889_v20  ;;  %v1528_v7 = vrot.slane %v1520_v28, 2  ;;  %v1529_v20 = vrot.slane %v1521_v27, 1  ;;  %v1934_v28 = vrot.slane %v1522_v39, 1 }
 0x1b9   : > { %v892_v40 = vpack.c.b16 %v891_v23, %v891_v23  ;;  %v1135_v23 = vrot.slane %v719_v43, 3  ;;  %v1039_v43 = vsel %vm628_vm1, %v620_v57, %v1038_v32 }
 0x1ba   : > { %v1530_v49 = vsel %vm628_vm1, %v1529_v20, %v1528_v7  ;;  %v1041_v57 = vsel %vm631_vm2, %v1040_v54, %v1039_v43  ;;  %v1534_v7 = vrot.slane %v1524_v58, 6  ;;  %v2417_v20 = vld.sshfl [vmem:[%s2885_s17 + $0x4] sm:$0x2 pattern:$0x76325410]  ;;  %v1527_v54 = vunpack.c.l.b16 %v3084_v1 }
 0x1bb   : > { %v898_v44 = vsel %vm896_vm10, %v892_v40, 0  ;;  %v1523_v40 = vunpack.c.l.b16 %v3048_v29  ;;  %v1136_v61 = vsel %vm643_vm6, %v1135_v23, %v1134_v35  ;;  %v1531_v52 = vsel %vm631_vm2, %v1522_v39, %v1530_v49 }
 0x1bc   : > { %2503 = vmatpush3.bf16.msra.mxu1 %v898_v44  ;;  %v3059_v44 = vld.sshfl [vmem:[%s2885_s17] sm:$0x2 pattern:$0x76325410]  ;;  %v1138_v30 = vsel %vm646_vm7, %v1137_v38, %v1136_v61  ;;  %v1043_v23 = vsel %vm634_vm3, %v1042_v42, %v1041_v57  ;;  %v1536_v35 = vrot.slane %v1525_v25, 5  ;;  %v1435_v38 = vunpack.c.l.b16 %v2417_v20 }
 0x1bd   : > { %2508 = vmatprep.subr.bf16.mxu1 %v2701_v24  ;;  %v1532_v55 = vrot.slane %v1523_v40, 7  ;;  %v1433_v60 = vunpack.c.l.b16 %v3059_v44  ;;  %v1526_v44 = vunpack.c.l.b16 %v3079_v46  ;;  %v1139_v27 = vpack.c.b16 %v1138_v30, %v1138_v30  ;;  %v2420_v61 = vld.sshfl [vmem:[%s2885_s17 + $0xa] sm:$0x2 pattern:$0x76325410] }
 0x1be   : > { %v1045_v43 = vsel %vm637_vm4, %v1044_v33, %v1043_v23  ;;  %v1935_v42 = vsel %vm631_vm2, %v1934_v28, %v1933_v3  ;;  %v1540_v1 = vrot.slane %v1527_v54, 3  ;;  %v2421_v33 = vld.sshfl [vmem:[%s2885_s17 + $0xc] sm:$0x2 pattern:$0x76325410] }
 0x1bf   : > { %v1533_v63 = vsel %vm634_vm3, %v1532_v55, %v1531_v52  ;;  %v1441_v32 = vrot.slane %v1433_v60, 2  ;;  %v1538_v56 = vrot.slane %v1526_v44, 4  ;;  %v1437_v55 = vunpack.c.l.b16 %v2419_v50 }
 0x1c0   : > { %v1535_v49 = vsel %vm637_vm4, %v1534_v7, %v1533_v63  ;;  %v1144_v46 = vsel %vm736_vm8, %v1139_v27, 0  ;;  %v1445_v52 = vrot.slane %v1436_v62, 7  ;;  %v1438_v7 = vunpack.c.l.b16 %v2420_v61 }
 0x1c1   : > { %v1443_v39 = vsel %vm628_vm1, %v1442_v36, %v1441_v32  ;;  %v1936_v5 = vsel %vm634_vm3, %v1523_v40, %v1935_v42  ;;  %v1844_v11 = vrot.slane %v1433_v60, 3  ;;  %v1845_v63 = vrot.slane %v1434_v0, 2 }
 0x1c2   : > { %v1444_v31 = vsel %vm631_vm2, %v1435_v38, %v1443_v39  ;;  %v1050_v32 = vrot.slane %v626_v14, 2  ;;  %v1447_v23 = vrot.slane %v1437_v55, 6  ;;  %v1939_v27 = vrot.slane %v1525_v25, 6 }
 0x1c3   : > { %v1446_v28 = vsel %vm634_vm3, %v1445_v52, %v1444_v31  ;;  %v1439_v40 = vunpack.c.l.b16 %v2421_v33  ;;  %v1938_v60 = vsel %vm637_vm4, %v1937_v26, %v1936_v5  ;;  %v1847_v0 = vrot.slane %v1435_v38, 1 }
 0x1c4   : > { %v1449_v10 = vrot.slane %v1438_v7, 5  ;;  %v1846_v14 = vsel %vm628_vm1, %v1845_v63, %v1844_v11  ;;  %v1448_v50 = vsel %vm637_vm4, %v1447_v23, %v1446_v28  ;;  %v1941_v3 = vrot.slane %v1526_v44, 5 }
 0x1c5   : > { %v1848_v44 = vsel %vm631_vm2, %v1847_v0, %v1846_v14  ;;  %v1852_v31 = vrot.slane %v1438_v7, 6 }
 0x1c6   : > { %v1450_v39 = vsel %vm640_vm5, %v1449_v10, %v1448_v50 }
 0x23f   : > { %v800_v51 = vpop.xlane.xlu0 %799 }
 0x240   : > { %2609 = vrcp.f32 %v800_v51  ;;  %v1046_v51 = vrot.slane %v624_v6, 4  ;;  %v1537_v6 = vsel %vm640_vm5, %v1536_v35, %v1535_v49  ;;  %v2422_v35 = vld.sshfl [vmem:[%s2885_s17 + $0xe] sm:$0x2 pattern:$0x76325410]  ;;  %v1940_v49 = vsel %vm640_vm5, %v1939_v27, %v1938_v60 }
 0x241   : > { %v1539_v36 = vsel %vm643_vm6, %v1538_v56, %v1537_v6  ;;  %v1943_v56 = vrot.slane %v1527_v54, 4  ;;  %v1942_v42 = vsel %vm643_vm6, %v1941_v3, %v1940_v49  ;;  %v1849_v6 = vsel %vm634_vm3, %v1436_v62, %v1848_v44 }
 0x242   : > { %v1047_v57 = vsel %vm640_vm5, %v1046_v51, %v1045_v43  ;;  %v1440_v51 = vunpack.c.l.b16 %v2422_v35  ;;  %v1451_v43 = vrot.slane %v1439_v40, 4 }
 0x243   : > { %v1049_v58 = vsel %vm643_vm6, %v1048_v2, %v1047_v57 }
 0x244   : > { %v1051_v25 = vsel %vm646_vm7, %v1050_v32, %v1049_v58  ;;  %v1453_v2 = vrot.slane %v1440_v51, 3  ;;  %v1452_v57 = vsel %vm643_vm6, %v1451_v43, %v1450_v39  ;;  %v1856_v33 = vrot.slane %v1440_v51, 4 }
 0x245   : > { %v1052_v61 = vpack.c.b16 %v1051_v25, %v1051_v25 }
 0x246   : > { %v1454_v59 = vsel %vm646_vm7, %v1453_v2, %v1452_v57 }
 0x24d   : > { %v2610_v30 = vpop.eup %2609 }
 0x24e   : > { %v802_v20 = vmul.f32 %v2610_v30, %v2966_v4  ;;  %v1541_v4 = vsel %vm646_vm7, %v1540_v1, %v1539_v36  ;;  %v1944_v1 = vsel %vm646_vm7, %v1943_v56, %v1942_v42  ;;  %v1455_v30 = vpack.c.b16 %v1454_v59, %v1454_v59 }
 0x24f   : > { %v1542_v38 = vpack.c.b16 %v1541_v4, %v1541_v4  ;;  %v1945_v62 = vpack.c.b16 %v1944_v1, %v1944_v1 }
 0x250   : > { %v803_v29 = vpack.c.bf16 %v802_v20, %v802_v20 }
 0x251   : > { %v1547_v52 = vsel %vm736_vm8, %v1542_v38, 0  ;;  %v1950_v7 = vsel %vm736_vm8, %v1945_v62, 0 }
 0x252   : > { %2505 = vmatmul.mubr.msk.bf16.vlgmr.msra.gmra.mxu1 %vm736_vm8, %v803_v29  ;;  %805 = vst.msk [vmem:[%s3132_s30] sm:$0xf] %vm804_vm11, %v803_v29 }
 0x253   : > { %2509 = vmatpush3.bf16.xpose.msra.mxu1 %v1144_v46  ;;  %2510 = vmatprep.mubr.msk.bf16.mxu1 %vm2702_vm0, %v2701_v24  ;;  %v1850_v46 = vrot.slane %v1437_v55, 7  ;;  %v1854_v55 = vrot.slane %v1439_v40, 5 }
 0x254   : > { %2520 = vmatprep.subr.bf16.mxu1 %v2701_v24 }
 0x255   : > { %v1851_v54 = vsel %vm637_vm4, %v1850_v46, %v1849_v6 }
 0x256   : > { %v1853_v26 = vsel %vm640_vm5, %v1852_v31, %v1851_v54 }
 0x257   : > { %v1855_v5 = vsel %vm643_vm6, %v1854_v55, %v1853_v26 }
 0x258   : > { %v1857_v11 = vsel %vm646_vm7, %v1856_v33, %v1855_v5  ;;  %v1275_v33 = vrot.slane %v870_v13, 1  ;;  %v1277_v5 = vrot.slane %v872_v17, 7  ;;  %v1281_v13 = vrot.slane %v874_v22, 5 }
 0x259   : > { %v1858_v63 = vpack.c.b16 %v1857_v11, %v1857_v11  ;;  %v1283_v17 = vrot.slane %v875_v37, 4  ;;  %v2433_v37 = vld.sshfl [vmem:[%s2971_s27] sm:$0x2 pattern:$0x76325410] }
 0x25a   : > { %2511 = vmatmul.mubr.msk.bf16.vlgmr.msra.gmra.mxu1 %vm736_vm8, %v1052_v61 }
 0x25b   : > { %2521 = vmatpush3.bf16.xpose.msra.mxu1 %v1547_v52  ;;  %2522 = vmatprep.mubr.msk.bf16.mxu1 %vm2702_vm0, %v2701_v24 }
 0x25c   : > { %2532 = vmatprep.subr.bf16.mxu1 %v2701_v24 }
 0x262   : > { %2523 = vmatmul.mubr.msk.bf16.vlgmr.msra.gmra.mxu1 %vm736_vm8, %v1455_v30 }
 0x263   : > { %2533 = vmatpush3.bf16.xpose.msra.mxu1 %v1950_v7  ;;  %2534 = vmatprep.mubr.msk.bf16.mxu1 %vm2702_vm0, %v2701_v24 }
 0x26a   : > { %2535 = vmatmul.mubr.msk.bf16.vlgmr.msra.gmra.mxu1 %vm736_vm8, %v1858_v63  ;;  %v1276_v63 = vsel %vm628_vm1, %v871_v15, %v1275_v33  ;;  %v1285_v15 = vrot.slane %v876_v47, 3  ;;  %v1670_v47 = vunpack.c.l.b16 %v2433_v37 }
 0x26b   : > { %v1278_v8 = vsel %vm631_vm2, %v1277_v5, %v1276_v63 }
 0x312   : > { %v934_v20 = vpop.f32.mrf.mxu1 }
 0x313   : > { %v940_v32 = vpack.c.bf16 %v934_v20, %v934_v20  ;;  %v1279_v20 = vrot.slane %v873_v19, 6 }
 0x314   : > { %v2506_v36 = vpop.f32.mrf.mxu1 }
 0x315   : > { %941 = vst.msk [vmem:[%s3169_s12] sm:$0xf] %vm804_vm11, %v940_v32  ;;  %v1280_v12 = vsel %vm634_vm3, %v1279_v20, %v1278_v8  ;;  %v2435_v36 = vld.sshfl [vmem:[%s2971_s27 + $0x4] sm:$0x2 pattern:$0x76325410] }
 0x316   : > { %v937_v23 = vpop.f32.mrf.mxu1  ;;  %v1282_v9 = vsel %vm637_vm4, %v1281_v13, %v1280_v12 }
 0x317   : > { %v1284_v19 = vsel %vm640_vm5, %v1283_v17, %v1282_v9  ;;  %v1678_v23 = vrot.slane %v1670_v47, 2 }
 0x318   : > { %v2507_v58 = vpop.f32.mrf.mxu1  ;;  %v1286_v18 = vsel %vm643_vm6, %v1285_v15, %v1284_v19 }
 0x319   : > { %v1288_v22 = vsel %vm646_vm7, %v1287_v16, %v1286_v18  ;;  %v1679_v58 = vrot.slane %v1671_v45, 1 }
 0x31a   : > { %v1180_v28 = vpop.f32.mrf.mxu1  ;;  %v1289_v32 = vpack.c.b16 %v1288_v22, %v1288_v22 }
 0x31b   : > { %v1186_v27 = vmul.f32 0.35355338, %v1180_v28  ;;  %v2437_v28 = vld.sshfl [vmem:[%s2971_s27 + $0x8] sm:$0x2 pattern:$0x76325410] }
 0x31c   : > { %v2512_v29 = vpop.f32.mrf.mxu1  ;;  %v1294_v21 = vsel %vm896_vm10, %v1289_v32, 0 }
 0x31d   : > { %v1187_v35 = vadd.f32 %v2958_v41, %v1186_v27  ;;  %2515 = vmatpush3.bf16.msra.mxu0 %v1294_v21  ;;  %v1673_v27 = vunpack.c.l.b16 %v2436_v53  ;;  %v1672_v29 = vunpack.c.l.b16 %v2435_v36 }
 0x31e   : > { %v1183_v40 = vpop.f32.mrf.mxu1  ;;  %2526 = vmatprep.subr.bf16.mxu0 %v2701_v24 }
 0x31f   : > { %v1188_v60 = vadd.f32 %v1187_v35, %v2961_v48  ;;  %v1680_v35 = vsel %vm628_vm1, %v1679_v58, %v1678_v23  ;;  %v2438_v40 = vld.sshfl [vmem:[%s2971_s27 + $0xa] sm:$0x2 pattern:$0x76325410] }
 0x320   : > { %v2513_v0 = vpop.f32.mrf.mxu1 }
 0x321   : > { %v1189_v4 = vsel %vm736_vm8, %v1188_v60, -inf  ;;  %v1682_v0 = vrot.slane %v1673_v27, 7 }
 0x322   : > { %1190 = vmax.xlane.f32.xlu1 %v1189_v4  ;;  %v1583_v10 = vpop.f32.mrf.mxu1  ;;  %v1681_v4 = vsel %vm631_vm2, %v1672_v29, %v1680_v35 }
 0x323   : > { %v1589_v14 = vmul.f32 0.35355338, %v1583_v10  ;;  %v2439_v10 = vld.sshfl [vmem:[%s2971_s27 + $0xc] sm:$0x2 pattern:$0x76325410] }
 0x324   : > { %v2524_v50 = vpop.f32.mrf.mxu1 }
 0x325   : > { %v1590_v3 = vadd.f32 %v2958_v41, %v1589_v14  ;;  %v1675_v14 = vunpack.c.l.b16 %v2438_v40  ;;  %v2081_v50 = vrot.slane %v1670_v47, 3 }
 0x326   : > { %v1586_v25 = vpop.f32.mrf.mxu1 }
 0x327   : > { %v1591_v51 = vadd.f32 %v1590_v3, %v2961_v48  ;;  %v2082_v3 = vrot.slane %v1671_v45, 2 }
 0x328   : > { %v2525_v49 = vpop.f32.mrf.mxu1 }
 0x329   : > { %v1592_v38 = vsel %vm736_vm8, %v1591_v51, -inf  ;;  %v2440_v49 = vld.sshfl [vmem:[%s2971_s27 + $0xe] sm:$0x2 pattern:$0x76325410]  ;;  %s2623_s27 = scalar_lea.vmem %s3267_s15, 256 }
 0x32a   : > { %1593 = vmax.xlane.f32.xlu1 %v1592_v38  ;;  %v1986_v43 = vpop.f32.mrf.mxu1  ;;  %v1676_v38 = vunpack.c.l.b16 %v2439_v10  ;;  %p2624_p1 = scmp.ne.s32.totalorder %s3267_s15, %s2623_s27 }
 0x32b   : > { %v1992_v44 = vmul.f32 0.35355338, %v1986_v43  ;;  %v2084_v43 = vrot.slane %v1672_v29, 1 }
 0x32c   : > { %v2536_v39 = vpop.f32.mrf.mxu1  ;;  %p2625_p2 = pnand %p2624_p1, %p2782_p5 }
 0x32d   : > { %v1993_v56 = vadd.f32 %v2958_v41, %v1992_v44  ;;  %v1686_v39 = vrot.slane %v1675_v14, 5 }
 0x32e   : > { %v1989_v61 = vpop.f32.mrf.mxu1  ;;  %p2626_p3 = pneg %p2625_p2 }
 0x32f   : > { %v1994_v42 = vadd.f32 %v1993_v56, %v2961_v48  ;;  %v2083_v56 = vsel %vm628_vm1, %v2082_v3, %v2081_v50 }
 0x330   : > { %v2537_v46 = vpop.f32.mrf.mxu1 }
 0x331   : > { %v1995_v2 = vsel %vm736_vm8, %v1994_v42, -inf  ;;  %v1688_v46 = vrot.slane %v1676_v38, 4 }
 0x332   : > { %1996 = vmax.xlane.f32.xlu0 %v1995_v2  ;;  %v2085_v2 = vsel %vm631_vm2, %v2084_v43, %v2083_v56 }
 0x3ab   : > { %v1191_v6 = vpop.xlane.xlu1 %1190 }
 0x3ac   : > { %v1192_v52 = vsub.f32 %v1188_v60, %v1191_v6  ;;  %v1674_v60 = vunpack.c.l.b16 %v2437_v28 }
 0x3ae   : > { %v1193_v57 = vmul.f32 1.442695, %v1192_v52  ;;  %v1684_v25 = vrot.slane %v1674_v60, 6  ;;  %v2087_v52 = vrot.slane %v1674_v60, 7 }
 0x3b0   : > { %2611 = vpow2.f32 %v1193_v57 }
 0x3b3   : > { %v1594_v1 = vpop.xlane.xlu1 %1593 }
 0x3b4   : > { %v1595_v31 = vsub.f32 %v1591_v51, %v1594_v1  ;;  %v1683_v51 = vsel %vm634_vm3, %v1682_v0, %v1681_v4  ;;  %v2086_v1 = vsel %vm634_vm3, %v1673_v27, %v2085_v2 }
 0x3b5   : > { %v1685_v61 = vsel %vm637_vm4, %v1684_v25, %v1683_v51 }
 0x3b6   : > { %v1596_v54 = vmul.f32 1.442695, %v1595_v31  ;;  %v1687_v6 = vsel %vm640_vm5, %v1686_v39, %v1685_v61 }
 0x3b7   : > { %v1689_v31 = vsel %vm643_vm6, %v1688_v46, %v1687_v6 }
 0x3b8   : > { %2613 = vpow2.f32 %v1596_v54 }
 0x3bb   : > { %v1997_v59 = vpop.xlane.xlu0 %1996 }
 0x3bc   : > { %v1998_v62 = vsub.f32 %v1994_v42, %v1997_v59  ;;  %v1677_v42 = vunpack.c.l.b16 %v2440_v49  ;;  %v2089_v59 = vrot.slane %v1675_v14, 6 }
 0x3bd   : > { %v3182_v55 = vpop.eup %2611 }
 0x3be   : > { %v1999_v41 = vmul.f32 1.442695, %v1998_v62  ;;  %v1195_v48 = vsel %vm736_vm8, %v3182_v55, 0.0  ;;  %v1690_v57 = vrot.slane %v1677_v42, 3  ;;  %v2088_v62 = vsel %vm637_vm4, %v2087_v52, %v2086_v1 }
 0x3bf   : > { %1196 = vadd.xlane.f32.xlu1 %v1195_v48  ;;  %v2091_v48 = vrot.slane %v1676_v38, 5 }
 0x3c0   : > { %2615 = vpow2.f32 %v1999_v41  ;;  %v1691_v41 = vsel %vm646_vm7, %v1690_v57, %v1689_v31 }
 0x3c1   : > { %v1692_v33 = vpack.c.b16 %v1691_v41, %v1691_v41 }
 0x3c3   : > { %v1697_v12 = vsel %vm896_vm10, %v1692_v33, 0 }
 0x3c5   : > { %v3186_v26 = vpop.eup %2613 }
 0x3c6   : > { %v1598_v30 = vsel %vm736_vm8, %v3186_v26, 0.0 }
 0x3c7   : > { %1599 = vadd.xlane.f32.xlu0 %v1598_v30  ;;  %v2090_v30 = vsel %vm640_vm5, %v2089_v59, %v2088_v62 }
 0x3c8   : > { %v2092_v20 = vsel %vm643_vm6, %v2091_v48, %v2090_v30 }
 0x3cd   : > { %v3192_v7 = vpop.eup %2615 }
 0x3ce   : > { %v2001_v11 = vsel %vm736_vm8, %v3192_v7, 0.0 }
 0x3cf   : > { %2002 = vadd.xlane.f32.xlu1 %v2001_v11  ;;  %v2093_v11 = vrot.slane %v1677_v42, 4 }
 0x3d1   : > { %v2094_v17 = vsel %vm646_vm7, %v2093_v11, %v2092_v20 }
 0x448   : > { %v1197_v44 = vpop.xlane.xlu1 %1196 }
 0x449   : > { %2617 = vrcp.f32 %v1197_v44 }
 0x450   : > { %v1600_v54 = vpop.xlane.xlu0 %1599 }
 0x451   : > { %2619 = vrcp.f32 %v1600_v54 }
 0x456   : > { %v2618_v5 = vpop.eup %2617 }
 0x457   : > { %v1199_v63 = vmul.f32 %v2618_v5, %v3182_v55  ;;  %v2095_v55 = vpack.c.b16 %v2094_v17, %v2094_v17 }
 0x458   : > { %v2003_v8 = vpop.xlane.xlu1 %2002 }
 0x459   : > { %2621 = vrcp.f32 %v2003_v8  ;;  %v1200_v13 = vpack.c.bf16 %v1199_v63, %v1199_v63  ;;  %v2100_v19 = vsel %vm896_vm10, %v2095_v55, 0 }
 0x45b   : > { %2404 = vst.msk [vmem:[%s3132_s30 + $0x4] sm:$0xf] %vm804_vm11, %v1200_v13  ;;  %2517 = vmatmul.mubr.msk.bf16.vlgmr.msra.gmra.mxu0 %vm736_vm8, %v1200_v13 }
 0x45c   : > { %2527 = vmatpush3.bf16.msra.mxu0 %v1697_v12  ;;  %2528 = vmatprep.mubr.msk.bf16.mxu0 %vm2702_vm0, %v2701_v24 }
 0x45d   : > { %2538 = vmatprep.subr.bf16.mxu0 %v2701_v24 }
 0x45e   : > { %v2620_v9 = vpop.eup %2619 }
 0x45f   : > { %v1602_v15 = vmul.f32 %v2620_v9, %v3186_v26 }
 0x461   : > { %v1603_v16 = vpack.c.bf16 %v1602_v15, %v1602_v15 }
 0x463   : > { %2432 = vst.msk [vmem:[%s3132_s30 + $0x8] sm:$0xf] %vm804_vm11, %v1603_v16  ;;  %2529 = vmatmul.mubr.msk.bf16.vlgmr.msra.gmra.mxu0 %vm736_vm8, %v1603_v16 }
 0x464   : > { %2539 = vmatpush3.bf16.msra.mxu0 %v2100_v19  ;;  %2540 = vmatprep.mubr.msk.bf16.mxu0 %vm2702_vm0, %v2701_v24 }
 0x466   : > { %v2622_v18 = vpop.eup %2621 }
 0x467   : > { %v2005_v22 = vmul.f32 %v2622_v18, %v3192_v7 }
 0x469   : > { %v2006_v32 = vpack.c.bf16 %v2005_v22, %v2005_v22 }
 0x46b   : > { %2460 = vst.msk [vmem:[%s3132_s30 + $0xc] sm:$0xf] %vm804_vm11, %v2006_v32  ;;  %2541 = vmatmul.mubr.msk.bf16.vlgmr.msra.gmra.mxu0 %vm736_vm8, %v2006_v32  ;;  %s2627_s30 = sshll.u32 %s2704_s21, 4  ;;  %s2628_s30 = int_to_ptr.vmem [resolvable:$false] %s2627_s30 }
 0x46c   : > { %s2629_s8 = scalar_lea.vmem %s2628_s30, 512  ;;  %p2630_p4 = scmp.lt.s32.totalorder %s3267_s15, %s2628_s30 }
 0x46d   : > { %p2631_p6 = scmp.lt.s32.totalorder %s2629_s8, %s2623_s27 }
 0x46f   : > { %p2632_p7 = por %p2631_p6, %p2630_p4 }
 0x471   : > { %p2633_p8 = pnand %p2632_p7, %p2626_p3 }
 0x51b   : > { %v1330_v26 = vpop.f32.mrf.mxu0 }
 0x51c   : > { %v2476_v21 = vpack.c.bf16 %v1330_v26, %v1330_v26 }
 0x51d   : > { %v2518_v37 = vpop.f32.mrf.mxu0 }
 0x51e   : > { %1340 = vrot.lane.b32.xlu0 %v2476_v21, %s2703_s13 }
 0x51f   : > { %v1333_v34 = vpop.f32.mrf.mxu0 }
 0x521   : > { %v2519_v24 = vpop.f32.mrf.mxu0 }
 0x523   : > { %v1733_v7 = vpop.f32.mrf.mxu0 }
 0x524   : > { %2636 = shalt.err (!%p2633_p8)
}
 0x525   : > { %s2637_s28 = scalar_lea.hbm %s3265_s24, 256  ;;  %s2641_s11 = scalar_lea.hbm %s3325_s5, 512 }
 0x526   : > { %p2638_p11 = scmp.ne.s32.totalorder %s3265_s24, %s2637_s28  ;;  %p2642_p0 = scmp.lt.s32.totalorder %s3265_s24, %s3325_s5 }
 0x527   : > { %p2643_p1 = scmp.lt.s32.totalorder %s2641_s11, %s2637_s28 }
 0x528   : > { %p2639_p12 = pnand %p2638_p11, %p2782_p5 }
 0x529   : > { %p2644_p2 = por %p2643_p1, %p2642_p0 }
 0x52a   : > { %p2640_p13 = pneg %p2639_p12 }
 0x52c   : > { %p2645_p3 = pnand %p2644_p2, %p2640_p13 }
 0x52e   : > { %2648 = shalt.err (!%p2645_p3)
}
 0x52f   : > { %s2705_s16 = smov 64   ;;  %s2706_s17 = smov 4   ;;  %v2477_v47 = vpack.c.bf16 %v1733_v7, %v1733_v7  ;;  %v2530_v45 = vpop.f32.mrf.mxu0  ;;  %vm1343_vm12 = vcmask 126016   ;;  %vm1746_vm13 = vcmask 191616   ;;  %vm2149_vm14 = vcmask 257216  }
 0x530   : > { %2545 = dma.vmem_to_hbm [thread:$0]  (%p2782_p5), %s3267_s15, 256, %s3265_s24, %s3271_s25, %s2705_s16, %s2705_s16, %s2706_s17  }
 0x531   : > { %s2707_s27 = smov 16   ;;  %v1736_v53 = vpop.f32.mrf.mxu0  ;;  %s2708_s21 = smov 24  }
 0x532   : > { %1743 = vrot.lane.b32.xlu1 %v2477_v47, %s2707_s27 }
 0x533   : > { %v2531_v36 = vpop.f32.mrf.mxu0 }
 0x535   : > { %v2136_v23 = vpop.f32.mrf.mxu0 }
 0x536   : > { %v2478_v58 = vpack.c.bf16 %v2136_v23, %v2136_v23 }
 0x537   : > { %v2542_v28 = vpop.f32.mrf.mxu0 }
 0x538   : > { %2146 = vrot.lane.b32.xlu1 %v2478_v58, %s2708_s21 }
 0x539   : > { %v2139_v27 = vpop.f32.mrf.mxu0 }
 0x53b   : > { %v2543_v29 = vpop.f32.mrf.mxu0 }
 0x590   : > { %v1341_v35 = vpop.permute.xlu0 %1340 }
 0x591   : > { %1344 = vst.msk [vmem:[%s3169_s12] sm:$0xf] %vm1343_vm12, %v1341_v35 }
 0x5a4   : > { %v1744_v40 = vpop.permute.xlu1 %1743 }
 0x5a5   : > { %1747 = vst.msk [vmem:[%s3169_s12] sm:$0xf] %vm1746_vm13, %v1744_v40 }
 0x5aa   : > { %v2147_v60 = vpop.permute.xlu1 %2146 }
 0x5ab   : > { %2150 = vst.msk [vmem:[%s3169_s12] sm:$0xf] %vm2149_vm14, %v2147_v60 }
 0x5ac PF: > { %s2201_s29 = sand.u32 1, %s2679_s18   ;;  %p2548_p5 = pnand %p2331_p10, %p2793_p9 }
 0x5ad   : > { %s2202_s15 = scalar_lea.sflag [#allocation6], %s2201_s29 }
 0x5ae   : > { %p2549_p4 = pneg %p2548_p5 }
 0x5b0   : > { %2674 = dma.done.wait (%p2549_p4), %s2202_s15, 256  }
 0x5b1   : > { %2676 = vsyncadd (%p2549_p4), %s2202_s15, 4294967040  ;;  %s19_s23 = sadd.s32 1, %s2699_s23   ;;  %s3329_s18 = smov %s2683_s19 }
 0x5b2   : > { %p16_p6 = scmp.ge.s32.totalorder %s19_s23, 4   ;;  %s3330_s19 = smov %s2687_s20 }
 0x5b3   : > { %s3331_s20 = smov %s2791_s6  ;;  %s3332_s21 = smov %s2695_s22 }
 0x5b4   : > { %s3333_s22 = smov %s3335_s26  ;;  %18 = sbr.rel (!%p16_p6) target bundleno = 4 (0x4), region = 230 }
 0x5b9   :  { %2207 = vsyncpa [#allocation6], 1 }
 0x5ba   :  { %2209 = vsyncpa [#allocation6 + $0x1], 1 }

// kernel: _lambda_.38
= control target key start
LH: loop header
LB: loop body
LE: loop exit
PB: predicated region body
PF: predicated region fallthrough
CT: control target
= control target key end

     0   :  { %11 = vsyncpa [#allocation5], 0  ;;  %s3226_s0 = inlined_call_operand.vmem [shape: bf16[2,8,1,4,8], index: 0, kind: input, shape index: {}]   ;;  %s3227_s1 = inlined_call_operand.vmem [shape: bf16[2,8,2,4,8], index: 1, kind: input, shape index: {}, may-alias: {1,2}]   ;;  %s3228_s2 = inlined_call_operand.vmem [shape: bf16[2,8,2,4,8], index: 2, kind: input, shape index: {}, may-alias: {1,2}]   ;;  %s3229_s3 = inlined_call_operand.vmem [shape: f32[1,1,8], index: 3, kind: input, shape index: {}]   ;;  %s3230_s4 = inlined_call_operand.vmem [shape: bf16[2,8,32], index: 4, kind: output, shape index: {0}]   ;;  %s3231_s5 = inlined_call_operand.hbm [shape: bf16[2,4,8,8], index: 5, kind: output, shape index: {1}]  }
   0x1   :  { %13 = vsyncpa [#allocation5 + $0x1], 0  ;;  %s2653_s18 = smov 0   ;;  %s2655_s19 = smov 0  }
   0x2   :  { %s2657_s20 = smov 0   ;;  %s2659_s21 = smov 0  }
   0x3   :  { %s2661_s22 = smov 0   ;;  %s2663_s23 = smov 0  }
   0x4 LB: > { %s2247_s24 = sadd.s32 4294967295, %s2613_s23   ;;  %s2248_s25 = sadd.s32 4294967294, %s2613_s23   ;;  %s2613_s23 = sphi %s2663_s23, %s19_s23   ;;  %s2609_s22 = sphi %s2661_s22, %s3239_s22   ;;  %s2605_s21 = sphi %s2659_s21, %s3238_s21   ;;  %s2601_s20 = sphi %s2657_s20, %s3237_s20   ;;  %s2597_s19 = sphi %s2655_s19, %s3236_s19   ;;  %s2593_s18 = sphi %s2653_s18, %s3235_s18  }
   0x5   : > { %s31_s26 = sadd.s32 1, %s2609_s22  ;;  %s66_s27 = sadd.s32 1, %s2601_s20 }
   0x6   : > { %p33_p0 = scmp.ge.s32.totalorder %s31_s26, 2  ;;  %p73_p1 = scmp.ne.s32.totalorder %s2601_s20, %s2597_s19 }
   0x7   : > { %p74_p2 = scmp.eq.s32.totalorder %s2613_s23, 0  ;;  %p180_p3 = scmp.eq.s32.totalorder %s2247_s24, 1 }
   0x8   : > { %s3241_s26 = smov (%p33_p0, %s31_s26), 0  ;;  %p185_p6 = scmp.ne.s32.totalorder %s2597_s19, %s2593_s18 }
   0x9   : > { %p2692_p4 = por %p74_p2, %p73_p1  ;;  %p2696_p5 = por %p180_p3, %p73_p1 }
   0xa   : > { %s63_s30 = ssub.s32 %s2609_s22, %s3241_s26  ;;  %p186_p8 = scmp.eq.s32.totalorder %s2248_s25, 1 }
   0xb   : > { %p64_p7 = scmp.eq.s32.totalorder %s63_s30, 0  ;;  %p2250_p10 = scmp.ge.s32.totalorder %s2613_s23, 2 }
   0xc   : > { %p2707_p9 = por %p186_p8, %p185_p6 }
   0xd   : > { %s2705_s6 = scalar_select %p64_p7, %s2601_s20, %s66_s27  }
   0xe   : > { %205 = sbr.rel (%p2250_p10) target bundleno = 37 (0x25), region = 20 }
  0x13   : > { %221 = sbr.rel (!%p2692_p4) target bundleno = 28 (0x1c), region = 28  ;;  %s223_s8 = sand.u32 (%p2692_p4), 1, %s2601_s20  }
  0x14   : > { %s2388_s9 = sshll.u32 (%p2692_p4), %s2609_s22, 5  ;;  %s2251_s10 = sshll.u32 (%p2692_p4), %s223_s8, 4 }
  0x15   : > { %s228_s13 = scalar_lea.vmem (%p2692_p4), %s3227_s1, %s2388_s9  ;;  %s225_s14 = scalar_lea.vmem (%p2692_p4), [#allocation2], %s2251_s10 }
  0x16   : > { %v245_v0 = vld [vmem:[%s228_s13] sm:$0x3] (%p2692_p4)  ;;  %v247_v1 = vld [vmem:[%s228_s13 + $0x4] sm:$0x3] (%p2692_p4)  ;;  %v249_v2 = vld [vmem:[%s228_s13 + $0x8] sm:$0x3] (%p2692_p4) }
  0x17   : > { %246 = vst [vmem:[%s225_s14] sm:$0x3] (%p2692_p4), %v245_v0  ;;  %248 = vst [vmem:[%s225_s14 + $0x2] sm:$0x3] (%p2692_p4), %v247_v1  ;;  %v251_v3 = vld [vmem:[%s228_s13 + $0xc] sm:$0x3] (%p2692_p4) }
  0x18   : > { %v253_v4 = vld [vmem:[%s228_s13 + $0x10] sm:$0x3]  ;;  %250 = vst [vmem:[%s225_s14 + $0x4] sm:$0x3] %v249_v2  ;;  %252 = vst [vmem:[%s225_s14 + $0x6] sm:$0x3] %v251_v3 }
  0x19   : > { %254 = vst [vmem:[%s225_s14 + $0x8] sm:$0x3] %v253_v4  ;;  %v255_v5 = vld [vmem:[%s228_s13 + $0x14] sm:$0x3]  ;;  %v257_v6 = vld [vmem:[%s228_s13 + $0x18] sm:$0x3] }
  0x1a   : > { %v259_v7 = vld [vmem:[%s228_s13 + $0x1c] sm:$0x3]  ;;  %256 = vst [vmem:[%s225_s14 + $0xa] sm:$0x3] %v255_v5  ;;  %258 = vst [vmem:[%s225_s14 + $0xc] sm:$0x3] %v257_v6 }
  0x1b   : > { %260 = vst [vmem:[%s225_s14 + $0xe] sm:$0x3] %v259_v7 }
  0x1c PF: > { %300 = sbr.rel (!%p2692_p4) target bundleno = 37 (0x25), region = 69  ;;  %s302_s15 = sand.u32 (%p2692_p4), 1, %s2601_s20  }
  0x1d   : > { %s2389_s16 = sshll.u32 (%p2692_p4), %s2609_s22, 5  ;;  %s2254_s17 = sshll.u32 (%p2692_p4), %s302_s15, 4 }
  0x1e   : > { %s2146_s27 = scalar_lea.vmem (%p2692_p4), %s3228_s2, %s2389_s16  ;;  %s304_s30 = scalar_lea.vmem (%p2692_p4), [#allocation3], %s2254_s17 }
  0x1f   : > { %v2257_v8 = vld [vmem:[%s2146_s27 + $0x2] sm:$0x3] (%p2692_p4)  ;;  %v2258_v9 = vld [vmem:[%s2146_s27 + $0x6] sm:$0x3] (%p2692_p4)  ;;  %v2259_v10 = vld [vmem:[%s2146_s27 + $0xa] sm:$0x3] (%p2692_p4) }
  0x20   : > { %326 = vst [vmem:[%s304_s30] sm:$0x3] (%p2692_p4), %v2257_v8  ;;  %328 = vst [vmem:[%s304_s30 + $0x2] sm:$0x3] (%p2692_p4), %v2258_v9  ;;  %v2260_v11 = vld [vmem:[%s2146_s27 + $0xe] sm:$0x3] (%p2692_p4) }
  0x21   : > { %v2261_v12 = vld [vmem:[%s2146_s27 + $0x12] sm:$0x3]  ;;  %330 = vst [vmem:[%s304_s30 + $0x4] sm:$0x3] %v2259_v10  ;;  %332 = vst [vmem:[%s304_s30 + $0x6] sm:$0x3] %v2260_v11 }
  0x22   : > { %334 = vst [vmem:[%s304_s30 + $0x8] sm:$0x3] %v2261_v12  ;;  %v2262_v13 = vld [vmem:[%s2146_s27 + $0x16] sm:$0x3]  ;;  %v2263_v14 = vld [vmem:[%s2146_s27 + $0x1a] sm:$0x3] }
  0x23   : > { %v2264_v15 = vld [vmem:[%s2146_s27 + $0x1e] sm:$0x3]  ;;  %336 = vst [vmem:[%s304_s30 + $0xa] sm:$0x3] %v2262_v13  ;;  %338 = vst [vmem:[%s304_s30 + $0xc] sm:$0x3] %v2263_v14 }
  0x24   : > { %340 = vst [vmem:[%s304_s30 + $0xe] sm:$0x3] %v2264_v15 }
  0x25 PF: > { %p2265_p11 = scmp.ge.s32.totalorder %s2613_s23, 1  ;;  %p379_p12 = scmp.lt.s32.totalorder %s2613_s23, 3 }
  0x27   : > { %p380_p13 = pnand %p2265_p11, %p379_p12 }
  0x28   : > { %s386_s28 = sand.u32 (!%p380_p13), 1, %s2597_s19   ;;  %p441_p0 = scmp.lt.s32.totalorder (!%p380_p13), %s2605_s21, 1 }
  0x29   : > { %383 = sbr.rel (%p380_p13) target bundleno = 1436 (0x59c), region = 110  ;;  %s2735_s8 = sshll.u32 (!%p380_p13), %s386_s28, 4 }
  0x2a   : > { %s2739_s9 = scalar_lea.vmem (!%p380_p13), [#allocation2], %s2735_s8  ;;  %s2881_s17 = scalar_lea.vmem (!%p380_p13), [#allocation3], %s2735_s8 }
  0x2b   : > { %s3042_s24 = scalar_lea.vmem (!%p380_p13), [#allocation4], %s2735_s8  ;;  %s3177_s15 = scalar_lea.sflag (!%p380_p13), [#allocation5], %s386_s28 }
  0x2e   : > { %v2615_v16 = vmov 0.0   ;;  %v2742_v17 = vld.sshfl [vmem:[%s2739_s9] sm:$0x1 pattern:$0x76325410]  ;;  %vm2616_vm0 = vmmov 0  }
  0x2f   : > { %2411 = vmatprep.subr.bf16.mxu0 %v2615_v16  ;;  %2417 = vmatprep.subr.bf16.mxu1 %v2615_v16  ;;  %s2747_s10 = scalar_select %p441_p0, %s2605_s21, 1  ;;  %v2752_v18 = vld.sshfl [vmem:[%s2739_s9 + $0x2] sm:$0x1 pattern:$0x76325410]  ;;  %v641_v20 = vunpack.c.l.b16 %v2742_v17  ;;  %vm556_vm1 = vcmask 1041409  }
  0x30   : > { %2413 = vmatprep.mubr.msk.bf16.mxu0 %vm2616_vm0, %v2615_v16  ;;  %2419 = vmatprep.mubr.msk.bf16.mxu1 %vm2616_vm0, %v2615_v16  ;;  %v2755_v19 = vld.sshfl [vmem:[%s2739_s9 + $0x4] sm:$0x1 pattern:$0x76325410]  ;;  %v642_v21 = vunpack.c.l.b16 %v2752_v18  ;;  %vm559_vm2 = vcmask 1042434   ;;  %vm562_vm3 = vcmask 1043459  }
  0x31   : > { %v2760_v22 = vld.sshfl [vmem:[%s2739_s9 + $0x6] sm:$0x1 pattern:$0x76325410]  ;;  %v643_v23 = vunpack.c.l.b16 %v2755_v19  ;;  %s2390_s11 = sshll.u32 %s2747_s10, 4  ;;  %vm565_vm4 = vcmask 1044484  }
  0x32   : > { %v2765_v24 = vld.sshfl [vmem:[%s2739_s9 + $0x8] sm:$0x1 pattern:$0x76325410]  ;;  %v644_v25 = vunpack.c.l.b16 %v2760_v22  ;;  %v649_v26 = vrot.slane %v642_v21, 7  ;;  %s2788_s14 = scalar_lea.vmem %s3226_s0, %s2390_s11  ;;  %vm568_vm5 = vcmask 1045509  }
  0x33   : > { %v2771_v27 = vld.sshfl [vmem:[%s2739_s9 + $0xa] sm:$0x1 pattern:$0x76325410]  ;;  %v645_v28 = vunpack.c.l.b16 %v2765_v24  ;;  %v651_v29 = vrot.slane %v643_v23, 6  ;;  %vm571_vm6 = vcmask 1046534  }
  0x34   : > { %v2777_v30 = vld.sshfl [vmem:[%s2739_s9 + $0xc] sm:$0x1 pattern:$0x76325410]  ;;  %v646_v31 = vunpack.c.l.b16 %v2771_v27  ;;  %v650_v32 = vsel %vm556_vm1, %v649_v26, %v641_v20  ;;  %v653_v33 = vrot.slane %v644_v25, 5  ;;  %vm574_vm7 = vcmask 1047559  }
  0x35   : > { %v2791_v34 = vld.sshfl [vmem:[%s2739_s9 + $0xe] sm:$0x1 pattern:$0x76325410]  ;;  %v647_v35 = vunpack.c.l.b16 %v2777_v30  ;;  %v652_v36 = vsel %vm559_vm2, %v651_v29, %v650_v32  ;;  %v655_v37 = vrot.slane %v645_v28, 4  ;;  %vm664_vm8 = vcmask 64512  }
  0x36   : > { %v648_v38 = vunpack.c.l.b16 %v2791_v34  ;;  %v654_v39 = vsel %vm562_vm3, %v653_v33, %v652_v36  ;;  %v657_v40 = vrot.slane %v646_v31, 3  ;;  %v2802_v41 = vld.sshfl [vmem:[%s2788_s14] sm:$0x1 pattern:$0x76325410]  ;;  %vm823_vm9 = vcmask 1043456  }
  0x37   : > { %v656_v42 = vsel %vm565_vm4, %v655_v37, %v654_v39  ;;  %v659_v43 = vrot.slane %v647_v35, 2  ;;  %v2808_v44 = vld.sshfl [vmem:[%s2788_s14 + $0x2] sm:$0x1 pattern:$0x76325410]  ;;  %v547_v48 = vunpack.c.l.b16 %v2802_v41  ;;  %v1058_v17 = vrot.slane %v645_v28, 5 }
  0x38   : > { %v658_v45 = vsel %vm568_vm5, %v657_v40, %v656_v42  ;;  %v661_v46 = vrot.slane %v648_v38, 1  ;;  %v2814_v47 = vld.sshfl [vmem:[%s2788_s14 + $0x4] sm:$0x1 pattern:$0x76325410]  ;;  %v548_v49 = vunpack.c.l.b16 %v2808_v44  ;;  %v1060_v18 = vrot.slane %v646_v31, 4 }
  0x39   : > { %v660_v50 = vsel %vm571_vm6, %v659_v43, %v658_v45  ;;  %v2820_v51 = vld.sshfl [vmem:[%s2788_s14 + $0x6] sm:$0x1 pattern:$0x76325410]  ;;  %v549_v52 = vunpack.c.l.b16 %v2814_v47  ;;  %v2872_v29 = vld [vmem:[%s3229_s3] ss:$0 sm:$0xff] }
  0x3a   : > { %v662_v53 = vsel %vm574_vm7, %v661_v46, %v660_v50  ;;  %v2825_v54 = vld.sshfl [vmem:[%s2788_s14 + $0x8] sm:$0x1 pattern:$0x76325410]  ;;  %v550_v55 = vunpack.c.l.b16 %v2820_v51  ;;  %v555_v56 = vrot.slane %v548_v49, 7  ;;  %v965_v24 = vrot.slane %v547_v48, 1 }
  0x3b   : > { %v663_v57 = vpack.c.b16 %v662_v53, %v662_v53  ;;  %v2831_v58 = vld.sshfl [vmem:[%s2788_s14 + $0xa] sm:$0x1 pattern:$0x76325410]  ;;  %v551_v59 = vunpack.c.l.b16 %v2825_v54  ;;  %v558_v60 = vrot.slane %v549_v52, 6  ;;  %v1064_v30 = vrot.slane %v648_v38, 2 }
  0x3c   : > { %v2837_v61 = vld.sshfl [vmem:[%s2788_s14 + $0xc] sm:$0x1 pattern:$0x76325410]  ;;  %v552_v62 = vunpack.c.l.b16 %v2831_v58  ;;  %v557_v63 = vsel %vm556_vm1, %v555_v56, %v547_v48  ;;  %v561_v0 = vrot.slane %v550_v55, 5  ;;  %v969_v34 = vrot.slane %v550_v55, 6 }
  0x3d   : > { %v669_v1 = vsel %vm664_vm8, %v663_v57, 0  ;;  %v2847_v2 = vld.sshfl [vmem:[%s2788_s14 + $0xe] sm:$0x1 pattern:$0x76325410]  ;;  %v553_v3 = vunpack.c.l.b16 %v2837_v61  ;;  %v560_v4 = vsel %vm559_vm2, %v558_v60, %v557_v63  ;;  %v564_v5 = vrot.slane %v551_v59, 4 }
  0x3e   : > { %2412 = vmatpush3.bf16.xpose.msra.mxu0 %v669_v1  ;;  %v554_v6 = vunpack.c.l.b16 %v2847_v2  ;;  %v563_v7 = vsel %vm562_vm3, %v561_v0, %v560_v4  ;;  %v567_v8 = vrot.slane %v552_v62, 3  ;;  %v2884_v53 = vld.sshfl [vmem:[%s2881_s17] sm:$0x1 pattern:$0x76325410]  ;;  %vm731_vm10 = vcmask 60416  }
  0x3f   : > { %v566_v9 = vsel %vm565_vm4, %v564_v5, %v563_v7  ;;  %v570_v10 = vrot.slane %v553_v3, 2  ;;  %2429 = vmatprep.subr.bf16.mxu0 %v2615_v16  ;;  %v2887_v56 = vld.sshfl [vmem:[%s2881_s17 + $0x2] sm:$0x1 pattern:$0x76325410]  ;;  %v797_v60 = vunpack.c.l.b16 %v2884_v53  ;;  %v975_v58 = vrot.slane %v553_v3, 3 }
  0x40   : > { %v569_v11 = vsel %vm568_vm5, %v567_v8, %v566_v9  ;;  %v573_v12 = vrot.slane %v554_v6, 1  ;;  %v2890_v57 = vld.sshfl [vmem:[%s2881_s17 + $0x4] sm:$0x1 pattern:$0x76325410]  ;;  %v798_v63 = vunpack.c.l.b16 %v2887_v56  ;;  %s2271_s25 = sshll.u32 %s2747_s10, 2 }
  0x41   : > { %v572_v13 = vsel %vm571_vm6, %v570_v10, %v569_v11  ;;  %v2895_v0 = vld.sshfl [vmem:[%s2881_s17 + $0x6] sm:$0x1 pattern:$0x76325410]  ;;  %v799_v1 = vunpack.c.l.b16 %v2890_v57  ;;  %s3078_s8 = scalar_lea.vmem %s3230_s4, %s2271_s25  ;;  %s2394_s10 = sshll.u32 %s2605_s21, 8 }
  0x42   : > { %v575_v14 = vsel %vm574_vm7, %v573_v12, %v572_v13  ;;  %v2899_v4 = vld.sshfl [vmem:[%s2881_s17 + $0x8] sm:$0x1 pattern:$0x76325410]  ;;  %v800_v5 = vunpack.c.l.b16 %v2895_v0  ;;  %v805_v7 = vrot.slane %v798_v63, 7  ;;  %s2100_s11 = sshll.u32 %s3042_s24, 4  ;;  %s3173_s11 = int_to_ptr.vmem [resolvable:$true] %s2100_s11 }
  0x43   : > { %v576_v15 = vpack.c.b16 %v575_v14, %v575_v14  ;;  %v2905_v8 = vld.sshfl [vmem:[%s2881_s17 + $0xa] sm:$0x1 pattern:$0x76325410]  ;;  %v801_v9 = vunpack.c.l.b16 %v2899_v4  ;;  %v807_v10 = vrot.slane %v799_v1, 6  ;;  %s2537_s16 = scalar_lea.vmem %s3173_s11, 256 }
  0x44   : > { %v2911_v11 = vld.sshfl [vmem:[%s2881_s17 + $0xc] sm:$0x1 pattern:$0x76325410]  ;;  %v802_v12 = vunpack.c.l.b16 %v2905_v8  ;;  %v806_v13 = vsel %vm556_vm1, %v805_v7, %v797_v60  ;;  %v809_v14 = vrot.slane %v800_v5, 5  ;;  %p2538_p1 = scmp.ne.s32.totalorder %s3173_s11, %s2537_s16  ;;  %s2618_s21 = smov [#allocation4]  }
  0x45   : > { %2414 = vmatmul.mubr.msk.bf16.vlgmr.msra.gmra.mxu0 %vm664_vm8, %v576_v15  ;;  %v2920_v15 = vld.sshfl [vmem:[%s2881_s17 + $0xe] sm:$0x1 pattern:$0x76325410] }
  0x46   : > { %2431 = vmatprep.mubr.msk.bf16.mxu0 %vm2616_vm0, %v2615_v16  ;;  %v2339_v28 = vld.sshfl [vmem:[%s2739_s9 + $0x8] sm:$0x2 pattern:$0x76325410]  ;;  %p2539_p2 = pnand %p2538_p1, %p2696_p5 }
  0x47   : > { %v2340_v48 = vld.sshfl [vmem:[%s2739_s9 + $0xa] sm:$0x2 pattern:$0x76325410] }
  0x48   : > { %v2989_v38 = vld.sshfl [vmem:[%s2739_s9 + $0xc] sm:$0x2 pattern:$0x76325410]  ;;  %p2540_p3 = pneg %p2539_p2 }
  0x49   : > { %v3000_v51 = vld.sshfl [vmem:[%s2788_s14 + $0x6] sm:$0x2 pattern:$0x76325410] }
  0x4a   : > { %v1362_v54 = vunpack.c.l.b16 %v3000_v51 }
 0x105   : > { %v705_v26 = vpop.f32.mrf.mxu0 }
 0x106   : > { %v711_v32 = vmul.f32 0.35355338, %v705_v26  ;;  %v803_v26 = vunpack.c.l.b16 %v2911_v11  ;;  %v2346_v11 = vld.sshfl [vmem:[%s2881_s17 + $0x2] sm:$0x2 pattern:$0x76325410] }
 0x107   : > { %v2415_v33 = vpop.f32.mrf.mxu0 }
 0x108   : > { %v718_v36 = vadd.f32 %v2872_v29, %v711_v32  ;;  %v808_v32 = vsel %vm559_vm2, %v807_v10, %v806_v13  ;;  %v811_v33 = vrot.slane %v801_v9, 4 }
 0x109   : > { %v708_v37 = vpop.f32.mrf.mxu0 }
 0x10a   : > { %v719_v39 = vsel %vm664_vm8, %v718_v36, -inf  ;;  %v810_v37 = vsel %vm562_vm3, %v809_v14, %v808_v32  ;;  %v1052_v14 = vrot.slane %v641_v20, 1  ;;  %v1054_v32 = vrot.slane %v643_v23, 7 }
 0x10b   : > { %720 = vmax.xlane.f32.xlu0 %v719_v39  ;;  %v2416_v40 = vpop.f32.mrf.mxu0  ;;  %v813_v39 = vrot.slane %v802_v12, 3 }
 0x10c   : > { %v812_v40 = vsel %vm565_vm4, %v811_v33, %v810_v37  ;;  %v1053_v33 = vsel %vm556_vm1, %v642_v21, %v1052_v14  ;;  %v2335_v37 = vld.sshfl [vmem:[%s2739_s9] sm:$0x2 pattern:$0x76325410] }
 0x10d   : > { %v1446_v20 = vunpack.c.l.b16 %v2335_v37  ;;  %v2958_v21 = vld.sshfl [vmem:[%s2739_s9 + $0x6] sm:$0x2 pattern:$0x76325410] }
 0x194   : > { %v721_v42 = vpop.xlane.xlu0 %720 }
 0x195   : > { %v722_v43 = vsub.f32 %v718_v36, %v721_v42  ;;  %v804_v36 = vunpack.c.l.b16 %v2920_v15  ;;  %v815_v42 = vrot.slane %v803_v26, 2  ;;  %v1596_v15 = vunpack.c.l.b16 %v2346_v11 }
 0x197   : > { %v723_v45 = vmul.f32 1.442695, %v722_v43  ;;  %v814_v43 = vsel %vm568_vm5, %v813_v39, %v812_v40  ;;  %v1056_v39 = vrot.slane %v644_v25, 6  ;;  %v1213_v0 = vrot.slane %v804_v36, 2 }
 0x198   : > { %v2336_v40 = vld.sshfl [vmem:[%s2739_s9 + $0x2] sm:$0x2 pattern:$0x76325410] }
 0x199   : > { %2521 = vpow2.f32 %v723_v45  ;;  %v817_v45 = vrot.slane %v804_v36, 1  ;;  %v1447_v19 = vunpack.c.l.b16 %v2336_v40  ;;  %v2337_v25 = vld.sshfl [vmem:[%s2739_s9 + $0x4] sm:$0x2 pattern:$0x76325410] }
 0x19a   : > { %v1448_v31 = vunpack.c.l.b16 %v2337_v25  ;;  %v2994_v40 = vld.sshfl [vmem:[%s2739_s9 + $0xe] sm:$0x2 pattern:$0x76325410]  ;;  %s2617_s9 = smov 8  }
 0x19b   : > { %v2348_v36 = vld.sshfl [vmem:[%s2881_s17 + $0x6] sm:$0x2 pattern:$0x76325410] }
 0x1a6   : > { %v2876_v46 = vpop.eup %2521 }
 0x1a7   : > { %v725_v50 = vsel %vm664_vm8, %v2876_v46, 0.0 }
 0x1a8   : > { %726 = vadd.xlane.f32.xlu0 %v725_v50  ;;  %v816_v50 = vsel %vm571_vm6, %v815_v42, %v814_v43  ;;  %v1055_v42 = vsel %vm559_vm2, %v1054_v32, %v1053_v33  ;;  %v1454_v43 = vrot.slane %v1446_v20, 2  ;;  %v967_v32 = vrot.slane %v549_v52, 7 }
 0x1a9   : > { %v818_v7 = vsel %vm574_vm7, %v817_v45, %v816_v50  ;;  %v1057_v23 = vsel %vm562_vm3, %v1056_v39, %v1055_v42  ;;  %v1455_v45 = vrot.slane %v1447_v19, 1  ;;  %v1062_v50 = vrot.slane %v647_v35, 3 }
 0x1aa   : > { %v819_v10 = vpack.c.b16 %v818_v7, %v818_v7  ;;  %v1059_v22 = vsel %vm565_vm4, %v1058_v17, %v1057_v23  ;;  %v1449_v7 = vunpack.c.l.b16 %v2958_v21  ;;  %v966_v35 = vsel %vm556_vm1, %v548_v49, %v965_v24 }
 0x1ab   : > { %v1061_v27 = vsel %vm568_vm5, %v1060_v18, %v1059_v22  ;;  %v1456_v41 = vsel %vm556_vm1, %v1455_v45, %v1454_v43  ;;  %v1450_v33 = vunpack.c.l.b16 %v2339_v28  ;;  %v968_v49 = vsel %vm559_vm2, %v967_v32, %v966_v35  ;;  %v2329_v43 = vld.sshfl [vmem:[%s2788_s14 + $0x4] sm:$0x2 pattern:$0x76325410] }
 0x1ac   : > { %v825_v13 = vsel %vm823_vm9, %v819_v10, 0  ;;  %v2969_v10 = vld.sshfl [vmem:[%s2788_s14] sm:$0x2 pattern:$0x76325410]  ;;  %v1063_v37 = vsel %vm571_vm6, %v1062_v50, %v1061_v27  ;;  %v1458_v47 = vrot.slane %v1449_v7, 7  ;;  %v1457_v44 = vsel %vm559_vm2, %v1448_v31, %v1456_v41 }
 0x1ad   : > { %2418 = vmatpush3.bf16.msra.mxu1 %v825_v13  ;;  %v2328_v13 = vld.sshfl [vmem:[%s2788_s14 + $0x2] sm:$0x2 pattern:$0x76325410]  ;;  %v1359_v52 = vunpack.c.l.b16 %v2969_v10  ;;  %v1451_v42 = vunpack.c.l.b16 %v2340_v48  ;;  %v1856_v17 = vrot.slane %v1446_v20, 3  ;;  %v1857_v23 = vrot.slane %v1447_v19, 2 }
 0x1ae   : > { %2423 = vmatprep.subr.bf16.mxu1 %v2615_v16  ;;  %v1360_v39 = vunpack.c.l.b16 %v2328_v13  ;;  %v1065_v18 = vsel %vm574_vm7, %v1064_v30, %v1063_v37  ;;  %v971_v22 = vrot.slane %v551_v59, 5  ;;  %v1460_v25 = vrot.slane %v1450_v33, 6  ;;  %v2331_v27 = vld.sshfl [vmem:[%s2788_s14 + $0x8] sm:$0x2 pattern:$0x76325410] }
 0x1af   : > { %v1459_v55 = vsel %vm562_vm3, %v1458_v47, %v1457_v44  ;;  %v1367_v45 = vrot.slane %v1359_v52, 2  ;;  %v970_v28 = vsel %vm562_vm3, %v969_v34, %v968_v49  ;;  %v1452_v50 = vunpack.c.l.b16 %v2989_v38  ;;  %v2332_v48 = vld.sshfl [vmem:[%s2788_s14 + $0xa] sm:$0x2 pattern:$0x76325410] }
 0x1b0   : > { %v1368_v24 = vrot.slane %v1360_v39, 1  ;;  %v1859_v20 = vrot.slane %v1448_v31, 1  ;;  %v1066_v19 = vpack.c.b16 %v1065_v18, %v1065_v18  ;;  %v1462_v10 = vrot.slane %v1451_v42, 5 }
 0x1b1   : > { %v1858_v59 = vsel %vm556_vm1, %v1857_v23, %v1856_v17  ;;  %v973_v13 = vrot.slane %v552_v62, 4  ;;  %v1461_v32 = vsel %vm565_vm4, %v1460_v25, %v1459_v55  ;;  %v1361_v41 = vunpack.c.l.b16 %v2329_v43  ;;  %v2333_v18 = vld.sshfl [vmem:[%s2788_s14 + $0xc] sm:$0x2 pattern:$0x76325410] }
 0x1b2   : > { %v972_v30 = vsel %vm565_vm4, %v971_v22, %v970_v28  ;;  %v1369_v31 = vsel %vm556_vm1, %v1368_v24, %v1367_v45  ;;  %v1464_v35 = vrot.slane %v1452_v50, 4  ;;  %v1363_v37 = vunpack.c.l.b16 %v2331_v27 }
 0x1b3   : > { %v1860_v47 = vsel %vm559_vm2, %v1859_v20, %v1858_v59  ;;  %v1071_v34 = vsel %vm664_vm8, %v1066_v19, 0  ;;  %v1463_v62 = vsel %vm568_vm5, %v1462_v10, %v1461_v32  ;;  %v1371_v38 = vrot.slane %v1362_v54, 7  ;;  %v2334_v19 = vld.sshfl [vmem:[%s2788_s14 + $0xe] sm:$0x2 pattern:$0x76325410]  ;;  %s3171_s14 = scalar_lea.hbm %s3231_s5, %s2394_s10 }
 0x1b4   : > { %v974_v44 = vsel %vm568_vm5, %v973_v13, %v972_v30  ;;  %v1862_v17 = vrot.slane %v1450_v33, 7  ;;  %v1364_v22 = vunpack.c.l.b16 %v2332_v48  ;;  %v1861_v61 = vsel %vm562_vm3, %v1449_v7, %v1860_v47 }
 0x1b5   : > { %v1769_v3 = vrot.slane %v1359_v52, 3  ;;  %v1770_v25 = vrot.slane %v1360_v39, 2  ;;  %v977_v43 = vrot.slane %v554_v6, 2  ;;  %v1465_v45 = vsel %vm571_vm6, %v1464_v35, %v1463_v62 }
 0x1b6   : > { %v1373_v24 = vrot.slane %v1363_v37, 6  ;;  %v976_v33 = vsel %vm571_vm6, %v975_v58, %v974_v44  ;;  %v1864_v20 = vrot.slane %v1451_v42, 6  ;;  %v1365_v7 = vunpack.c.l.b16 %v2333_v18 }
 0x1b7   : > { %v1863_v52 = vsel %vm565_vm4, %v1862_v17, %v1861_v61  ;;  %v1772_v39 = vrot.slane %v1361_v41, 1  ;;  %v1375_v2 = vrot.slane %v1364_v22, 5  ;;  %v1771_v6 = vsel %vm556_vm1, %v1770_v25, %v1769_v3 }
 0x1b8   : > { %v1866_v27 = vrot.slane %v1452_v50, 5  ;;  %v978_v42 = vsel %vm574_vm7, %v977_v43, %v976_v33  ;;  %v1366_v59 = vunpack.c.l.b16 %v2334_v19  ;;  %v1865_v13 = vsel %vm568_vm5, %v1864_v20, %v1863_v52 }
 0x1b9   : > { %v1773_v50 = vsel %vm559_vm2, %v1772_v39, %v1771_v6  ;;  %v979_v35 = vpack.c.b16 %v978_v42, %v978_v42  ;;  %v1775_v47 = vrot.slane %v1363_v37, 7  ;;  %v1779_v37 = vrot.slane %v1365_v7, 5 }
 0x1ba   : > { %v1867_v48 = vsel %vm571_vm6, %v1866_v27, %v1865_v13  ;;  %v1774_v58 = vsel %vm562_vm3, %v1362_v54, %v1773_v50 }
 0x231   : > { %v727_v14 = vpop.xlane.xlu0 %726 }
 0x232   : > { %2523 = vrcp.f32 %v727_v14  ;;  %v1453_v14 = vunpack.c.l.b16 %v2994_v40  ;;  %v1370_v40 = vsel %vm559_vm2, %v1361_v41, %v1369_v31  ;;  %v1377_v41 = vrot.slane %v1365_v7, 4 }
 0x233   : > { %v1372_v28 = vsel %vm562_vm3, %v1371_v38, %v1370_v40 }
 0x234   : > { %v1466_v49 = vrot.slane %v1453_v14, 3  ;;  %v1374_v10 = vsel %vm565_vm4, %v1373_v24, %v1372_v28  ;;  %v1868_v31 = vrot.slane %v1453_v14, 4  ;;  %v1776_v14 = vsel %vm565_vm4, %v1775_v47, %v1774_v58 }
 0x235   : > { %v1376_v30 = vsel %vm568_vm5, %v1375_v2, %v1374_v10 }
 0x236   : > { %v1378_v38 = vsel %vm571_vm6, %v1377_v41, %v1376_v30  ;;  %v1869_v44 = vsel %vm574_vm7, %v1868_v31, %v1867_v48 }
 0x237   : > { %v1870_v54 = vpack.c.b16 %v1869_v44, %v1869_v44 }
 0x239   : > { %v1875_v18 = vsel %vm664_vm8, %v1870_v54, 0 }
 0x23f   : > { %v2524_v23 = vpop.eup %2523 }
 0x240   : > { %v729_v55 = vmul.f32 %v2524_v23, %v2876_v46  ;;  %v1467_v46 = vsel %vm574_vm7, %v1466_v49, %v1465_v45  ;;  %v1777_v49 = vrot.slane %v1364_v22, 6  ;;  %v1781_v23 = vrot.slane %v1366_v59, 4 }
 0x241   : > { %v1468_v32 = vpack.c.b16 %v1467_v46, %v1467_v46 }
 0x242   : > { %v730_v21 = vpack.c.bf16 %v729_v55, %v729_v55  ;;  %v1778_v40 = vsel %vm568_vm5, %v1777_v49, %v1776_v14 }
 0x243   : > { %v1473_v62 = vsel %vm664_vm8, %v1468_v32, 0  ;;  %v1780_v22 = vsel %vm571_vm6, %v1779_v37, %v1778_v40  ;;  %v1201_v37 = vrot.slane %v797_v60, 1  ;;  %v1207_v60 = vrot.slane %v801_v9, 5 }
 0x244   : > { %2420 = vmatmul.mubr.msk.bf16.vlgmr.msra.gmra.mxu1 %vm664_vm8, %v730_v21  ;;  %732 = vst.msk [vmem:[%s3042_s24] sm:$0xf] %vm731_vm10, %v730_v21  ;;  %v1782_v61 = vsel %vm574_vm7, %v1781_v23, %v1780_v22  ;;  %v1205_v22 = vrot.slane %v800_v5, 6 }
 0x245   : > { %2424 = vmatpush3.bf16.xpose.msra.mxu1 %v1071_v34  ;;  %2425 = vmatprep.mubr.msk.bf16.mxu1 %vm2616_vm0, %v2615_v16  ;;  %v1379_v34 = vrot.slane %v1366_v59, 3  ;;  %v1783_v3 = vpack.c.b16 %v1782_v61, %v1782_v61 }
 0x246   : > { %2435 = vmatprep.subr.bf16.mxu1 %v2615_v16 }
 0x247   : > { %v1380_v51 = vsel %vm574_vm7, %v1379_v34, %v1378_v38 }
 0x248   : > { %v1381_v17 = vpack.c.b16 %v1380_v51, %v1380_v51 }
 0x24c   : > { %2426 = vmatmul.mubr.msk.bf16.vlgmr.msra.gmra.mxu1 %vm664_vm8, %v979_v35 }
 0x24d   : > { %2436 = vmatpush3.bf16.xpose.msra.mxu1 %v1473_v62  ;;  %2437 = vmatprep.mubr.msk.bf16.mxu1 %vm2616_vm0, %v2615_v16 }
 0x24e   : > { %2447 = vmatprep.subr.bf16.mxu1 %v2615_v16 }
 0x254   : > { %2438 = vmatmul.mubr.msk.bf16.vlgmr.msra.gmra.mxu1 %vm664_vm8, %v1381_v17  ;;  %v1203_v17 = vrot.slane %v799_v1, 7  ;;  %v1209_v1 = vrot.slane %v802_v12, 4  ;;  %v2345_v12 = vld.sshfl [vmem:[%s2881_s17] sm:$0x2 pattern:$0x76325410] }
 0x255   : > { %2448 = vmatpush3.bf16.xpose.msra.mxu1 %v1875_v18  ;;  %2449 = vmatprep.mubr.msk.bf16.mxu1 %vm2616_vm0, %v2615_v16  ;;  %v1202_v18 = vsel %vm556_vm1, %v798_v63, %v1201_v37  ;;  %v1211_v63 = vrot.slane %v803_v26, 3  ;;  %v1595_v26 = vunpack.c.l.b16 %v2345_v12 }
 0x256   : > { %v1204_v53 = vsel %vm559_vm2, %v1203_v17, %v1202_v18 }
 0x257   : > { %v1206_v57 = vsel %vm562_vm3, %v1205_v22, %v1204_v53 }
 0x258   : > { %v1208_v56 = vsel %vm565_vm4, %v1207_v60, %v1206_v57 }
 0x259   : > { %v1210_v5 = vsel %vm568_vm5, %v1209_v1, %v1208_v56 }
 0x25a   : > { %v1212_v4 = vsel %vm571_vm6, %v1211_v63, %v1210_v5 }
 0x25b   : > { %v1214_v9 = vsel %vm574_vm7, %v1213_v0, %v1212_v4 }
 0x25c   : > { %2450 = vmatmul.mubr.msk.bf16.vlgmr.msra.gmra.mxu1 %vm664_vm8, %v1783_v3  ;;  %v1215_v61 = vpack.c.b16 %v1214_v9, %v1214_v9  ;;  %v2347_v3 = vld.sshfl [vmem:[%s2881_s17 + $0x4] sm:$0x2 pattern:$0x76325410] }
 0x25e   : > { %v1220_v8 = vsel %vm823_vm9, %v1215_v61, 0 }
 0x25f   : > { %2430 = vmatpush3.bf16.msra.mxu0 %v1220_v8 }
 0x260   : > { %2441 = vmatprep.subr.bf16.mxu0 %v2615_v16 }
 0x304   : > { %v861_v25 = vpop.f32.mrf.mxu1 }
 0x305   : > { %v867_v55 = vpack.c.bf16 %v861_v25, %v861_v25  ;;  %v1603_v25 = vrot.slane %v1595_v26, 2 }
 0x306   : > { %v2421_v43 = vpop.f32.mrf.mxu1 }
 0x307   : > { %868 = vst.msk [vmem:[%s3078_s8] sm:$0xf] %vm731_vm10, %v867_v55  ;;  %v1604_v55 = vrot.slane %v1596_v15, 1 }
 0x308   : > { %v864_v45 = vpop.f32.mrf.mxu1  ;;  %v2349_v43 = vld.sshfl [vmem:[%s2881_s17 + $0x8] sm:$0x2 pattern:$0x76325410] }
 0x309   : > { %v1598_v45 = vunpack.c.l.b16 %v2348_v36 }
 0x30a   : > { %v2422_v24 = vpop.f32.mrf.mxu1 }
 0x30b   : > { %v1597_v24 = vunpack.c.l.b16 %v2347_v3 }
 0x30c   : > { %v1107_v33 = vpop.f32.mrf.mxu1 }
 0x30d   : > { %v1113_v28 = vmul.f32 0.35355338, %v1107_v33  ;;  %v1605_v33 = vsel %vm556_vm1, %v1604_v55, %v1603_v25 }
 0x30e   : > { %v2427_v20 = vpop.f32.mrf.mxu1 }
 0x30f   : > { %v1114_v21 = vadd.f32 %v2872_v29, %v1113_v28  ;;  %v2350_v28 = vld.sshfl [vmem:[%s2881_s17 + $0xa] sm:$0x2 pattern:$0x76325410]  ;;  %v1599_v20 = vunpack.c.l.b16 %v2349_v43 }
 0x310   : > { %v1110_v19 = vpop.f32.mrf.mxu1 }
 0x311   : > { %v1115_v7 = vsel %vm664_vm8, %v1114_v21, -inf  ;;  %v1606_v19 = vsel %vm559_vm2, %v1597_v24, %v1605_v33 }
 0x312   : > { %1116 = vmax.xlane.f32.xlu1 %v1115_v7  ;;  %v2428_v52 = vpop.f32.mrf.mxu1  ;;  %v2351_v7 = vld.sshfl [vmem:[%s2881_s17 + $0xc] sm:$0x2 pattern:$0x76325410] }
 0x313   : > { %v1600_v52 = vunpack.c.l.b16 %v2350_v28 }
 0x314   : > { %v1509_v39 = vpop.f32.mrf.mxu1 }
 0x315   : > { %v1515_v46 = vmul.f32 0.35355338, %v1509_v39  ;;  %v2005_v39 = vrot.slane %v1595_v26, 3 }
 0x316   : > { %v2439_v2 = vpop.f32.mrf.mxu1 }
 0x317   : > { %v1516_v6 = vadd.f32 %v2872_v29, %v1515_v46  ;;  %v2006_v46 = vrot.slane %v1596_v15, 2  ;;  %v1609_v2 = vrot.slane %v1599_v20, 6 }
 0x318   : > { %v1512_v10 = vpop.f32.mrf.mxu1 }
 0x319   : > { %v1517_v27 = vsel %vm664_vm8, %v1516_v6, -inf  ;;  %v2352_v10 = vld.sshfl [vmem:[%s2881_s17 + $0xe] sm:$0x2 pattern:$0x76325410]  ;;  %s2541_s17 = sshll.u32 %s2618_s21, 4  ;;  %s2542_s17 = int_to_ptr.vmem [resolvable:$false] %s2541_s17 }
 0x31a   : > { %1518 = vmax.xlane.f32.xlu1 %v1517_v27  ;;  %v2440_v42 = vpop.f32.mrf.mxu1  ;;  %v1601_v27 = vunpack.c.l.b16 %v2351_v7  ;;  %p2544_p4 = scmp.lt.s32.totalorder %s3173_s11, %s2542_s17 }
 0x31b   : > { %v2008_v42 = vrot.slane %v1597_v24, 1 }
 0x31c   : > { %v1911_v59 = vpop.f32.mrf.mxu1 }
 0x31d   : > { %v1917_v13 = vmul.f32 0.35355338, %v1911_v59 }
 0x31e   : > { %v2451_v32 = vpop.f32.mrf.mxu1 }
 0x31f   : > { %v1918_v41 = vadd.f32 %v2872_v29, %v1917_v13  ;;  %v1611_v13 = vrot.slane %v1600_v52, 5  ;;  %v2007_v32 = vsel %vm556_vm1, %v2006_v46, %v2005_v39 }
 0x320   : > { %v1914_v50 = vpop.f32.mrf.mxu1 }
 0x321   : > { %v1919_v30 = vsel %vm664_vm8, %v1918_v41, -inf  ;;  %v1602_v50 = vunpack.c.l.b16 %v2352_v10 }
 0x322   : > { %1920 = vmax.xlane.f32.xlu0 %v1919_v30  ;;  %v2452_v31 = vpop.f32.mrf.mxu1  ;;  %v1613_v30 = vrot.slane %v1601_v27, 4 }
 0x323   : > { %v2009_v31 = vsel %vm559_vm2, %v2008_v42, %v2007_v32 }
 0x39b   : > { %v1117_v35 = vpop.xlane.xlu1 %1116 }
 0x39c   : > { %v1118_v48 = vsub.f32 %v1114_v21, %v1117_v35  ;;  %v1607_v21 = vrot.slane %v1598_v45, 7 }
 0x39e   : > { %v1119_v47 = vmul.f32 1.442695, %v1118_v48  ;;  %v2011_v48 = vrot.slane %v1599_v20, 7 }
 0x3a0   : > { %2525 = vpow2.f32 %v1119_v47  ;;  %v1615_v47 = vrot.slane %v1602_v50, 3 }
 0x3a3   : > { %v1519_v34 = vpop.xlane.xlu1 %1518 }
 0x3a4   : > { %v1520_v58 = vsub.f32 %v1516_v6, %v1519_v34  ;;  %v1608_v6 = vsel %vm562_vm3, %v1607_v21, %v1606_v19  ;;  %v2010_v34 = vsel %vm562_vm3, %v1598_v45, %v2009_v31 }
 0x3a6   : > { %v1521_v62 = vmul.f32 1.442695, %v1520_v58 }
 0x3a8   : > { %2527 = vpow2.f32 %v1521_v62 }
 0x3ab   : > { %v1921_v38 = vpop.xlane.xlu0 %1920 }
 0x3ac   : > { %v1922_v44 = vsub.f32 %v1918_v41, %v1921_v38  ;;  %v1610_v41 = vsel %vm565_vm4, %v1609_v2, %v1608_v6  ;;  %v2013_v38 = vrot.slane %v1600_v52, 6 }
 0x3ad   : > { %v3088_v49 = vpop.eup %2525  ;;  %v1612_v35 = vsel %vm568_vm5, %v1611_v13, %v1610_v41 }
 0x3ae   : > { %v1923_v14 = vmul.f32 1.442695, %v1922_v44  ;;  %v1121_v29 = vsel %vm664_vm8, %v3088_v49, 0.0  ;;  %v1614_v58 = vsel %vm571_vm6, %v1613_v30, %v1612_v35  ;;  %v2012_v44 = vsel %vm565_vm4, %v2011_v48, %v2010_v34 }
 0x3af   : > { %1122 = vadd.xlane.f32.xlu1 %v1121_v29  ;;  %v2015_v29 = vrot.slane %v1601_v27, 5 }
 0x3b0   : > { %2529 = vpow2.f32 %v1923_v14  ;;  %v1616_v14 = vsel %vm574_vm7, %v1615_v47, %v1614_v58 }
 0x3b1   : > { %v1617_v37 = vpack.c.b16 %v1616_v14, %v1616_v14 }
 0x3b3   : > { %v1622_v57 = vsel %vm823_vm9, %v1617_v37, 0 }
 0x3b5   : > { %v3092_v51 = vpop.eup %2527 }
 0x3b6   : > { %v1523_v54 = vsel %vm664_vm8, %v3092_v51, 0.0 }
 0x3b7   : > { %1524 = vadd.xlane.f32.xlu0 %v1523_v54  ;;  %v2014_v54 = vsel %vm568_vm5, %v2013_v38, %v2012_v44 }
 0x3b8   : > { %v2016_v22 = vsel %vm571_vm6, %v2015_v29, %v2014_v54 }
 0x3bd   : > { %v3098_v40 = vpop.eup %2529 }
 0x3be   : > { %v1925_v23 = vsel %vm664_vm8, %v3098_v40, 0.0 }
 0x3bf   : > { %1926 = vadd.xlane.f32.xlu1 %v1925_v23  ;;  %v2017_v23 = vrot.slane %v1602_v50, 4 }
 0x3c1   : > { %v2018_v1 = vsel %vm574_vm7, %v2017_v23, %v2016_v22 }
 0x438   : > { %v1123_v59 = vpop.xlane.xlu1 %1122 }
 0x439   : > { %2531 = vrcp.f32 %v1123_v59 }
 0x440   : > { %v1525_v62 = vpop.xlane.xlu0 %1524 }
 0x441   : > { %2533 = vrcp.f32 %v1525_v62 }
 0x446   : > { %v2532_v17 = vpop.eup %2531 }
 0x447   : > { %v1125_v18 = vmul.f32 %v2532_v17, %v3088_v49  ;;  %v2019_v49 = vpack.c.b16 %v2018_v1, %v2018_v1 }
 0x448   : > { %v1927_v53 = vpop.xlane.xlu1 %1926 }
 0x449   : > { %2535 = vrcp.f32 %v1927_v53  ;;  %v1126_v60 = vpack.c.bf16 %v1125_v18, %v1125_v18  ;;  %v2024_v5 = vsel %vm823_vm9, %v2019_v49, 0 }
 0x44b   : > { %2316 = vst.msk [vmem:[%s3042_s24 + $0x4] sm:$0xf] %vm731_vm10, %v1126_v60  ;;  %2432 = vmatmul.mubr.msk.bf16.vlgmr.msra.gmra.mxu0 %vm664_vm8, %v1126_v60 }
 0x44c   : > { %2442 = vmatpush3.bf16.msra.mxu0 %v1622_v57  ;;  %2443 = vmatprep.mubr.msk.bf16.mxu0 %vm2616_vm0, %v2615_v16 }
 0x44d   : > { %2453 = vmatprep.subr.bf16.mxu0 %v2615_v16 }
 0x44e   : > { %v2534_v56 = vpop.eup %2533 }
 0x44f   : > { %v1527_v63 = vmul.f32 %v2534_v56, %v3092_v51 }
 0x451   : > { %v1528_v0 = vpack.c.bf16 %v1527_v63, %v1527_v63 }
 0x453   : > { %2344 = vst.msk [vmem:[%s3042_s24 + $0x8] sm:$0xf] %vm731_vm10, %v1528_v0  ;;  %2444 = vmatmul.mubr.msk.bf16.vlgmr.msra.gmra.mxu0 %vm664_vm8, %v1528_v0 }
 0x454   : > { %2454 = vmatpush3.bf16.msra.mxu0 %v2024_v5  ;;  %2455 = vmatprep.mubr.msk.bf16.mxu0 %vm2616_vm0, %v2615_v16 }
 0x456   : > { %v2536_v4 = vpop.eup %2535 }
 0x457   : > { %v1929_v9 = vmul.f32 %v2536_v4, %v3098_v40 }
 0x459   : > { %v1930_v61 = vpack.c.bf16 %v1929_v9, %v1929_v9 }
 0x45b   : > { %2372 = vst.msk [vmem:[%s3042_s24 + $0xc] sm:$0xf] %vm731_vm10, %v1930_v61  ;;  %2456 = vmatmul.mubr.msk.bf16.vlgmr.msra.gmra.mxu0 %vm664_vm8, %v1930_v61  ;;  %s2543_s24 = scalar_lea.vmem %s2542_s17, 512 }
 0x45c   : > { %p2545_p6 = scmp.lt.s32.totalorder %s2543_s24, %s2537_s16 }
 0x45e   : > { %p2546_p7 = por %p2545_p6, %p2544_p4 }
 0x460   : > { %p2547_p8 = pnand %p2546_p7, %p2540_p3 }
 0x50b   : > { %v1256_v51 = vpop.f32.mrf.mxu0 }
 0x50c   : > { %v2391_v8 = vpack.c.bf16 %v1256_v51, %v1256_v51 }
 0x50d   : > { %v2433_v12 = vpop.f32.mrf.mxu0 }
 0x50e   : > { %1266 = vrot.lane.b32.xlu0 %v2391_v8, %s2617_s9 }
 0x50f   : > { %v1259_v11 = vpop.f32.mrf.mxu0 }
 0x511   : > { %v2434_v16 = vpop.f32.mrf.mxu0 }
 0x513   : > { %v1658_v40 = vpop.f32.mrf.mxu0 }
 0x514   : > { %2550 = shalt.err (!%p2547_p8)
}
 0x515   : > { %s2551_s28 = scalar_lea.hbm %s3171_s14, 256  ;;  %s2555_s30 = scalar_lea.hbm %s3231_s5, 512 }
 0x516   : > { %p2552_p11 = scmp.ne.s32.totalorder %s3171_s14, %s2551_s28  ;;  %p2556_p0 = scmp.lt.s32.totalorder %s3171_s14, %s3231_s5 }
 0x517   : > { %p2557_p1 = scmp.lt.s32.totalorder %s2555_s30, %s2551_s28 }
 0x518   : > { %p2553_p12 = pnand %p2552_p11, %p2696_p5 }
 0x519   : > { %p2558_p2 = por %p2557_p1, %p2556_p0 }
 0x51a   : > { %p2554_p13 = pneg %p2553_p12 }
 0x51c   : > { %p2559_p3 = pnand %p2558_p2, %p2554_p13 }
 0x51e   : > { %2562 = shalt.err (!%p2559_p3)
}
 0x51f   : > { %s2619_s12 = smov 64   ;;  %s2620_s13 = smov 4   ;;  %v2392_v26 = vpack.c.bf16 %v1658_v40, %v1658_v40  ;;  %v2445_v15 = vpop.f32.mrf.mxu0  ;;  %vm1269_vm11 = vcmask 126016   ;;  %vm1671_vm12 = vcmask 191616   ;;  %vm2073_vm13 = vcmask 257216  }
 0x520   : > { %2459 = dma.vmem_to_hbm [thread:$0]  (%p2696_p5), %s3173_s11, 256, %s3171_s14, %s3177_s15, %s2619_s12, %s2619_s12, %s2620_s13  }
 0x521   : > { %s2621_s16 = smov 16   ;;  %v1661_v36 = vpop.f32.mrf.mxu0  ;;  %s2622_s21 = smov 24  }
 0x522   : > { %1668 = vrot.lane.b32.xlu1 %v2392_v26, %s2621_s16 }
 0x523   : > { %v2446_v3 = vpop.f32.mrf.mxu0 }
 0x525   : > { %v2060_v25 = vpop.f32.mrf.mxu0 }
 0x526   : > { %v2393_v55 = vpack.c.bf16 %v2060_v25, %v2060_v25 }
 0x527   : > { %v2457_v43 = vpop.f32.mrf.mxu0 }
 0x528   : > { %2070 = vrot.lane.b32.xlu1 %v2393_v55, %s2622_s21 }
 0x529   : > { %v2063_v45 = vpop.f32.mrf.mxu0 }
 0x52b   : > { %v2458_v24 = vpop.f32.mrf.mxu0 }
 0x580   : > { %v1267_v33 = vpop.permute.xlu0 %1266 }
 0x581   : > { %1270 = vst.msk [vmem:[%s3078_s8] sm:$0xf] %vm1269_vm11, %v1267_v33 }
 0x594   : > { %v1669_v28 = vpop.permute.xlu1 %1668 }
 0x595   : > { %1672 = vst.msk [vmem:[%s3078_s8] sm:$0xf] %vm1671_vm12, %v1669_v28 }
 0x59a   : > { %v2071_v20 = vpop.permute.xlu1 %2070 }
 0x59b   : > { %2074 = vst.msk [vmem:[%s3078_s8] sm:$0xf] %vm2073_vm13, %v2071_v20 }
 0x59c PF: > { %s2125_s29 = sand.u32 1, %s2593_s18   ;;  %p2462_p5 = pnand %p2250_p10, %p2707_p9 }
 0x59d   : > { %s2126_s11 = scalar_lea.sflag [#allocation5], %s2125_s29 }
 0x59e   : > { %p2463_p4 = pneg %p2462_p5 }
 0x5a0   : > { %2588 = dma.done.wait (%p2463_p4), %s2126_s11, 256  }
 0x5a1   : > { %2590 = vsyncadd (%p2463_p4), %s2126_s11, 4294967040  ;;  %s19_s23 = sadd.s32 1, %s2613_s23   ;;  %s3235_s18 = smov %s2597_s19 }
 0x5a2   : > { %p16_p6 = scmp.ge.s32.totalorder %s19_s23, 4   ;;  %s3236_s19 = smov %s2601_s20 }
 0x5a3   : > { %s3237_s20 = smov %s2705_s6  ;;  %s3238_s21 = smov %s2609_s22 }
 0x5a4   : > { %s3239_s22 = smov %s3241_s26  ;;  %18 = sbr.rel (!%p16_p6) target bundleno = 4 (0x4), region = 184 }
 0x5a9   :  { %2131 = vsyncpa [#allocation5], 1 }
 0x5aa   :  { %2133 = vsyncpa [#allocation5 + $0x1], 1 }

</bundles_post_ra>
